<compile_context>
chip_gen: v6e
topology: v6e:2x2x1
jax: 0.10.0
libtpu: 0.0.40
codegen_flags: <defaults>
</compile_context>

<pallas_src>
import jax
import jax.numpy as jnp
from jax.experimental import pallas as pl
from jax.experimental.pallas import tpu as pltpu


# 48 MiB stays under v7x's 64 MiB physical VMEM while raising the scoped
# default on v5e/v6e.
_VMEM_LIMIT = 48 * 1024 * 1024


def _round_up(n, m):
    return ((n + m - 1) // m) * m


def _pick_time_chunk(T, Bp, row_width_f32, target, budget_bytes=8 << 20):
    """Largest divisor of T that is <= target and whose double-buffered f32
    blocks (TT*Bp rows x row_width_f32 columns) stay under budget_bytes."""
    per_t = max(1, Bp * row_width_f32 * 4 * 2)     # f32, double-buffered
    cap = max(1, budget_bytes // per_t)
    tgt = max(1, min(T, target, cap))
    for c in range(tgt, 0, -1):
        if T % c == 0:
            return c
    return 1


# ----------------------------------------------------------------------------
# Pallas kernels
# ----------------------------------------------------------------------------
def input_proj_kernel(x_ref, wih_ref, bias_ref, gi_ref):
    """gi = sum_s x[s] @ wih[s] + (bih + bhh_rz), one direction / time chunk.

    x_ref:    (S, TT*Bp, Din)  flattened time-major rows (row = t*Bp + b)
    wih_ref:  (S, Din, 3H)
    bias_ref: (1, 3H)          bih with the r/z part of bhh folded in
    gi_ref:   (TT*Bp, 3H)
    """
    S = x_ref.shape[0]
    acc = jnp.dot(x_ref[0], wih_ref[0], preferred_element_type=jnp.float32)
    for s in range(1, S):          # S in {1, 2}: previous layer's fwd/bwd halves
        acc = acc + jnp.dot(x_ref[s], wih_ref[s],
                            preferred_element_type=jnp.float32)
    gi_ref[...] = acc + bias_ref[...]


def gru_chunk_kernel(gi_ref, whh_ref, bhh_n_ref, out_ref, h_scr):
    """TT GRU timesteps per grid step (PyTorch gate order r, z, n).
    Grid = (direction, T // TT).

    gi_ref:    (TT*Bp, 3H)  hoisted input projection (biases already folded in)
    whh_ref:   (H, 3H)
    bhh_n_ref: (1, 3H)      only the n-gate part of bhh (r/z parts live in gi)
    out_ref:   (TT*Bp, H)
    h_scr:     (Bp, H)      hidden state carried across the "arbitrary" chunk axis
    """
    Bp, H = h_scr.shape
    TT = gi_ref.shape[0] // Bp

    @pl.when(pl.program_id(1) == 0)
    def _():
        h_scr[...] = jnp.zeros_like(h_scr)

    whh = whh_ref[...]
    bhh_n = bhh_n_ref[...]

    def run(order):
        h = h_scr[...]
        for i in order:                       # static unroll, static slices
            lo = i * Bp
            gi = gi_ref[lo:lo + Bp, :]
            gh = jnp.dot(h, whh, preferred_element_type=jnp.float32) + bhh_n
            r = jax.nn.sigmoid(gi[:, 0:H] + gh[:, 0:H])
            z = jax.nn.sigmoid(gi[:, H:2 * H] + gh[:, H:2 * H])
            n = jnp.tanh(gi[:, 2 * H:3 * H] + r * gh[:, 2 * H:3 * H])
            h = (1.0 - z) * n + z * h
            out_ref[lo:lo + Bp, :] = h
        h_scr[...] = h

    d = pl.program_id(0)

    @pl.when(d == 0)                          # forward: within-chunk time 0..TT-1
    def _():
        run(range(TT))

    @pl.when(d == 1)                          # backward: within-chunk time TT-1..0
    def _():
        run(list(reversed(range(TT))))


def pool_linear_kernel(op_ref, padw_ref, w_ref, b_ref, out_ref, sum_scr):
    """Masked mean-pool over time (accumulated over chunks) + Linear.

    op_ref:   (2, TT, Bp, H)  both directions' GRU outputs for this time chunk
    padw_ref: (TT, Bp, 1)     pad mask pre-divided by clamp(seq_len, 1)
    w_ref:    (2, H, O)       Linear weight split per direction (no concat)
    b_ref:    (1, O)
    out_ref:  (Bp, O)
    sum_scr:  (2, Bp, H)
    """
    c = pl.program_id(0)

    @pl.when(c == 0)
    def _():
        sum_scr[...] = jnp.zeros_like(sum_scr)

    op = op_ref[...]
    wts = padw_ref[...]
    sum_scr[...] += jnp.sum(op * wts[None], axis=1)          # (2, Bp, H)

    @pl.when(c == pl.num_programs(0) - 1)
    def _():
        pooled = sum_scr[...]
        out_ref[...] = (
            jnp.dot(pooled[0], w_ref[0], preferred_element_type=jnp.float32)
            + jnp.dot(pooled[1], w_ref[1], preferred_element_type=jnp.float32)
            + b_ref[...])


# ----------------------------------------------------------------------------
# pallas_call wrappers
# ----------------------------------------------------------------------------
def _input_projection(x_s, wih_s, bias_s, T, Bp):
    S, rows, Din = x_s.shape
    G = wih_s.shape[-1]
    TT = _pick_time_chunk(T, Bp, S * Din + G, target=128)
    nc = T // TT
    Rb = TT * Bp
    return pl.pallas_call(
        input_proj_kernel,
        out_shape=jax.ShapeDtypeStruct((2, rows, G), jnp.float32),
        grid=(2, nc),
        in_specs=[
            pl.BlockSpec((S, Rb, Din), lambda d, c: (0, c, 0)),
            pl.BlockSpec((None, S, Din, G), lambda d, c: (d, 0, 0, 0)),
            pl.BlockSpec((None, 1, G), lambda d, c: (d, 0, 0)),
        ],
        out_specs=pl.BlockSpec((None, Rb, G), lambda d, c: (d, c, 0)),
        compiler_params=pltpu.CompilerParams(
            dimension_semantics=("parallel", "parallel"),
            vmem_limit_bytes=_VMEM_LIMIT),
    )(x_s, wih_s, bias_s)


def _gru_recurrence(gi, whh_s, bhh_n_s, T, Bp):
    _, rows, G = gi.shape
    H = whh_s.shape[1]
    TT = _pick_time_chunk(T, Bp, G + H, target=8)   # amortise grid overhead
    nc = T // TT
    Rb = TT * Bp

    def io_idx(d, c):
        # Forward walks chunks 0..nc-1, backward walks nc-1..0; the within-chunk
        # reversal is handled inside the kernel with static slices.
        return (d, c + d * (nc - 1 - 2 * c), 0)

    return pl.pallas_call(
        gru_chunk_kernel,
        out_shape=jax.ShapeDtypeStruct((2, rows, H), jnp.float32),
        grid=(2, nc),
        in_specs=[
            pl.BlockSpec((None, Rb, G), io_idx),
            pl.BlockSpec((None, H, G), lambda d, c: (d, 0, 0)),
            pl.BlockSpec((None, 1, G), lambda d, c: (d, 0, 0)),
        ],
        out_specs=pl.BlockSpec((None, Rb, H), io_idx),
        scratch_shapes=[pltpu.VMEM((Bp, H), jnp.float32)],
        compiler_params=pltpu.CompilerParams(
            dimension_semantics=("parallel", "arbitrary"),
            vmem_limit_bytes=_VMEM_LIMIT),
    )(gi, whh_s, bhh_n_s)


def _pool_linear(op4, padw, w_s, b):
    _, T, Bp, H = op4.shape
    O = w_s.shape[-1]
    TT = _pick_time_chunk(T, Bp, 2 * H + 1, target=128)
    nc = T // TT
    return pl.pallas_call(
        pool_linear_kernel,
        out_shape=jax.ShapeDtypeStruct((Bp, O), jnp.float32),
        grid=(nc,),
        in_specs=[
            pl.BlockSpec((2, TT, Bp, H), lambda c: (0, c, 0, 0)),
            pl.BlockSpec((TT, Bp, 1), lambda c: (c, 0, 0)),
            pl.BlockSpec((2, H, O), lambda c: (0, 0, 0)),
            pl.BlockSpec((1, O), lambda c: (0, 0)),
        ],
        out_specs=pl.BlockSpec((Bp, O), lambda c: (0, 0)),
        scratch_shapes=[pltpu.VMEM((2, Bp, H), jnp.float32)],
        compiler_params=pltpu.CompilerParams(
            dimension_semantics=("arbitrary",),
            vmem_limit_bytes=_VMEM_LIMIT),
    )(op4, padw, w_s, b)


def _prep_layer(layer_params, S, Din, H):
    """Stack per-direction GRU weights; fold biases for the hoisted projection."""
    rz_mask = jnp.concatenate([jnp.ones((2 * H,), jnp.float32),
                               jnp.zeros((H,), jnp.float32)])
    wih, b_in, whh, bhh_n = [], [], [], []
    for p in layer_params:                                   # [forward, backward]
        wih.append(p["wih"].T.reshape(S, Din, 3 * H))        # split per input half
        whh.append(p["whh"].T)                               # (H, 3H)
        b_in.append((p["bih"] + p["bhh"] * rz_mask).reshape(1, 3 * H))
        bhh_n.append((p["bhh"] * (1.0 - rz_mask)).reshape(1, 3 * H))
    return jnp.stack(wih), jnp.stack(b_in), jnp.stack(whh), jnp.stack(bhh_n)


@jax.jit
def gru_encoder_forward(x, pad_list, params):
    """x: (B, T, D_in) f32, pad_list: (B, T) float 0/1 mask. Returns (B, output_dim)."""
    B, T, _ = x.shape
    H = params["gru"][0][0]["whh"].shape[1]
    Bp = _round_up(B, 8)          # fill f32 sublanes / MXU rows

    # Batch-pad + one-time time-major flatten: row index r = t*Bp + b.
    xp = jnp.pad(x, ((0, Bp - B), (0, 0), (0, 0)))
    inp = jnp.transpose(xp, (1, 0, 2)).reshape(1, T * Bp, -1)   # (S=1, T*Bp, D)

    for layer in params["gru"]:
        S, _, Din = inp.shape
        wih_s, b_in_s, whh_s, bhh_n_s = _prep_layer(layer, S, Din, H)
        gi = _input_projection(inp, wih_s, b_in_s, T, Bp)        # (2, T*Bp, 3H)
        inp = _gru_recurrence(gi, whh_s, bhh_n_s, T, Bp)         # (2, T*Bp, H)
        # TODO(synk): inter-layer GRU dropout is training-only; eval forward skips it.

    op4 = inp.reshape(2, T, Bp, H)            # zero-cost reshape (row = t*Bp + b)

    padp = jnp.pad(pad_list, ((0, Bp - B), (0, 0)))
    denom = jnp.maximum(jnp.sum(padp, axis=1, keepdims=True), 1.0)   # clamp(min=1)
    padw = jnp.transpose(padp / denom)[:, :, None]                   # (T, Bp, 1)

    w, b = params["lin"]                      # (O, 2H), (O,)
    w_s = jnp.transpose(w).reshape(2, H, -1)  # (2, H, O): per-direction halves
    out = _pool_linear(op4, padw, w_s, b.reshape(1, -1))
    return out[:B]


# ----------------------------------------------------------------------------
# Deterministic parameter init (PyTorch-style uniform(-1/sqrt(H), 1/sqrt(H)))
# ----------------------------------------------------------------------------
def init_params(key, input_dim, hidden_dim, num_layers, output_dim,
                bidirectional=True):
    assert bidirectional, "this implementation covers the bidirectional=True module"
    num_dir = 2
    k_gru = 1.0 / float(hidden_dim) ** 0.5
    layers = []
    for l in range(num_layers):
        in_dim = input_dim if l == 0 else hidden_dim * num_dir
        dirs = []
        for _ in range(num_dir):
            key, k1, k2, k3, k4 = jax.random.split(key, 5)
            dirs.append(dict(
                wih=jax.random.uniform(k1, (3 * hidden_dim, in_dim),
                                       jnp.float32, -k_gru, k_gru),
                whh=jax.random.uniform(k2, (3 * hidden_dim, hidden_dim),
                                       jnp.float32, -k_gru, k_gru),
                bih=jax.random.uniform(k3, (3 * hidden_dim,),
                                       jnp.float32, -k_gru, k_gru),
                bhh=jax.random.uniform(k4, (3 * hidden_dim,),
                                       jnp.float32, -k_gru, k_gru),
            ))
        layers.append(dirs)
    lin_in = hidden_dim * num_dir
    k_lin = 1.0 / float(lin_in) ** 0.5
    key, kw, kb = jax.random.split(key, 3)
    w = jax.random.uniform(kw, (output_dim, lin_in), jnp.float32, -k_lin, k_lin)
    b = jax.random.uniform(kb, (output_dim,), jnp.float32, -k_lin, k_lin)
    return dict(gru=layers, lin=(w, b))


# ----------------------------------------------------------------------------
# Pure-JAX reference (for correctness check)
# ----------------------------------------------------------------------------
def gru_encoder_ref(x, pad_list, params):
    def cell(h, xt, wih, whh, bih, bhh):
        H = h.shape[-1]
        gi = xt @ wih.T + bih
        gh = h @ whh.T + bhh
        r = jax.nn.sigmoid(gi[:, :H] + gh[:, :H])
        z = jax.nn.sigmoid(gi[:, H:2 * H] + gh[:, H:2 * H])
        n = jnp.tanh(gi[:, 2 * H:] + r * gh[:, 2 * H:])
        return (1.0 - z) * n + z * h

    inp = x
    for layer in params["gru"]:
        outs = []
        for d, p in enumerate(layer):
            xd = inp if d == 0 else inp[:, ::-1, :]
            B, T, _ = xd.shape
            H = p["whh"].shape[1]

            def scan_fn(h, xt, p=p):
                hn = cell(h, xt, p["wih"], p["whh"], p["bih"], p["bhh"])
                return hn, hn

            _, out_tm = jax.lax.scan(scan_fn, jnp.zeros((B, H), jnp.float32),
                                     jnp.transpose(xd, (1, 0, 2)))
            out = jnp.transpose(out_tm, (1, 0, 2))
            if d == 1:
                out = out[:, ::-1, :]
            outs.append(out)
        inp = jnp.concatenate(outs, axis=-1)

    masked = inp * pad_list[:, :, None]
    s = masked.sum(axis=1)
    num = jnp.maximum(pad_list.sum(axis=1), 1.0)
    pooled = s / num[:, None]
    w, b = params["lin"]
    return pooled @ w.T + b


# ----------------------------------------------------------------------------
if __name__ == "__main__":
    B, T, D_IN, HID, OUT, LAYERS = 2, 8, 16, 32, 8, 2

    key = jax.random.PRNGKey(0)
    key, kx = jax.random.split(key)
    x = jax.random.normal(kx, (B, T, D_IN), jnp.float32)
    lengths = jnp.array([8, 5], dtype=jnp.int32)
    pad_list = (jnp.arange(T)[None, :] < lengths[:, None]).astype(jnp.float32)

    params = init_params(jax.random.PRNGKey(1), D_IN, HID, LAYERS, OUT,
                         bidirectional=True)

    out = gru_encoder_forward(x, pad_list, params)
    out = jax.block_until_ready(out)

    ref = gru_encoder_ref(x, pad_list, params)
    assert out.shape == (B, OUT), out.shape
    max_err = float(jnp.max(jnp.abs(out - ref)))
    assert jnp.allclose(out, ref, atol=1e-4, rtol=1e-4), max_err

    print("KERNEL_OK")
</pallas_src>

<mosaic_0001>
module attributes {stable_mosaic.version = 11 : i64} {
  func.func @input_proj_kernel(%arg0: i32, %arg1: i32, %arg2: memref<2x64x32xf32, #tpu.memory_space<vmem>>, %arg3: memref<1x2x32x96xf32, #tpu.memory_space<vmem>>, %arg4: memref<1x1x96xf32, #tpu.memory_space<vmem>>, %arg5: memref<1x64x96xf32, #tpu.memory_space<vmem>>) attributes {dimension_semantics = [#tpu.dimension_semantics<parallel>, #tpu.dimension_semantics<parallel>], iteration_bounds = array<i64: 2, 1>, scalar_prefetch = 0 : i64, scratch_operands = 0 : i64, tpu.core_type = #tpu.core_type<tc>, window_params = [{transform_indices = @transform_0, window_bounds = array<i64: 2, 64, 32>}, {transform_indices = @transform_1, window_bounds = array<i64: 1, 2, 32, 96>}, {transform_indices = @transform_2, window_bounds = array<i64: 1, 1, 96>}, {transform_indices = @transform_3, window_bounds = array<i64: 1, 64, 96>}]} {
    %c0 = arith.constant 0 : index
    %c0_0 = arith.constant 0 : index
    %c0_1 = arith.constant 0 : index
    %0 = vector.load %arg2[%c0, %c0_0, %c0_1] : memref<2x64x32xf32, #tpu.memory_space<vmem>>, vector<1x64x32xf32>
    %1 = vector.shape_cast %0 : vector<1x64x32xf32> to vector<64x32xf32>
    %c0_2 = arith.constant 0 : index
    %c0_3 = arith.constant 0 : index
    %c0_4 = arith.constant 0 : index
    %c0_5 = arith.constant 0 : index
    %2 = vector.load %arg3[%c0_2, %c0_3, %c0_4, %c0_5] : memref<1x2x32x96xf32, #tpu.memory_space<vmem>>, vector<1x1x32x96xf32>
    %3 = vector.shape_cast %2 : vector<1x1x32x96xf32> to vector<32x96xf32>
    %cst = arith.constant dense<0.000000e+00> : vector<64x96xf32>
    %4 = tpu.matmul %1, %3, %cst {dimension_numbers = #tpu.dot_dimension_numbers<[1], [0], [0], [1], [0, 0, 1, 1], [], []>} : vector<64x32xf32>, vector<32x96xf32>, vector<64x96xf32> -> vector<64x96xf32>
    %c1 = arith.constant 1 : index
    %c0_6 = arith.constant 0 : index
    %c0_7 = arith.constant 0 : index
    %5 = vector.load %arg2[%c1, %c0_6, %c0_7] : memref<2x64x32xf32, #tpu.memory_space<vmem>>, vector<1x64x32xf32>
    %6 = vector.shape_cast %5 : vector<1x64x32xf32> to vector<64x32xf32>
    %c0_8 = arith.constant 0 : index
    %c1_9 = arith.constant 1 : index
    %c0_10 = arith.constant 0 : index
    %c0_11 = arith.constant 0 : index
    %7 = vector.load %arg3[%c0_8, %c1_9, %c0_10, %c0_11] : memref<1x2x32x96xf32, #tpu.memory_space<vmem>>, vector<1x1x32x96xf32>
    %8 = vector.shape_cast %7 : vector<1x1x32x96xf32> to vector<32x96xf32>
    %cst_12 = arith.constant dense<0.000000e+00> : vector<64x96xf32>
    %9 = tpu.matmul %6, %8, %cst_12 {dimension_numbers = #tpu.dot_dimension_numbers<[1], [0], [0], [1], [0, 0, 1, 1], [], []>} : vector<64x32xf32>, vector<32x96xf32>, vector<64x96xf32> -> vector<64x96xf32>
    %10 = arith.addf %4, %9 : vector<64x96xf32>
    %c0_13 = arith.constant 0 : index
    %c0_14 = arith.constant 0 : index
    %c0_15 = arith.constant 0 : index
    %11 = vector.load %arg4[%c0_13, %c0_14, %c0_15] : memref<1x1x96xf32, #tpu.memory_space<vmem>>, vector<1x1x96xf32>
    %12 = vector.shape_cast %11 : vector<1x1x96xf32> to vector<1x96xf32>
    %13 = vector.broadcast %12 : vector<1x96xf32> to vector<64x96xf32>
    %14 = arith.addf %10, %13 : vector<64x96xf32>
    %c0_16 = arith.constant 0 : index
    %c0_17 = arith.constant 0 : index
    %c0_18 = arith.constant 0 : index
    %15 = vector.load %arg5[%c0_16, %c0_17, %c0_18] : memref<1x64x96xf32, #tpu.memory_space<vmem>>, vector<1x64x96xf32>
    %16 = vector.shape_cast %15 : vector<1x64x96xf32> to vector<64x96xf32>
    %17 = vector.shape_cast %14 : vector<64x96xf32> to vector<1x64x96xf32>
    tpu.vector_store %arg5[%c0_16, %c0_17, %c0_18], %17 {strides = array<i32>} : memref<1x64x96xf32, #tpu.memory_space<vmem>>, vector<1x64x96xf32>,
    return
  }
  func.func @transform_0(%arg0: i32, %arg1: i32) -> (i32, i32, i32) {
    %c0_i32 = arith.constant 0 : i32
    %c0_i32_0 = arith.constant 0 : i32
    %c0_i32_1 = arith.constant 0 : i32
    return %c0_i32, %arg1, %c0_i32_0 : i32, i32, i32
  }
  func.func @transform_1(%arg0: i32, %arg1: i32) -> (i32, i32, i32, i32) {
    %c0_i32 = arith.constant 0 : i32
    %c0_i32_0 = arith.constant 0 : i32
    %c0_i32_1 = arith.constant 0 : i32
    %c0_i32_2 = arith.constant 0 : i32
    return %arg0, %c0_i32, %c0_i32_0, %c0_i32_1 : i32, i32, i32, i32
  }
  func.func @transform_2(%arg0: i32, %arg1: i32) -> (i32, i32, i32) {
    %c0_i32 = arith.constant 0 : i32
    %c0_i32_0 = arith.constant 0 : i32
    %c0_i32_1 = arith.constant 0 : i32
    return %arg0, %c0_i32, %c0_i32_0 : i32, i32, i32
  }
  func.func @transform_3(%arg0: i32, %arg1: i32) -> (i32, i32, i32) {
    %c0_i32 = arith.constant 0 : i32
    %c0_i32_0 = arith.constant 0 : i32
    return %arg0, %arg1, %c0_i32 : i32, i32, i32
  }
}

module attributes {stable_mosaic.version = 11 : i64} {
  func.func @input_proj_kernel(%arg0: i32, %arg1: i32, %arg2: memref<1x64x16xf32, #tpu.memory_space<vmem>>, %arg3: memref<1x1x16x96xf32, #tpu.memory_space<vmem>>, %arg4: memref<1x1x96xf32, #tpu.memory_space<vmem>>, %arg5: memref<1x64x96xf32, #tpu.memory_space<vmem>>) attributes {dimension_semantics = [#tpu.dimension_semantics<parallel>, #tpu.dimension_semantics<parallel>], iteration_bounds = array<i64: 2, 1>, scalar_prefetch = 0 : i64, scratch_operands = 0 : i64, tpu.core_type = #tpu.core_type<tc>, window_params = [{transform_indices = @transform_0, window_bounds = array<i64: 1, 64, 16>}, {transform_indices = @transform_1, window_bounds = array<i64: 1, 1, 16, 96>}, {transform_indices = @transform_2, window_bounds = array<i64: 1, 1, 96>}, {transform_indices = @transform_3, window_bounds = array<i64: 1, 64, 96>}]} {
    %c0 = arith.constant 0 : index
    %c0_0 = arith.constant 0 : index
    %c0_1 = arith.constant 0 : index
    %0 = vector.load %arg2[%c0, %c0_0, %c0_1] : memref<1x64x16xf32, #tpu.memory_space<vmem>>, vector<1x64x16xf32>
    %1 = vector.shape_cast %0 : vector<1x64x16xf32> to vector<64x16xf32>
    %c0_2 = arith.constant 0 : index
    %c0_3 = arith.constant 0 : index
    %c0_4 = arith.constant 0 : index
    %c0_5 = arith.constant 0 : index
    %2 = vector.load %arg3[%c0_2, %c0_3, %c0_4, %c0_5] : memref<1x1x16x96xf32, #tpu.memory_space<vmem>>, vector<1x1x16x96xf32>
    %3 = vector.shape_cast %2 : vector<1x1x16x96xf32> to vector<16x96xf32>
    %cst = arith.constant dense<0.000000e+00> : vector<64x96xf32>
    %4 = tpu.matmul %1, %3, %cst {dimension_numbers = #tpu.dot_dimension_numbers<[1], [0], [0], [1], [0, 0, 1, 1], [], []>} : vector<64x16xf32>, vector<16x96xf32>, vector<64x96xf32> -> vector<64x96xf32>
    %c0_6 = arith.constant 0 : index
    %c0_7 = arith.constant 0 : index
    %c0_8 = arith.constant 0 : index
    %5 = vector.load %arg4[%c0_6, %c0_7, %c0_8] : memref<1x1x96xf32, #tpu.memory_space<vmem>>, vector<1x1x96xf32>
    %6 = vector.shape_cast %5 : vector<1x1x96xf32> to vector<1x96xf32>
    %7 = vector.broadcast %6 : vector<1x96xf32> to vector<64x96xf32>
    %8 = arith.addf %4, %7 : vector<64x96xf32>
    %c0_9 = arith.constant 0 : index
    %c0_10 = arith.constant 0 : index
    %c0_11 = arith.constant 0 : index
    %9 = vector.load %arg5[%c0_9, %c0_10, %c0_11] : memref<1x64x96xf32, #tpu.memory_space<vmem>>, vector<1x64x96xf32>
    %10 = vector.shape_cast %9 : vector<1x64x96xf32> to vector<64x96xf32>
    %11 = vector.shape_cast %8 : vector<64x96xf32> to vector<1x64x96xf32>
    tpu.vector_store %arg5[%c0_9, %c0_10, %c0_11], %11 {strides = array<i32>} : memref<1x64x96xf32, #tpu.memory_space<vmem>>, vector<1x64x96xf32>,
    return
  }
  func.func @transform_0(%arg0: i32, %arg1: i32) -> (i32, i32, i32) {
    %c0_i32 = arith.constant 0 : i32
    %c0_i32_0 = arith.constant 0 : i32
    %c0_i32_1 = arith.constant 0 : i32
    return %c0_i32, %arg1, %c0_i32_0 : i32, i32, i32
  }
  func.func @transform_1(%arg0: i32, %arg1: i32) -> (i32, i32, i32, i32) {
    %c0_i32 = arith.constant 0 : i32
    %c0_i32_0 = arith.constant 0 : i32
    %c0_i32_1 = arith.constant 0 : i32
    %c0_i32_2 = arith.constant 0 : i32
    return %arg0, %c0_i32, %c0_i32_0, %c0_i32_1 : i32, i32, i32, i32
  }
  func.func @transform_2(%arg0: i32, %arg1: i32) -> (i32, i32, i32) {
    %c0_i32 = arith.constant 0 : i32
    %c0_i32_0 = arith.constant 0 : i32
    %c0_i32_1 = arith.constant 0 : i32
    return %arg0, %c0_i32, %c0_i32_0 : i32, i32, i32
  }
  func.func @transform_3(%arg0: i32, %arg1: i32) -> (i32, i32, i32) {
    %c0_i32 = arith.constant 0 : i32
    %c0_i32_0 = arith.constant 0 : i32
    return %arg0, %arg1, %c0_i32 : i32, i32, i32
  }
}

module attributes {stable_mosaic.version = 11 : i64} {
  func.func @gru_chunk_kernel(%arg0: i32, %arg1: i32, %arg2: memref<1x64x96xf32, #tpu.memory_space<vmem>>, %arg3: memref<1x32x96xf32, #tpu.memory_space<vmem>>, %arg4: memref<1x1x96xf32, #tpu.memory_space<vmem>>, %arg5: memref<1x64x32xf32, #tpu.memory_space<vmem>>, %arg6: memref<8x32xf32, #tpu.memory_space<vmem>>) attributes {dimension_semantics = [#tpu.dimension_semantics<parallel>, #tpu.dimension_semantics<arbitrary>], iteration_bounds = array<i64: 2, 1>, scalar_prefetch = 0 : i64, scratch_operands = 1 : i64, tpu.core_type = #tpu.core_type<tc>, window_params = [{transform_indices = @transform_0, window_bounds = array<i64: 1, 64, 96>}, {transform_indices = @transform_1, window_bounds = array<i64: 1, 32, 96>}, {transform_indices = @transform_2, window_bounds = array<i64: 1, 1, 96>}, {transform_indices = @transform_3, window_bounds = array<i64: 1, 64, 32>}]} {
    %c0_i32 = arith.constant 0 : i32
    %0 = arith.cmpi eq, %arg1, %c0_i32 : i32
    %1 = arith.extui %0 : i1 to i32
    %c0_i32_0 = arith.constant 0 : i32
    %2 = arith.cmpi ne, %1, %c0_i32_0 : i32
    scf.if %2 {
      %cst = arith.constant 0.000000e+00 : f32
      %13 = vector.broadcast %cst : f32 to vector<8x32xf32>
      %c0_9 = arith.constant 0 : index
      %c0_10 = arith.constant 0 : index
      %14 = vector.load %arg6[%c0_9, %c0_10] : memref<8x32xf32, #tpu.memory_space<vmem>>, vector<8x32xf32>
      tpu.vector_store %arg6[%c0_9, %c0_10], %13 {strides = array<i32>} : memref<8x32xf32, #tpu.memory_space<vmem>>, vector<8x32xf32>,
    } else {
    }
    %c0 = arith.constant 0 : index
    %c0_1 = arith.constant 0 : index
    %c0_2 = arith.constant 0 : index
    %3 = vector.load %arg3[%c0, %c0_1, %c0_2] : memref<1x32x96xf32, #tpu.memory_space<vmem>>, vector<1x32x96xf32>
    %4 = vector.shape_cast %3 : vector<1x32x96xf32> to vector<32x96xf32>
    %c0_3 = arith.constant 0 : index
    %c0_4 = arith.constant 0 : index
    %c0_5 = arith.constant 0 : index
    %5 = vector.load %arg4[%c0_3, %c0_4, %c0_5] : memref<1x1x96xf32, #tpu.memory_space<vmem>>, vector<1x1x96xf32>
    %6 = vector.shape_cast %5 : vector<1x1x96xf32> to vector<1x96xf32>
    %c0_i32_6 = arith.constant 0 : i32
    %7 = arith.cmpi eq, %arg0, %c0_i32_6 : i32
    %8 = arith.extui %7 : i1 to i32
    %c0_i32_7 = arith.constant 0 : i32
    %9 = arith.cmpi ne, %8, %c0_i32_7 : i32
    scf.if %9 {
      %c0_9 = arith.constant 0 : index
      %c0_10 = arith.constant 0 : index
      %13 = vector.load %arg6[%c0_9, %c0_10] : memref<8x32xf32, #tpu.memory_space<vmem>>, vector<8x32xf32>
      %c0_11 = arith.constant 0 : index
      %c0_12 = arith.constant 0 : index
      %c0_13 = arith.constant 0 : index
      %14 = vector.load %arg2[%c0_11, %c0_12, %c0_13] : memref<1x64x96xf32, #tpu.memory_space<vmem>>, vector<1x8x96xf32>
      %15 = vector.shape_cast %14 : vector<1x8x96xf32> to vector<8x96xf32>
      %cst = arith.constant dense<0.000000e+00> : vector<8x96xf32>
      %16 = tpu.matmul %13, %4, %cst {dimension_numbers = #tpu.dot_dimension_numbers<[1], [0], [0], [1], [0, 0, 1, 1], [], []>} : vector<8x32xf32>, vector<32x96xf32>, vector<8x96xf32> -> vector<8x96xf32>
      %17 = vector.broadcast %6 : vector<1x96xf32> to vector<8x96xf32>
      %18 = arith.addf %16, %17 : vector<8x96xf32>
      %19 = vector.extract_strided_slice %15 {offsets = [0, 0], sizes = [8, 32], strides = [1, 1]} : vector<8x96xf32> to vector<8x32xf32>
      %20 = vector.extract_strided_slice %18 {offsets = [0, 0], sizes = [8, 32], strides = [1, 1]} : vector<8x96xf32> to vector<8x32xf32>
      %21 = arith.addf %19, %20 : vector<8x32xf32>
      %22 = arith.negf %21 : vector<8x32xf32>
      %23 = math.exp %22 : vector<8x32xf32>
      %cst_14 = arith.constant 1.000000e+00 : f32
      %24 = vector.broadcast %cst_14 : f32 to vector<8x32xf32>
      %25 = arith.addf %24, %23 : vector<8x32xf32>
      %26 = arith.divf %24, %25 : vector<8x32xf32>
      %27 = vector.extract_strided_slice %15 {offsets = [0, 32], sizes = [8, 32], strides = [1, 1]} : vector<8x96xf32> to vector<8x32xf32>
      %28 = vector.extract_strided_slice %18 {offsets = [0, 32], sizes = [8, 32], strides = [1, 1]} : vector<8x96xf32> to vector<8x32xf32>
      %29 = arith.addf %27, %28 : vector<8x32xf32>
      %30 = arith.negf %29 : vector<8x32xf32>
      %31 = math.exp %30 : vector<8x32xf32>
      %cst_15 = arith.constant 1.000000e+00 : f32
      %32 = vector.broadcast %cst_15 : f32 to vector<8x32xf32>
      %33 = arith.addf %32, %31 : vector<8x32xf32>
      %34 = arith.divf %32, %33 : vector<8x32xf32>
      %35 = vector.extract_strided_slice %15 {offsets = [0, 64], sizes = [8, 32], strides = [1, 1]} : vector<8x96xf32> to vector<8x32xf32>
      %36 = vector.extract_strided_slice %18 {offsets = [0, 64], sizes = [8, 32], strides = [1, 1]} : vector<8x96xf32> to vector<8x32xf32>
      %37 = arith.mulf %26, %36 : vector<8x32xf32>
      %38 = arith.addf %35, %37 : vector<8x32xf32>
      %39 = math.tanh %38 : vector<8x32xf32>
      %cst_16 = arith.constant 1.000000e+00 : f32
      %40 = vector.broadcast %cst_16 : f32 to vector<8x32xf32>
      %41 = arith.subf %40, %34 : vector<8x32xf32>
      %42 = arith.mulf %41, %39 : vector<8x32xf32>
      %43 = arith.mulf %34, %13 : vector<8x32xf32>
      %44 = arith.addf %42, %43 : vector<8x32xf32>
      %c0_17 = arith.constant 0 : index
      %c0_18 = arith.constant 0 : index
      %c0_19 = arith.constant 0 : index
      %45 = vector.load %arg5[%c0_17, %c0_18, %c0_19] : memref<1x64x32xf32, #tpu.memory_space<vmem>>, vector<1x8x32xf32>
      %46 = vector.shape_cast %45 : vector<1x8x32xf32> to vector<8x32xf32>
      %47 = vector.shape_cast %44 : vector<8x32xf32> to vector<1x8x32xf32>
      tpu.vector_store %arg5[%c0_17, %c0_18, %c0_19], %47 {strides = array<i32>} : memref<1x64x32xf32, #tpu.memory_space<vmem>>, vector<1x8x32xf32>,
      %c0_20 = arith.constant 0 : index
      %c8 = arith.constant 8 : index
      %c0_21 = arith.constant 0 : index
      %48 = vector.load %arg2[%c0_20, %c8, %c0_21] : memref<1x64x96xf32, #tpu.memory_space<vmem>>, vector<1x8x96xf32>
      %49 = vector.shape_cast %48 : vector<1x8x96xf32> to vector<8x96xf32>
      %cst_22 = arith.constant dense<0.000000e+00> : vector<8x96xf32>
      %50 = tpu.matmul %44, %4, %cst_22 {dimension_numbers = #tpu.dot_dimension_numbers<[1], [0], [0], [1], [0, 0, 1, 1], [], []>} : vector<8x32xf32>, vector<32x96xf32>, vector<8x96xf32> -> vector<8x96xf32>
      %51 = vector.broadcast %6 : vector<1x96xf32> to vector<8x96xf32>
      %52 = arith.addf %50, %51 : vector<8x96xf32>
      %53 = vector.extract_strided_slice %49 {offsets = [0, 0], sizes = [8, 32], strides = [1, 1]} : vector<8x96xf32> to vector<8x32xf32>
      %54 = vector.extract_strided_slice %52 {offsets = [0, 0], sizes = [8, 32], strides = [1, 1]} : vector<8x96xf32> to vector<8x32xf32>
      %55 = arith.addf %53, %54 : vector<8x32xf32>
      %56 = arith.negf %55 : vector<8x32xf32>
      %57 = math.exp %56 : vector<8x32xf32>
      %cst_23 = arith.constant 1.000000e+00 : f32
      %58 = vector.broadcast %cst_23 : f32 to vector<8x32xf32>
      %59 = arith.addf %58, %57 : vector<8x32xf32>
      %60 = arith.divf %58, %59 : vector<8x32xf32>
      %61 = vector.extract_strided_slice %49 {offsets = [0, 32], sizes = [8, 32], strides = [1, 1]} : vector<8x96xf32> to vector<8x32xf32>
      %62 = vector.extract_strided_slice %52 {offsets = [0, 32], sizes = [8, 32], strides = [1, 1]} : vector<8x96xf32> to vector<8x32xf32>
      %63 = arith.addf %61, %62 : vector<8x32xf32>
      %64 = arith.negf %63 : vector<8x32xf32>
      %65 = math.exp %64 : vector<8x32xf32>
      %cst_24 = arith.constant 1.000000e+00 : f32
      %66 = vector.broadcast %cst_24 : f32 to vector<8x32xf32>
      %67 = arith.addf %66, %65 : vector<8x32xf32>
      %68 = arith.divf %66, %67 : vector<8x32xf32>
      %69 = vector.extract_strided_slice %49 {offsets = [0, 64], sizes = [8, 32], strides = [1, 1]} : vector<8x96xf32> to vector<8x32xf32>
      %70 = vector.extract_strided_slice %52 {offsets = [0, 64], sizes = [8, 32], strides = [1, 1]} : vector<8x96xf32> to vector<8x32xf32>
      %71 = arith.mulf %60, %70 : vector<8x32xf32>
      %72 = arith.addf %69, %71 : vector<8x32xf32>
      %73 = math.tanh %72 : vector<8x32xf32>
      %cst_25 = arith.constant 1.000000e+00 : f32
      %74 = vector.broadcast %cst_25 : f32 to vector<8x32xf32>
      %75 = arith.subf %74, %68 : vector<8x32xf32>
      %76 = arith.mulf %75, %73 : vector<8x32xf32>
      %77 = arith.mulf %68, %44 : vector<8x32xf32>
      %78 = arith.addf %76, %77 : vector<8x32xf32>
      %c0_26 = arith.constant 0 : index
      %c8_27 = arith.constant 8 : index
      %c0_28 = arith.constant 0 : index
      %79 = vector.load %arg5[%c0_26, %c8_27, %c0_28] : memref<1x64x32xf32, #tpu.memory_space<vmem>>, vector<1x8x32xf32>
      %80 = vector.shape_cast %79 : vector<1x8x32xf32> to vector<8x32xf32>
      %81 = vector.shape_cast %78 : vector<8x32xf32> to vector<1x8x32xf32>
      tpu.vector_store %arg5[%c0_26, %c8_27, %c0_28], %81 {strides = array<i32>} : memref<1x64x32xf32, #tpu.memory_space<vmem>>, vector<1x8x32xf32>,
      %c0_29 = arith.constant 0 : index
      %c16 = arith.constant 16 : index
      %c0_30 = arith.constant 0 : index
      %82 = vector.load %arg2[%c0_29, %c16, %c0_30] : memref<1x64x96xf32, #tpu.memory_space<vmem>>, vector<1x8x96xf32>
      %83 = vector.shape_cast %82 : vector<1x8x96xf32> to vector<8x96xf32>
      %cst_31 = arith.constant dense<0.000000e+00> : vector<8x96xf32>
      %84 = tpu.matmul %78, %4, %cst_31 {dimension_numbers = #tpu.dot_dimension_numbers<[1], [0], [0], [1], [0, 0, 1, 1], [], []>} : vector<8x32xf32>, vector<32x96xf32>, vector<8x96xf32> -> vector<8x96xf32>
      %85 = vector.broadcast %6 : vector<1x96xf32> to vector<8x96xf32>
      %86 = arith.addf %84, %85 : vector<8x96xf32>
      %87 = vector.extract_strided_slice %83 {offsets = [0, 0], sizes = [8, 32], strides = [1, 1]} : vector<8x96xf32> to vector<8x32xf32>
      %88 = vector.extract_strided_slice %86 {offsets = [0, 0], sizes = [8, 32], strides = [1, 1]} : vector<8x96xf32> to vector<8x32xf32>
      %89 = arith.addf %87, %88 : vector<8x32xf32>
      %90 = arith.negf %89 : vector<8x32xf32>
      %91 = math.exp %90 : vector<8x32xf32>
      %cst_32 = arith.constant 1.000000e+00 : f32
      %92 = vector.broadcast %cst_32 : f32 to vector<8x32xf32>
      %93 = arith.addf %92, %91 : vector<8x32xf32>
      %94 = arith.divf %92, %93 : vector<8x32xf32>
      %95 = vector.extract_strided_slice %83 {offsets = [0, 32], sizes = [8, 32], strides = [1, 1]} : vector<8x96xf32> to vector<8x32xf32>
      %96 = vector.extract_strided_slice %86 {offsets = [0, 32], sizes = [8, 32], strides = [1, 1]} : vector<8x96xf32> to vector<8x32xf32>
      %97 = arith.addf %95, %96 : vector<8x32xf32>
      %98 = arith.negf %97 : vector<8x32xf32>
      %99 = math.exp %98 : vector<8x32xf32>
      %cst_33 = arith.constant 1.000000e+00 : f32
      %100 = vector.broadcast %cst_33 : f32 to vector<8x32xf32>
      %101 = arith.addf %100, %99 : vector<8x32xf32>
      %102 = arith.divf %100, %101 : vector<8x32xf32>
      %103 = vector.extract_strided_slice %83 {offsets = [0, 64], sizes = [8, 32], strides = [1, 1]} : vector<8x96xf32> to vector<8x32xf32>
      %104 = vector.extract_strided_slice %86 {offsets = [0, 64], sizes = [8, 32], strides = [1, 1]} : vector<8x96xf32> to vector<8x32xf32>
      %105 = arith.mulf %94, %104 : vector<8x32xf32>
      %106 = arith.addf %103, %105 : vector<8x32xf32>
      %107 = math.tanh %106 : vector<8x32xf32>
      %cst_34 = arith.constant 1.000000e+00 : f32
      %108 = vector.broadcast %cst_34 : f32 to vector<8x32xf32>
      %109 = arith.subf %108, %102 : vector<8x32xf32>
      %110 = arith.mulf %109, %107 : vector<8x32xf32>
      %111 = arith.mulf %102, %78 : vector<8x32xf32>
      %112 = arith.addf %110, %111 : vector<8x32xf32>
      %c0_35 = arith.constant 0 : index
      %c16_36 = arith.constant 16 : index
      %c0_37 = arith.constant 0 : index
      %113 = vector.load %arg5[%c0_35, %c16_36, %c0_37] : memref<1x64x32xf32, #tpu.memory_space<vmem>>, vector<1x8x32xf32>
      %114 = vector.shape_cast %113 : vector<1x8x32xf32> to vector<8x32xf32>
      %115 = vector.shape_cast %112 : vector<8x32xf32> to vector<1x8x32xf32>
      tpu.vector_store %arg5[%c0_35, %c16_36, %c0_37], %115 {strides = array<i32>} : memref<1x64x32xf32, #tpu.memory_space<vmem>>, vector<1x8x32xf32>,
      %c0_38 = arith.constant 0 : index
      %c24 = arith.constant 24 : index
      %c0_39 = arith.constant 0 : index
      %116 = vector.load %arg2[%c0_38, %c24, %c0_39] : memref<1x64x96xf32, #tpu.memory_space<vmem>>, vector<1x8x96xf32>
      %117 = vector.shape_cast %116 : vector<1x8x96xf32> to vector<8x96xf32>
      %cst_40 = arith.constant dense<0.000000e+00> : vector<8x96xf32>
      %118 = tpu.matmul %112, %4, %cst_40 {dimension_numbers = #tpu.dot_dimension_numbers<[1], [0], [0], [1], [0, 0, 1, 1], [], []>} : vector<8x32xf32>, vector<32x96xf32>, vector<8x96xf32> -> vector<8x96xf32>
      %119 = vector.broadcast %6 : vector<1x96xf32> to vector<8x96xf32>
      %120 = arith.addf %118, %119 : vector<8x96xf32>
      %121 = vector.extract_strided_slice %117 {offsets = [0, 0], sizes = [8, 32], strides = [1, 1]} : vector<8x96xf32> to vector<8x32xf32>
      %122 = vector.extract_strided_slice %120 {offsets = [0, 0], sizes = [8, 32], strides = [1, 1]} : vector<8x96xf32> to vector<8x32xf32>
      %123 = arith.addf %121, %122 : vector<8x32xf32>
      %124 = arith.negf %123 : vector<8x32xf32>
      %125 = math.exp %124 : vector<8x32xf32>
      %cst_41 = arith.constant 1.000000e+00 : f32
      %126 = vector.broadcast %cst_41 : f32 to vector<8x32xf32>
      %127 = arith.addf %126, %125 : vector<8x32xf32>
      %128 = arith.divf %126, %127 : vector<8x32xf32>
      %129 = vector.extract_strided_slice %117 {offsets = [0, 32], sizes = [8, 32], strides = [1, 1]} : vector<8x96xf32> to vector<8x32xf32>
      %130 = vector.extract_strided_slice %120 {offsets = [0, 32], sizes = [8, 32], strides = [1, 1]} : vector<8x96xf32> to vector<8x32xf32>
      %131 = arith.addf %129, %130 : vector<8x32xf32>
      %132 = arith.negf %131 : vector<8x32xf32>
      %133 = math.exp %132 : vector<8x32xf32>
      %cst_42 = arith.constant 1.000000e+00 : f32
      %134 = vector.broadcast %cst_42 : f32 to vector<8x32xf32>
      %135 = arith.addf %134, %133 : vector<8x32xf32>
      %136 = arith.divf %134, %135 : vector<8x32xf32>
      %137 = vector.extract_strided_slice %117 {offsets = [0, 64], sizes = [8, 32], strides = [1, 1]} : vector<8x96xf32> to vector<8x32xf32>
      %138 = vector.extract_strided_slice %120 {offsets = [0, 64], sizes = [8, 32], strides = [1, 1]} : vector<8x96xf32> to vector<8x32xf32>
      %139 = arith.mulf %128, %138 : vector<8x32xf32>
      %140 = arith.addf %137, %139 : vector<8x32xf32>
      %141 = math.tanh %140 : vector<8x32xf32>
      %cst_43 = arith.constant 1.000000e+00 : f32
      %142 = vector.broadcast %cst_43 : f32 to vector<8x32xf32>
      %143 = arith.subf %142, %136 : vector<8x32xf32>
      %144 = arith.mulf %143, %141 : vector<8x32xf32>
      %145 = arith.mulf %136, %112 : vector<8x32xf32>
      %146 = arith.addf %144, %145 : vector<8x32xf32>
      %c0_44 = arith.constant 0 : index
      %c24_45 = arith.constant 24 : index
      %c0_46 = arith.constant 0 : index
      %147 = vector.load %arg5[%c0_44, %c24_45, %c0_46] : memref<1x64x32xf32, #tpu.memory_space<vmem>>, vector<1x8x32xf32>
      %148 = vector.shape_cast %147 : vector<1x8x32xf32> to vector<8x32xf32>
      %149 = vector.shape_cast %146 : vector<8x32xf32> to vector<1x8x32xf32>
      tpu.vector_store %arg5[%c0_44, %c24_45, %c0_46], %149 {strides = array<i32>} : memref<1x64x32xf32, #tpu.memory_space<vmem>>, vector<1x8x32xf32>,
      %c0_47 = arith.constant 0 : index
      %c32 = arith.constant 32 : index
      %c0_48 = arith.constant 0 : index
      %150 = vector.load %arg2[%c0_47, %c32, %c0_48] : memref<1x64x96xf32, #tpu.memory_space<vmem>>, vector<1x8x96xf32>
      %151 = vector.shape_cast %150 : vector<1x8x96xf32> to vector<8x96xf32>
      %cst_49 = arith.constant dense<0.000000e+00> : vector<8x96xf32>
      %152 = tpu.matmul %146, %4, %cst_49 {dimension_numbers = #tpu.dot_dimension_numbers<[1], [0], [0], [1], [0, 0, 1, 1], [], []>} : vector<8x32xf32>, vector<32x96xf32>, vector<8x96xf32> -> vector<8x96xf32>
      %153 = vector.broadcast %6 : vector<1x96xf32> to vector<8x96xf32>
      %154 = arith.addf %152, %153 : vector<8x96xf32>
      %155 = vector.extract_strided_slice %151 {offsets = [0, 0], sizes = [8, 32], strides = [1, 1]} : vector<8x96xf32> to vector<8x32xf32>
      %156 = vector.extract_strided_slice %154 {offsets = [0, 0], sizes = [8, 32], strides = [1, 1]} : vector<8x96xf32> to vector<8x32xf32>
      %157 = arith.addf %155, %156 : vector<8x32xf32>
      %158 = arith.negf %157 : vector<8x32xf32>
      %159 = math.exp %158 : vector<8x32xf32>
      %cst_50 = arith.constant 1.000000e+00 : f32
      %160 = vector.broadcast %cst_50 : f32 to vector<8x32xf32>
      %161 = arith.addf %160, %159 : vector<8x32xf32>
      %162 = arith.divf %160, %161 : vector<8x32xf32>
      %163 = vector.extract_strided_slice %151 {offsets = [0, 32], sizes = [8, 32], strides = [1, 1]} : vector<8x96xf32> to vector<8x32xf32>
      %164 = vector.extract_strided_slice %154 {offsets = [0, 32], sizes = [8, 32], strides = [1, 1]} : vector<8x96xf32> to vector<8x32xf32>
      %165 = arith.addf %163, %164 : vector<8x32xf32>
      %166 = arith.negf %165 : vector<8x32xf32>
      %167 = math.exp %166 : vector<8x32xf32>
      %cst_51 = arith.constant 1.000000e+00 : f32
      %168 = vector.broadcast %cst_51 : f32 to vector<8x32xf32>
      %169 = arith.addf %168, %167 : vector<8x32xf32>
      %170 = arith.divf %168, %169 : vector<8x32xf32>
      %171 = vector.extract_strided_slice %151 {offsets = [0, 64], sizes = [8, 32], strides = [1, 1]} : vector<8x96xf32> to vector<8x32xf32>
      %172 = vector.extract_strided_slice %154 {offsets = [0, 64], sizes = [8, 32], strides = [1, 1]} : vector<8x96xf32> to vector<8x32xf32>
      %173 = arith.mulf %162, %172 : vector<8x32xf32>
      %174 = arith.addf %171, %173 : vector<8x32xf32>
      %175 = math.tanh %174 : vector<8x32xf32>
      %cst_52 = arith.constant 1.000000e+00 : f32
      %176 = vector.broadcast %cst_52 : f32 to vector<8x32xf32>
      %177 = arith.subf %176, %170 : vector<8x32xf32>
      %178 = arith.mulf %177, %175 : vector<8x32xf32>
      %179 = arith.mulf %170, %146 : vector<8x32xf32>
      %180 = arith.addf %178, %179 : vector<8x32xf32>
      %c0_53 = arith.constant 0 : index
      %c32_54 = arith.constant 32 : index
      %c0_55 = arith.constant 0 : index
      %181 = vector.load %arg5[%c0_53, %c32_54, %c0_55] : memref<1x64x32xf32, #tpu.memory_space<vmem>>, vector<1x8x32xf32>
      %182 = vector.shape_cast %181 : vector<1x8x32xf32> to vector<8x32xf32>
      %183 = vector.shape_cast %180 : vector<8x32xf32> to vector<1x8x32xf32>
      tpu.vector_store %arg5[%c0_53, %c32_54, %c0_55], %183 {strides = array<i32>} : memref<1x64x32xf32, #tpu.memory_space<vmem>>, vector<1x8x32xf32>,
      %c0_56 = arith.constant 0 : index
      %c40 = arith.constant 40 : index
      %c0_57 = arith.constant 0 : index
      %184 = vector.load %arg2[%c0_56, %c40, %c0_57] : memref<1x64x96xf32, #tpu.memory_space<vmem>>, vector<1x8x96xf32>
      %185 = vector.shape_cast %184 : vector<1x8x96xf32> to vector<8x96xf32>
      %cst_58 = arith.constant dense<0.000000e+00> : vector<8x96xf32>
      %186 = tpu.matmul %180, %4, %cst_58 {dimension_numbers = #tpu.dot_dimension_numbers<[1], [0], [0], [1], [0, 0, 1, 1], [], []>} : vector<8x32xf32>, vector<32x96xf32>, vector<8x96xf32> -> vector<8x96xf32>
      %187 = vector.broadcast %6 : vector<1x96xf32> to vector<8x96xf32>
      %188 = arith.addf %186, %187 : vector<8x96xf32>
      %189 = vector.extract_strided_slice %185 {offsets = [0, 0], sizes = [8, 32], strides = [1, 1]} : vector<8x96xf32> to vector<8x32xf32>
      %190 = vector.extract_strided_slice %188 {offsets = [0, 0], sizes = [8, 32], strides = [1, 1]} : vector<8x96xf32> to vector<8x32xf32>
      %191 = arith.addf %189, %190 : vector<8x32xf32>
      %192 = arith.negf %191 : vector<8x32xf32>
      %193 = math.exp %192 : vector<8x32xf32>
      %cst_59 = arith.constant 1.000000e+00 : f32
      %194 = vector.broadcast %cst_59 : f32 to vector<8x32xf32>
      %195 = arith.addf %194, %193 : vector<8x32xf32>
      %196 = arith.divf %194, %195 : vector<8x32xf32>
      %197 = vector.extract_strided_slice %185 {offsets = [0, 32], sizes = [8, 32], strides = [1, 1]} : vector<8x96xf32> to vector<8x32xf32>
      %198 = vector.extract_strided_slice %188 {offsets = [0, 32], sizes = [8, 32], strides = [1, 1]} : vector<8x96xf32> to vector<8x32xf32>
      %199 = arith.addf %197, %198 : vector<8x32xf32>
      %200 = arith.negf %199 : vector<8x32xf32>
      %201 = math.exp %200 : vector<8x32xf32>
      %cst_60 = arith.constant 1.000000e+00 : f32
      %202 = vector.broadcast %cst_60 : f32 to vector<8x32xf32>
      %203 = arith.addf %202, %201 : vector<8x32xf32>
      %204 = arith.divf %202, %203 : vector<8x32xf32>
      %205 = vector.extract_strided_slice %185 {offsets = [0, 64], sizes = [8, 32], strides = [1, 1]} : vector<8x96xf32> to vector<8x32xf32>
      %206 = vector.extract_strided_slice %188 {offsets = [0, 64], sizes = [8, 32], strides = [1, 1]} : vector<8x96xf32> to vector<8x32xf32>
      %207 = arith.mulf %196, %206 : vector<8x32xf32>
      %208 = arith.addf %205, %207 : vector<8x32xf32>
      %209 = math.tanh %208 : vector<8x32xf32>
      %cst_61 = arith.constant 1.000000e+00 : f32
      %210 = vector.broadcast %cst_61 : f32 to vector<8x32xf32>
      %211 = arith.subf %210, %204 : vector<8x32xf32>
      %212 = arith.mulf %211, %209 : vector<8x32xf32>
      %213 = arith.mulf %204, %180 : vector<8x32xf32>
      %214 = arith.addf %212, %213 : vector<8x32xf32>
      %c0_62 = arith.constant 0 : index
      %c40_63 = arith.constant 40 : index
      %c0_64 = arith.constant 0 : index
      %215 = vector.load %arg5[%c0_62, %c40_63, %c0_64] : memref<1x64x32xf32, #tpu.memory_space<vmem>>, vector<1x8x32xf32>
      %216 = vector.shape_cast %215 : vector<1x8x32xf32> to vector<8x32xf32>
      %217 = vector.shape_cast %214 : vector<8x32xf32> to vector<1x8x32xf32>
      tpu.vector_store %arg5[%c0_62, %c40_63, %c0_64], %217 {strides = array<i32>} : memref<1x64x32xf32, #tpu.memory_space<vmem>>, vector<1x8x32xf32>,
      %c0_65 = arith.constant 0 : index
      %c48 = arith.constant 48 : index
      %c0_66 = arith.constant 0 : index
      %218 = vector.load %arg2[%c0_65, %c48, %c0_66] : memref<1x64x96xf32, #tpu.memory_space<vmem>>, vector<1x8x96xf32>
      %219 = vector.shape_cast %218 : vector<1x8x96xf32> to vector<8x96xf32>
      %cst_67 = arith.constant dense<0.000000e+00> : vector<8x96xf32>
      %220 = tpu.matmul %214, %4, %cst_67 {dimension_numbers = #tpu.dot_dimension_numbers<[1], [0], [0], [1], [0, 0, 1, 1], [], []>} : vector<8x32xf32>, vector<32x96xf32>, vector<8x96xf32> -> vector<8x96xf32>
      %221 = vector.broadcast %6 : vector<1x96xf32> to vector<8x96xf32>
      %222 = arith.addf %220, %221 : vector<8x96xf32>
      %223 = vector.extract_strided_slice %219 {offsets = [0, 0], sizes = [8, 32], strides = [1, 1]} : vector<8x96xf32> to vector<8x32xf32>
      %224 = vector.extract_strided_slice %222 {offsets = [0, 0], sizes = [8, 32], strides = [1, 1]} : vector<8x96xf32> to vector<8x32xf32>
      %225 = arith.addf %223, %224 : vector<8x32xf32>
      %226 = arith.negf %225 : vector<8x32xf32>
      %227 = math.exp %226 : vector<8x32xf32>
      %cst_68 = arith.constant 1.000000e+00 : f32
      %228 = vector.broadcast %cst_68 : f32 to vector<8x32xf32>
      %229 = arith.addf %228, %227 : vector<8x32xf32>
      %230 = arith.divf %228, %229 : vector<8x32xf32>
      %231 = vector.extract_strided_slice %219 {offsets = [0, 32], sizes = [8, 32], strides = [1, 1]} : vector<8x96xf32> to vector<8x32xf32>
      %232 = vector.extract_strided_slice %222 {offsets = [0, 32], sizes = [8, 32], strides = [1, 1]} : vector<8x96xf32> to vector<8x32xf32>
      %233 = arith.addf %231, %232 : vector<8x32xf32>
      %234 = arith.negf %233 : vector<8x32xf32>
      %235 = math.exp %234 : vector<8x32xf32>
      %cst_69 = arith.constant 1.000000e+00 : f32
      %236 = vector.broadcast %cst_69 : f32 to vector<8x32xf32>
      %237 = arith.addf %236, %235 : vector<8x32xf32>
      %238 = arith.divf %236, %237 : vector<8x32xf32>
      %239 = vector.extract_strided_slice %219 {offsets = [0, 64], sizes = [8, 32], strides = [1, 1]} : vector<8x96xf32> to vector<8x32xf32>
      %240 = vector.extract_strided_slice %222 {offsets = [0, 64], sizes = [8, 32], strides = [1, 1]} : vector<8x96xf32> to vector<8x32xf32>
      %241 = arith.mulf %230, %240 : vector<8x32xf32>
      %242 = arith.addf %239, %241 : vector<8x32xf32>
      %243 = math.tanh %242 : vector<8x32xf32>
      %cst_70 = arith.constant 1.000000e+00 : f32
      %244 = vector.broadcast %cst_70 : f32 to vector<8x32xf32>
      %245 = arith.subf %244, %238 : vector<8x32xf32>
      %246 = arith.mulf %245, %243 : vector<8x32xf32>
      %247 = arith.mulf %238, %214 : vector<8x32xf32>
      %248 = arith.addf %246, %247 : vector<8x32xf32>
      %c0_71 = arith.constant 0 : index
      %c48_72 = arith.constant 48 : index
      %c0_73 = arith.constant 0 : index
      %249 = vector.load %arg5[%c0_71, %c48_72, %c0_73] : memref<1x64x32xf32, #tpu.memory_space<vmem>>, vector<1x8x32xf32>
      %250 = vector.shape_cast %249 : vector<1x8x32xf32> to vector<8x32xf32>
      %251 = vector.shape_cast %248 : vector<8x32xf32> to vector<1x8x32xf32>
      tpu.vector_store %arg5[%c0_71, %c48_72, %c0_73], %251 {strides = array<i32>} : memref<1x64x32xf32, #tpu.memory_space<vmem>>, vector<1x8x32xf32>,
      %c0_74 = arith.constant 0 : index
      %c56 = arith.constant 56 : index
      %c0_75 = arith.constant 0 : index
      %252 = vector.load %arg2[%c0_74, %c56, %c0_75] : memref<1x64x96xf32, #tpu.memory_space<vmem>>, vector<1x8x96xf32>
      %253 = vector.shape_cast %252 : vector<1x8x96xf32> to vector<8x96xf32>
      %cst_76 = arith.constant dense<0.000000e+00> : vector<8x96xf32>
      %254 = tpu.matmul %248, %4, %cst_76 {dimension_numbers = #tpu.dot_dimension_numbers<[1], [0], [0], [1], [0, 0, 1, 1], [], []>} : vector<8x32xf32>, vector<32x96xf32>, vector<8x96xf32> -> vector<8x96xf32>
      %255 = vector.broadcast %6 : vector<1x96xf32> to vector<8x96xf32>
      %256 = arith.addf %254, %255 : vector<8x96xf32>
      %257 = vector.extract_strided_slice %253 {offsets = [0, 0], sizes = [8, 32], strides = [1, 1]} : vector<8x96xf32> to vector<8x32xf32>
      %258 = vector.extract_strided_slice %256 {offsets = [0, 0], sizes = [8, 32], strides = [1, 1]} : vector<8x96xf32> to vector<8x32xf32>
      %259 = arith.addf %257, %258 : vector<8x32xf32>
      %260 = arith.negf %259 : vector<8x32xf32>
      %261 = math.exp %260 : vector<8x32xf32>
      %cst_77 = arith.constant 1.000000e+00 : f32
      %262 = vector.broadcast %cst_77 : f32 to vector<8x32xf32>
      %263 = arith.addf %262, %261 : vector<8x32xf32>
      %264 = arith.divf %262, %263 : vector<8x32xf32>
      %265 = vector.extract_strided_slice %253 {offsets = [0, 32], sizes = [8, 32], strides = [1, 1]} : vector<8x96xf32> to vector<8x32xf32>
      %266 = vector.extract_strided_slice %256 {offsets = [0, 32], sizes = [8, 32], strides = [1, 1]} : vector<8x96xf32> to vector<8x32xf32>
      %267 = arith.addf %265, %266 : vector<8x32xf32>
      %268 = arith.negf %267 : vector<8x32xf32>
      %269 = math.exp %268 : vector<8x32xf32>
      %cst_78 = arith.constant 1.000000e+00 : f32
      %270 = vector.broadcast %cst_78 : f32 to vector<8x32xf32>
      %271 = arith.addf %270, %269 : vector<8x32xf32>
      %272 = arith.divf %270, %271 : vector<8x32xf32>
      %273 = vector.extract_strided_slice %253 {offsets = [0, 64], sizes = [8, 32], strides = [1, 1]} : vector<8x96xf32> to vector<8x32xf32>
      %274 = vector.extract_strided_slice %256 {offsets = [0, 64], sizes = [8, 32], strides = [1, 1]} : vector<8x96xf32> to vector<8x32xf32>
      %275 = arith.mulf %264, %274 : vector<8x32xf32>
      %276 = arith.addf %273, %275 : vector<8x32xf32>
      %277 = math.tanh %276 : vector<8x32xf32>
      %cst_79 = arith.constant 1.000000e+00 : f32
      %278 = vector.broadcast %cst_79 : f32 to vector<8x32xf32>
      %279 = arith.subf %278, %272 : vector<8x32xf32>
      %280 = arith.mulf %279, %277 : vector<8x32xf32>
      %281 = arith.mulf %272, %248 : vector<8x32xf32>
      %282 = arith.addf %280, %281 : vector<8x32xf32>
      %c0_80 = arith.constant 0 : index
      %c56_81 = arith.constant 56 : index
      %c0_82 = arith.constant 0 : index
      %283 = vector.load %arg5[%c0_80, %c56_81, %c0_82] : memref<1x64x32xf32, #tpu.memory_space<vmem>>, vector<1x8x32xf32>
      %284 = vector.shape_cast %283 : vector<1x8x32xf32> to vector<8x32xf32>
      %285 = vector.shape_cast %282 : vector<8x32xf32> to vector<1x8x32xf32>
      tpu.vector_store %arg5[%c0_80, %c56_81, %c0_82], %285 {strides = array<i32>} : memref<1x64x32xf32, #tpu.memory_space<vmem>>, vector<1x8x32xf32>,
      %c0_83 = arith.constant 0 : index
      %c0_84 = arith.constant 0 : index
      %286 = vector.load %arg6[%c0_83, %c0_84] : memref<8x32xf32, #tpu.memory_space<vmem>>, vector<8x32xf32>
      tpu.vector_store %arg6[%c0_83, %c0_84], %282 {strides = array<i32>} : memref<8x32xf32, #tpu.memory_space<vmem>>, vector<8x32xf32>,
    } else {
    }
    %c1_i32 = arith.constant 1 : i32
    %10 = arith.cmpi eq, %arg0, %c1_i32 : i32
    %11 = arith.extui %10 : i1 to i32
    %c0_i32_8 = arith.constant 0 : i32
    %12 = arith.cmpi ne, %11, %c0_i32_8 : i32
    scf.if %12 {
      %c0_9 = arith.constant 0 : index
      %c0_10 = arith.constant 0 : index
      %13 = vector.load %arg6[%c0_9, %c0_10] : memref<8x32xf32, #tpu.memory_space<vmem>>, vector<8x32xf32>
      %c0_11 = arith.constant 0 : index
      %c56 = arith.constant 56 : index
      %c0_12 = arith.constant 0 : index
      %14 = vector.load %arg2[%c0_11, %c56, %c0_12] : memref<1x64x96xf32, #tpu.memory_space<vmem>>, vector<1x8x96xf32>
      %15 = vector.shape_cast %14 : vector<1x8x96xf32> to vector<8x96xf32>
      %cst = arith.constant dense<0.000000e+00> : vector<8x96xf32>
      %16 = tpu.matmul %13, %4, %cst {dimension_numbers = #tpu.dot_dimension_numbers<[1], [0], [0], [1], [0, 0, 1, 1], [], []>} : vector<8x32xf32>, vector<32x96xf32>, vector<8x96xf32> -> vector<8x96xf32>
      %17 = vector.broadcast %6 : vector<1x96xf32> to vector<8x96xf32>
      %18 = arith.addf %16, %17 : vector<8x96xf32>
      %19 = vector.extract_strided_slice %15 {offsets = [0, 0], sizes = [8, 32], strides = [1, 1]} : vector<8x96xf32> to vector<8x32xf32>
      %20 = vector.extract_strided_slice %18 {offsets = [0, 0], sizes = [8, 32], strides = [1, 1]} : vector<8x96xf32> to vector<8x32xf32>
      %21 = arith.addf %19, %20 : vector<8x32xf32>
      %22 = arith.negf %21 : vector<8x32xf32>
      %23 = math.exp %22 : vector<8x32xf32>
      %cst_13 = arith.constant 1.000000e+00 : f32
      %24 = vector.broadcast %cst_13 : f32 to vector<8x32xf32>
      %25 = arith.addf %24, %23 : vector<8x32xf32>
      %26 = arith.divf %24, %25 : vector<8x32xf32>
      %27 = vector.extract_strided_slice %15 {offsets = [0, 32], sizes = [8, 32], strides = [1, 1]} : vector<8x96xf32> to vector<8x32xf32>
      %28 = vector.extract_strided_slice %18 {offsets = [0, 32], sizes = [8, 32], strides = [1, 1]} : vector<8x96xf32> to vector<8x32xf32>
      %29 = arith.addf %27, %28 : vector<8x32xf32>
      %30 = arith.negf %29 : vector<8x32xf32>
      %31 = math.exp %30 : vector<8x32xf32>
      %cst_14 = arith.constant 1.000000e+00 : f32
      %32 = vector.broadcast %cst_14 : f32 to vector<8x32xf32>
      %33 = arith.addf %32, %31 : vector<8x32xf32>
      %34 = arith.divf %32, %33 : vector<8x32xf32>
      %35 = vector.extract_strided_slice %15 {offsets = [0, 64], sizes = [8, 32], strides = [1, 1]} : vector<8x96xf32> to vector<8x32xf32>
      %36 = vector.extract_strided_slice %18 {offsets = [0, 64], sizes = [8, 32], strides = [1, 1]} : vector<8x96xf32> to vector<8x32xf32>
      %37 = arith.mulf %26, %36 : vector<8x32xf32>
      %38 = arith.addf %35, %37 : vector<8x32xf32>
      %39 = math.tanh %38 : vector<8x32xf32>
      %cst_15 = arith.constant 1.000000e+00 : f32
      %40 = vector.broadcast %cst_15 : f32 to vector<8x32xf32>
      %41 = arith.subf %40, %34 : vector<8x32xf32>
      %42 = arith.mulf %41, %39 : vector<8x32xf32>
      %43 = arith.mulf %34, %13 : vector<8x32xf32>
      %44 = arith.addf %42, %43 : vector<8x32xf32>
      %c0_16 = arith.constant 0 : index
      %c56_17 = arith.constant 56 : index
      %c0_18 = arith.constant 0 : index
      %45 = vector.load %arg5[%c0_16, %c56_17, %c0_18] : memref<1x64x32xf32, #tpu.memory_space<vmem>>, vector<1x8x32xf32>
      %46 = vector.shape_cast %45 : vector<1x8x32xf32> to vector<8x32xf32>
      %47 = vector.shape_cast %44 : vector<8x32xf32> to vector<1x8x32xf32>
      tpu.vector_store %arg5[%c0_16, %c56_17, %c0_18], %47 {strides = array<i32>} : memref<1x64x32xf32, #tpu.memory_space<vmem>>, vector<1x8x32xf32>,
      %c0_19 = arith.constant 0 : index
      %c48 = arith.constant 48 : index
      %c0_20 = arith.constant 0 : index
      %48 = vector.load %arg2[%c0_19, %c48, %c0_20] : memref<1x64x96xf32, #tpu.memory_space<vmem>>, vector<1x8x96xf32>
      %49 = vector.shape_cast %48 : vector<1x8x96xf32> to vector<8x96xf32>
      %cst_21 = arith.constant dense<0.000000e+00> : vector<8x96xf32>
      %50 = tpu.matmul %44, %4, %cst_21 {dimension_numbers = #tpu.dot_dimension_numbers<[1], [0], [0], [1], [0, 0, 1, 1], [], []>} : vector<8x32xf32>, vector<32x96xf32>, vector<8x96xf32> -> vector<8x96xf32>
      %51 = vector.broadcast %6 : vector<1x96xf32> to vector<8x96xf32>
      %52 = arith.addf %50, %51 : vector<8x96xf32>
      %53 = vector.extract_strided_slice %49 {offsets = [0, 0], sizes = [8, 32], strides = [1, 1]} : vector<8x96xf32> to vector<8x32xf32>
      %54 = vector.extract_strided_slice %52 {offsets = [0, 0], sizes = [8, 32], strides = [1, 1]} : vector<8x96xf32> to vector<8x32xf32>
      %55 = arith.addf %53, %54 : vector<8x32xf32>
      %56 = arith.negf %55 : vector<8x32xf32>
      %57 = math.exp %56 : vector<8x32xf32>
      %cst_22 = arith.constant 1.000000e+00 : f32
      %58 = vector.broadcast %cst_22 : f32 to vector<8x32xf32>
      %59 = arith.addf %58, %57 : vector<8x32xf32>
      %60 = arith.divf %58, %59 : vector<8x32xf32>
      %61 = vector.extract_strided_slice %49 {offsets = [0, 32], sizes = [8, 32], strides = [1, 1]} : vector<8x96xf32> to vector<8x32xf32>
      %62 = vector.extract_strided_slice %52 {offsets = [0, 32], sizes = [8, 32], strides = [1, 1]} : vector<8x96xf32> to vector<8x32xf32>
      %63 = arith.addf %61, %62 : vector<8x32xf32>
      %64 = arith.negf %63 : vector<8x32xf32>
      %65 = math.exp %64 : vector<8x32xf32>
      %cst_23 = arith.constant 1.000000e+00 : f32
      %66 = vector.broadcast %cst_23 : f32 to vector<8x32xf32>
      %67 = arith.addf %66, %65 : vector<8x32xf32>
      %68 = arith.divf %66, %67 : vector<8x32xf32>
      %69 = vector.extract_strided_slice %49 {offsets = [0, 64], sizes = [8, 32], strides = [1, 1]} : vector<8x96xf32> to vector<8x32xf32>
      %70 = vector.extract_strided_slice %52 {offsets = [0, 64], sizes = [8, 32], strides = [1, 1]} : vector<8x96xf32> to vector<8x32xf32>
      %71 = arith.mulf %60, %70 : vector<8x32xf32>
      %72 = arith.addf %69, %71 : vector<8x32xf32>
      %73 = math.tanh %72 : vector<8x32xf32>
      %cst_24 = arith.constant 1.000000e+00 : f32
      %74 = vector.broadcast %cst_24 : f32 to vector<8x32xf32>
      %75 = arith.subf %74, %68 : vector<8x32xf32>
      %76 = arith.mulf %75, %73 : vector<8x32xf32>
      %77 = arith.mulf %68, %44 : vector<8x32xf32>
      %78 = arith.addf %76, %77 : vector<8x32xf32>
      %c0_25 = arith.constant 0 : index
      %c48_26 = arith.constant 48 : index
      %c0_27 = arith.constant 0 : index
      %79 = vector.load %arg5[%c0_25, %c48_26, %c0_27] : memref<1x64x32xf32, #tpu.memory_space<vmem>>, vector<1x8x32xf32>
      %80 = vector.shape_cast %79 : vector<1x8x32xf32> to vector<8x32xf32>
      %81 = vector.shape_cast %78 : vector<8x32xf32> to vector<1x8x32xf32>
      tpu.vector_store %arg5[%c0_25, %c48_26, %c0_27], %81 {strides = array<i32>} : memref<1x64x32xf32, #tpu.memory_space<vmem>>, vector<1x8x32xf32>,
      %c0_28 = arith.constant 0 : index
      %c40 = arith.constant 40 : index
      %c0_29 = arith.constant 0 : index
      %82 = vector.load %arg2[%c0_28, %c40, %c0_29] : memref<1x64x96xf32, #tpu.memory_space<vmem>>, vector<1x8x96xf32>
      %83 = vector.shape_cast %82 : vector<1x8x96xf32> to vector<8x96xf32>
      %cst_30 = arith.constant dense<0.000000e+00> : vector<8x96xf32>
      %84 = tpu.matmul %78, %4, %cst_30 {dimension_numbers = #tpu.dot_dimension_numbers<[1], [0], [0], [1], [0, 0, 1, 1], [], []>} : vector<8x32xf32>, vector<32x96xf32>, vector<8x96xf32> -> vector<8x96xf32>
      %85 = vector.broadcast %6 : vector<1x96xf32> to vector<8x96xf32>
      %86 = arith.addf %84, %85 : vector<8x96xf32>
      %87 = vector.extract_strided_slice %83 {offsets = [0, 0], sizes = [8, 32], strides = [1, 1]} : vector<8x96xf32> to vector<8x32xf32>
      %88 = vector.extract_strided_slice %86 {offsets = [0, 0], sizes = [8, 32], strides = [1, 1]} : vector<8x96xf32> to vector<8x32xf32>
      %89 = arith.addf %87, %88 : vector<8x32xf32>
      %90 = arith.negf %89 : vector<8x32xf32>
      %91 = math.exp %90 : vector<8x32xf32>
      %cst_31 = arith.constant 1.000000e+00 : f32
      %92 = vector.broadcast %cst_31 : f32 to vector<8x32xf32>
      %93 = arith.addf %92, %91 : vector<8x32xf32>
      %94 = arith.divf %92, %93 : vector<8x32xf32>
      %95 = vector.extract_strided_slice %83 {offsets = [0, 32], sizes = [8, 32], strides = [1, 1]} : vector<8x96xf32> to vector<8x32xf32>
      %96 = vector.extract_strided_slice %86 {offsets = [0, 32], sizes = [8, 32], strides = [1, 1]} : vector<8x96xf32> to vector<8x32xf32>
      %97 = arith.addf %95, %96 : vector<8x32xf32>
      %98 = arith.negf %97 : vector<8x32xf32>
      %99 = math.exp %98 : vector<8x32xf32>
      %cst_32 = arith.constant 1.000000e+00 : f32
      %100 = vector.broadcast %cst_32 : f32 to vector<8x32xf32>
      %101 = arith.addf %100, %99 : vector<8x32xf32>
      %102 = arith.divf %100, %101 : vector<8x32xf32>
      %103 = vector.extract_strided_slice %83 {offsets = [0, 64], sizes = [8, 32], strides = [1, 1]} : vector<8x96xf32> to vector<8x32xf32>
      %104 = vector.extract_strided_slice %86 {offsets = [0, 64], sizes = [8, 32], strides = [1, 1]} : vector<8x96xf32> to vector<8x32xf32>
      %105 = arith.mulf %94, %104 : vector<8x32xf32>
      %106 = arith.addf %103, %105 : vector<8x32xf32>
      %107 = math.tanh %106 : vector<8x32xf32>
      %cst_33 = arith.constant 1.000000e+00 : f32
      %108 = vector.broadcast %cst_33 : f32 to vector<8x32xf32>
      %109 = arith.subf %108, %102 : vector<8x32xf32>
      %110 = arith.mulf %109, %107 : vector<8x32xf32>
      %111 = arith.mulf %102, %78 : vector<8x32xf32>
      %112 = arith.addf %110, %111 : vector<8x32xf32>
      %c0_34 = arith.constant 0 : index
      %c40_35 = arith.constant 40 : index
      %c0_36 = arith.constant 0 : index
      %113 = vector.load %arg5[%c0_34, %c40_35, %c0_36] : memref<1x64x32xf32, #tpu.memory_space<vmem>>, vector<1x8x32xf32>
      %114 = vector.shape_cast %113 : vector<1x8x32xf32> to vector<8x32xf32>
      %115 = vector.shape_cast %112 : vector<8x32xf32> to vector<1x8x32xf32>
      tpu.vector_store %arg5[%c0_34, %c40_35, %c0_36], %115 {strides = array<i32>} : memref<1x64x32xf32, #tpu.memory_space<vmem>>, vector<1x8x32xf32>,
      %c0_37 = arith.constant 0 : index
      %c32 = arith.constant 32 : index
      %c0_38 = arith.constant 0 : index
      %116 = vector.load %arg2[%c0_37, %c32, %c0_38] : memref<1x64x96xf32, #tpu.memory_space<vmem>>, vector<1x8x96xf32>
      %117 = vector.shape_cast %116 : vector<1x8x96xf32> to vector<8x96xf32>
      %cst_39 = arith.constant dense<0.000000e+00> : vector<8x96xf32>
      %118 = tpu.matmul %112, %4, %cst_39 {dimension_numbers = #tpu.dot_dimension_numbers<[1], [0], [0], [1], [0, 0, 1, 1], [], []>} : vector<8x32xf32>, vector<32x96xf32>, vector<8x96xf32> -> vector<8x96xf32>
      %119 = vector.broadcast %6 : vector<1x96xf32> to vector<8x96xf32>
      %120 = arith.addf %118, %119 : vector<8x96xf32>
      %121 = vector.extract_strided_slice %117 {offsets = [0, 0], sizes = [8, 32], strides = [1, 1]} : vector<8x96xf32> to vector<8x32xf32>
      %122 = vector.extract_strided_slice %120 {offsets = [0, 0], sizes = [8, 32], strides = [1, 1]} : vector<8x96xf32> to vector<8x32xf32>
      %123 = arith.addf %121, %122 : vector<8x32xf32>
      %124 = arith.negf %123 : vector<8x32xf32>
      %125 = math.exp %124 : vector<8x32xf32>
      %cst_40 = arith.constant 1.000000e+00 : f32
      %126 = vector.broadcast %cst_40 : f32 to vector<8x32xf32>
      %127 = arith.addf %126, %125 : vector<8x32xf32>
      %128 = arith.divf %126, %127 : vector<8x32xf32>
      %129 = vector.extract_strided_slice %117 {offsets = [0, 32], sizes = [8, 32], strides = [1, 1]} : vector<8x96xf32> to vector<8x32xf32>
      %130 = vector.extract_strided_slice %120 {offsets = [0, 32], sizes = [8, 32], strides = [1, 1]} : vector<8x96xf32> to vector<8x32xf32>
      %131 = arith.addf %129, %130 : vector<8x32xf32>
      %132 = arith.negf %131 : vector<8x32xf32>
      %133 = math.exp %132 : vector<8x32xf32>
      %cst_41 = arith.constant 1.000000e+00 : f32
      %134 = vector.broadcast %cst_41 : f32 to vector<8x32xf32>
      %135 = arith.addf %134, %133 : vector<8x32xf32>
      %136 = arith.divf %134, %135 : vector<8x32xf32>
      %137 = vector.extract_strided_slice %117 {offsets = [0, 64], sizes = [8, 32], strides = [1, 1]} : vector<8x96xf32> to vector<8x32xf32>
      %138 = vector.extract_strided_slice %120 {offsets = [0, 64], sizes = [8, 32], strides = [1, 1]} : vector<8x96xf32> to vector<8x32xf32>
      %139 = arith.mulf %128, %138 : vector<8x32xf32>
      %140 = arith.addf %137, %139 : vector<8x32xf32>
      %141 = math.tanh %140 : vector<8x32xf32>
      %cst_42 = arith.constant 1.000000e+00 : f32
      %142 = vector.broadcast %cst_42 : f32 to vector<8x32xf32>
      %143 = arith.subf %142, %136 : vector<8x32xf32>
      %144 = arith.mulf %143, %141 : vector<8x32xf32>
      %145 = arith.mulf %136, %112 : vector<8x32xf32>
      %146 = arith.addf %144, %145 : vector<8x32xf32>
      %c0_43 = arith.constant 0 : index
      %c32_44 = arith.constant 32 : index
      %c0_45 = arith.constant 0 : index
      %147 = vector.load %arg5[%c0_43, %c32_44, %c0_45] : memref<1x64x32xf32, #tpu.memory_space<vmem>>, vector<1x8x32xf32>
      %148 = vector.shape_cast %147 : vector<1x8x32xf32> to vector<8x32xf32>
      %149 = vector.shape_cast %146 : vector<8x32xf32> to vector<1x8x32xf32>
      tpu.vector_store %arg5[%c0_43, %c32_44, %c0_45], %149 {strides = array<i32>} : memref<1x64x32xf32, #tpu.memory_space<vmem>>, vector<1x8x32xf32>,
      %c0_46 = arith.constant 0 : index
      %c24 = arith.constant 24 : index
      %c0_47 = arith.constant 0 : index
      %150 = vector.load %arg2[%c0_46, %c24, %c0_47] : memref<1x64x96xf32, #tpu.memory_space<vmem>>, vector<1x8x96xf32>
      %151 = vector.shape_cast %150 : vector<1x8x96xf32> to vector<8x96xf32>
      %cst_48 = arith.constant dense<0.000000e+00> : vector<8x96xf32>
      %152 = tpu.matmul %146, %4, %cst_48 {dimension_numbers = #tpu.dot_dimension_numbers<[1], [0], [0], [1], [0, 0, 1, 1], [], []>} : vector<8x32xf32>, vector<32x96xf32>, vector<8x96xf32> -> vector<8x96xf32>
      %153 = vector.broadcast %6 : vector<1x96xf32> to vector<8x96xf32>
      %154 = arith.addf %152, %153 : vector<8x96xf32>
      %155 = vector.extract_strided_slice %151 {offsets = [0, 0], sizes = [8, 32], strides = [1, 1]} : vector<8x96xf32> to vector<8x32xf32>
      %156 = vector.extract_strided_slice %154 {offsets = [0, 0], sizes = [8, 32], strides = [1, 1]} : vector<8x96xf32> to vector<8x32xf32>
      %157 = arith.addf %155, %156 : vector<8x32xf32>
      %158 = arith.negf %157 : vector<8x32xf32>
      %159 = math.exp %158 : vector<8x32xf32>
      %cst_49 = arith.constant 1.000000e+00 : f32
      %160 = vector.broadcast %cst_49 : f32 to vector<8x32xf32>
      %161 = arith.addf %160, %159 : vector<8x32xf32>
      %162 = arith.divf %160, %161 : vector<8x32xf32>
      %163 = vector.extract_strided_slice %151 {offsets = [0, 32], sizes = [8, 32], strides = [1, 1]} : vector<8x96xf32> to vector<8x32xf32>
      %164 = vector.extract_strided_slice %154 {offsets = [0, 32], sizes = [8, 32], strides = [1, 1]} : vector<8x96xf32> to vector<8x32xf32>
      %165 = arith.addf %163, %164 : vector<8x32xf32>
      %166 = arith.negf %165 : vector<8x32xf32>
      %167 = math.exp %166 : vector<8x32xf32>
      %cst_50 = arith.constant 1.000000e+00 : f32
      %168 = vector.broadcast %cst_50 : f32 to vector<8x32xf32>
      %169 = arith.addf %168, %167 : vector<8x32xf32>
      %170 = arith.divf %168, %169 : vector<8x32xf32>
      %171 = vector.extract_strided_slice %151 {offsets = [0, 64], sizes = [8, 32], strides = [1, 1]} : vector<8x96xf32> to vector<8x32xf32>
      %172 = vector.extract_strided_slice %154 {offsets = [0, 64], sizes = [8, 32], strides = [1, 1]} : vector<8x96xf32> to vector<8x32xf32>
      %173 = arith.mulf %162, %172 : vector<8x32xf32>
      %174 = arith.addf %171, %173 : vector<8x32xf32>
      %175 = math.tanh %174 : vector<8x32xf32>
      %cst_51 = arith.constant 1.000000e+00 : f32
      %176 = vector.broadcast %cst_51 : f32 to vector<8x32xf32>
      %177 = arith.subf %176, %170 : vector<8x32xf32>
      %178 = arith.mulf %177, %175 : vector<8x32xf32>
      %179 = arith.mulf %170, %146 : vector<8x32xf32>
      %180 = arith.addf %178, %179 : vector<8x32xf32>
      %c0_52 = arith.constant 0 : index
      %c24_53 = arith.constant 24 : index
      %c0_54 = arith.constant 0 : index
      %181 = vector.load %arg5[%c0_52, %c24_53, %c0_54] : memref<1x64x32xf32, #tpu.memory_space<vmem>>, vector<1x8x32xf32>
      %182 = vector.shape_cast %181 : vector<1x8x32xf32> to vector<8x32xf32>
      %183 = vector.shape_cast %180 : vector<8x32xf32> to vector<1x8x32xf32>
      tpu.vector_store %arg5[%c0_52, %c24_53, %c0_54], %183 {strides = array<i32>} : memref<1x64x32xf32, #tpu.memory_space<vmem>>, vector<1x8x32xf32>,
      %c0_55 = arith.constant 0 : index
      %c16 = arith.constant 16 : index
      %c0_56 = arith.constant 0 : index
      %184 = vector.load %arg2[%c0_55, %c16, %c0_56] : memref<1x64x96xf32, #tpu.memory_space<vmem>>, vector<1x8x96xf32>
      %185 = vector.shape_cast %184 : vector<1x8x96xf32> to vector<8x96xf32>
      %cst_57 = arith.constant dense<0.000000e+00> : vector<8x96xf32>
      %186 = tpu.matmul %180, %4, %cst_57 {dimension_numbers = #tpu.dot_dimension_numbers<[1], [0], [0], [1], [0, 0, 1, 1], [], []>} : vector<8x32xf32>, vector<32x96xf32>, vector<8x96xf32> -> vector<8x96xf32>
      %187 = vector.broadcast %6 : vector<1x96xf32> to vector<8x96xf32>
      %188 = arith.addf %186, %187 : vector<8x96xf32>
      %189 = vector.extract_strided_slice %185 {offsets = [0, 0], sizes = [8, 32], strides = [1, 1]} : vector<8x96xf32> to vector<8x32xf32>
      %190 = vector.extract_strided_slice %188 {offsets = [0, 0], sizes = [8, 32], strides = [1, 1]} : vector<8x96xf32> to vector<8x32xf32>
      %191 = arith.addf %189, %190 : vector<8x32xf32>
      %192 = arith.negf %191 : vector<8x32xf32>
      %193 = math.exp %192 : vector<8x32xf32>
      %cst_58 = arith.constant 1.000000e+00 : f32
      %194 = vector.broadcast %cst_58 : f32 to vector<8x32xf32>
      %195 = arith.addf %194, %193 : vector<8x32xf32>
      %196 = arith.divf %194, %195 : vector<8x32xf32>
      %197 = vector.extract_strided_slice %185 {offsets = [0, 32], sizes = [8, 32], strides = [1, 1]} : vector<8x96xf32> to vector<8x32xf32>
      %198 = vector.extract_strided_slice %188 {offsets = [0, 32], sizes = [8, 32], strides = [1, 1]} : vector<8x96xf32> to vector<8x32xf32>
      %199 = arith.addf %197, %198 : vector<8x32xf32>
      %200 = arith.negf %199 : vector<8x32xf32>
      %201 = math.exp %200 : vector<8x32xf32>
      %cst_59 = arith.constant 1.000000e+00 : f32
      %202 = vector.broadcast %cst_59 : f32 to vector<8x32xf32>
      %203 = arith.addf %202, %201 : vector<8x32xf32>
      %204 = arith.divf %202, %203 : vector<8x32xf32>
      %205 = vector.extract_strided_slice %185 {offsets = [0, 64], sizes = [8, 32], strides = [1, 1]} : vector<8x96xf32> to vector<8x32xf32>
      %206 = vector.extract_strided_slice %188 {offsets = [0, 64], sizes = [8, 32], strides = [1, 1]} : vector<8x96xf32> to vector<8x32xf32>
      %207 = arith.mulf %196, %206 : vector<8x32xf32>
      %208 = arith.addf %205, %207 : vector<8x32xf32>
      %209 = math.tanh %208 : vector<8x32xf32>
      %cst_60 = arith.constant 1.000000e+00 : f32
      %210 = vector.broadcast %cst_60 : f32 to vector<8x32xf32>
      %211 = arith.subf %210, %204 : vector<8x32xf32>
      %212 = arith.mulf %211, %209 : vector<8x32xf32>
      %213 = arith.mulf %204, %180 : vector<8x32xf32>
      %214 = arith.addf %212, %213 : vector<8x32xf32>
      %c0_61 = arith.constant 0 : index
      %c16_62 = arith.constant 16 : index
      %c0_63 = arith.constant 0 : index
      %215 = vector.load %arg5[%c0_61, %c16_62, %c0_63] : memref<1x64x32xf32, #tpu.memory_space<vmem>>, vector<1x8x32xf32>
      %216 = vector.shape_cast %215 : vector<1x8x32xf32> to vector<8x32xf32>
      %217 = vector.shape_cast %214 : vector<8x32xf32> to vector<1x8x32xf32>
      tpu.vector_store %arg5[%c0_61, %c16_62, %c0_63], %217 {strides = array<i32>} : memref<1x64x32xf32, #tpu.memory_space<vmem>>, vector<1x8x32xf32>,
      %c0_64 = arith.constant 0 : index
      %c8 = arith.constant 8 : index
      %c0_65 = arith.constant 0 : index
      %218 = vector.load %arg2[%c0_64, %c8, %c0_65] : memref<1x64x96xf32, #tpu.memory_space<vmem>>, vector<1x8x96xf32>
      %219 = vector.shape_cast %218 : vector<1x8x96xf32> to vector<8x96xf32>
      %cst_66 = arith.constant dense<0.000000e+00> : vector<8x96xf32>
      %220 = tpu.matmul %214, %4, %cst_66 {dimension_numbers = #tpu.dot_dimension_numbers<[1], [0], [0], [1], [0, 0, 1, 1], [], []>} : vector<8x32xf32>, vector<32x96xf32>, vector<8x96xf32> -> vector<8x96xf32>
      %221 = vector.broadcast %6 : vector<1x96xf32> to vector<8x96xf32>
      %222 = arith.addf %220, %221 : vector<8x96xf32>
      %223 = vector.extract_strided_slice %219 {offsets = [0, 0], sizes = [8, 32], strides = [1, 1]} : vector<8x96xf32> to vector<8x32xf32>
      %224 = vector.extract_strided_slice %222 {offsets = [0, 0], sizes = [8, 32], strides = [1, 1]} : vector<8x96xf32> to vector<8x32xf32>
      %225 = arith.addf %223, %224 : vector<8x32xf32>
      %226 = arith.negf %225 : vector<8x32xf32>
      %227 = math.exp %226 : vector<8x32xf32>
      %cst_67 = arith.constant 1.000000e+00 : f32
      %228 = vector.broadcast %cst_67 : f32 to vector<8x32xf32>
      %229 = arith.addf %228, %227 : vector<8x32xf32>
      %230 = arith.divf %228, %229 : vector<8x32xf32>
      %231 = vector.extract_strided_slice %219 {offsets = [0, 32], sizes = [8, 32], strides = [1, 1]} : vector<8x96xf32> to vector<8x32xf32>
      %232 = vector.extract_strided_slice %222 {offsets = [0, 32], sizes = [8, 32], strides = [1, 1]} : vector<8x96xf32> to vector<8x32xf32>
      %233 = arith.addf %231, %232 : vector<8x32xf32>
      %234 = arith.negf %233 : vector<8x32xf32>
      %235 = math.exp %234 : vector<8x32xf32>
      %cst_68 = arith.constant 1.000000e+00 : f32
      %236 = vector.broadcast %cst_68 : f32 to vector<8x32xf32>
      %237 = arith.addf %236, %235 : vector<8x32xf32>
      %238 = arith.divf %236, %237 : vector<8x32xf32>
      %239 = vector.extract_strided_slice %219 {offsets = [0, 64], sizes = [8, 32], strides = [1, 1]} : vector<8x96xf32> to vector<8x32xf32>
      %240 = vector.extract_strided_slice %222 {offsets = [0, 64], sizes = [8, 32], strides = [1, 1]} : vector<8x96xf32> to vector<8x32xf32>
      %241 = arith.mulf %230, %240 : vector<8x32xf32>
      %242 = arith.addf %239, %241 : vector<8x32xf32>
      %243 = math.tanh %242 : vector<8x32xf32>
      %cst_69 = arith.constant 1.000000e+00 : f32
      %244 = vector.broadcast %cst_69 : f32 to vector<8x32xf32>
      %245 = arith.subf %244, %238 : vector<8x32xf32>
      %246 = arith.mulf %245, %243 : vector<8x32xf32>
      %247 = arith.mulf %238, %214 : vector<8x32xf32>
      %248 = arith.addf %246, %247 : vector<8x32xf32>
      %c0_70 = arith.constant 0 : index
      %c8_71 = arith.constant 8 : index
      %c0_72 = arith.constant 0 : index
      %249 = vector.load %arg5[%c0_70, %c8_71, %c0_72] : memref<1x64x32xf32, #tpu.memory_space<vmem>>, vector<1x8x32xf32>
      %250 = vector.shape_cast %249 : vector<1x8x32xf32> to vector<8x32xf32>
      %251 = vector.shape_cast %248 : vector<8x32xf32> to vector<1x8x32xf32>
      tpu.vector_store %arg5[%c0_70, %c8_71, %c0_72], %251 {strides = array<i32>} : memref<1x64x32xf32, #tpu.memory_space<vmem>>, vector<1x8x32xf32>,
      %c0_73 = arith.constant 0 : index
      %c0_74 = arith.constant 0 : index
      %c0_75 = arith.constant 0 : index
      %252 = vector.load %arg2[%c0_73, %c0_74, %c0_75] : memref<1x64x96xf32, #tpu.memory_space<vmem>>, vector<1x8x96xf32>
      %253 = vector.shape_cast %252 : vector<1x8x96xf32> to vector<8x96xf32>
      %cst_76 = arith.constant dense<0.000000e+00> : vector<8x96xf32>
      %254 = tpu.matmul %248, %4, %cst_76 {dimension_numbers = #tpu.dot_dimension_numbers<[1], [0], [0], [1], [0, 0, 1, 1], [], []>} : vector<8x32xf32>, vector<32x96xf32>, vector<8x96xf32> -> vector<8x96xf32>
      %255 = vector.broadcast %6 : vector<1x96xf32> to vector<8x96xf32>
      %256 = arith.addf %254, %255 : vector<8x96xf32>
      %257 = vector.extract_strided_slice %253 {offsets = [0, 0], sizes = [8, 32], strides = [1, 1]} : vector<8x96xf32> to vector<8x32xf32>
      %258 = vector.extract_strided_slice %256 {offsets = [0, 0], sizes = [8, 32], strides = [1, 1]} : vector<8x96xf32> to vector<8x32xf32>
      %259 = arith.addf %257, %258 : vector<8x32xf32>
      %260 = arith.negf %259 : vector<8x32xf32>
      %261 = math.exp %260 : vector<8x32xf32>
      %cst_77 = arith.constant 1.000000e+00 : f32
      %262 = vector.broadcast %cst_77 : f32 to vector<8x32xf32>
      %263 = arith.addf %262, %261 : vector<8x32xf32>
      %264 = arith.divf %262, %263 : vector<8x32xf32>
      %265 = vector.extract_strided_slice %253 {offsets = [0, 32], sizes = [8, 32], strides = [1, 1]} : vector<8x96xf32> to vector<8x32xf32>
      %266 = vector.extract_strided_slice %256 {offsets = [0, 32], sizes = [8, 32], strides = [1, 1]} : vector<8x96xf32> to vector<8x32xf32>
      %267 = arith.addf %265, %266 : vector<8x32xf32>
      %268 = arith.negf %267 : vector<8x32xf32>
      %269 = math.exp %268 : vector<8x32xf32>
      %cst_78 = arith.constant 1.000000e+00 : f32
      %270 = vector.broadcast %cst_78 : f32 to vector<8x32xf32>
      %271 = arith.addf %270, %269 : vector<8x32xf32>
      %272 = arith.divf %270, %271 : vector<8x32xf32>
      %273 = vector.extract_strided_slice %253 {offsets = [0, 64], sizes = [8, 32], strides = [1, 1]} : vector<8x96xf32> to vector<8x32xf32>
      %274 = vector.extract_strided_slice %256 {offsets = [0, 64], sizes = [8, 32], strides = [1, 1]} : vector<8x96xf32> to vector<8x32xf32>
      %275 = arith.mulf %264, %274 : vector<8x32xf32>
      %276 = arith.addf %273, %275 : vector<8x32xf32>
      %277 = math.tanh %276 : vector<8x32xf32>
      %cst_79 = arith.constant 1.000000e+00 : f32
      %278 = vector.broadcast %cst_79 : f32 to vector<8x32xf32>
      %279 = arith.subf %278, %272 : vector<8x32xf32>
      %280 = arith.mulf %279, %277 : vector<8x32xf32>
      %281 = arith.mulf %272, %248 : vector<8x32xf32>
      %282 = arith.addf %280, %281 : vector<8x32xf32>
      %c0_80 = arith.constant 0 : index
      %c0_81 = arith.constant 0 : index
      %c0_82 = arith.constant 0 : index
      %283 = vector.load %arg5[%c0_80, %c0_81, %c0_82] : memref<1x64x32xf32, #tpu.memory_space<vmem>>, vector<1x8x32xf32>
      %284 = vector.shape_cast %283 : vector<1x8x32xf32> to vector<8x32xf32>
      %285 = vector.shape_cast %282 : vector<8x32xf32> to vector<1x8x32xf32>
      tpu.vector_store %arg5[%c0_80, %c0_81, %c0_82], %285 {strides = array<i32>} : memref<1x64x32xf32, #tpu.memory_space<vmem>>, vector<1x8x32xf32>,
      %c0_83 = arith.constant 0 : index
      %c0_84 = arith.constant 0 : index
      %286 = vector.load %arg6[%c0_83, %c0_84] : memref<8x32xf32, #tpu.memory_space<vmem>>, vector<8x32xf32>
      tpu.vector_store %arg6[%c0_83, %c0_84], %282 {strides = array<i32>} : memref<8x32xf32, #tpu.memory_space<vmem>>, vector<8x32xf32>,
    } else {
    }
    return
  }
  func.func @transform_0(%arg0: i32, %arg1: i32) -> (i32, i32, i32) {
    %c2_i32 = arith.constant 2 : i32
    %0 = arith.muli %c2_i32, %arg1 : i32
    %c0_i32 = arith.constant 0 : i32
    %1 = arith.subi %c0_i32, %0 : i32
    %2 = arith.muli %arg0, %1 : i32
    %3 = arith.addi %arg1, %2 : i32
    %c0_i32_0 = arith.constant 0 : i32
    %c0_i32_1 = arith.constant 0 : i32
    return %arg0, %3, %c0_i32_0 : i32, i32, i32
  }
  func.func @transform_1(%arg0: i32, %arg1: i32) -> (i32, i32, i32) {
    %c0_i32 = arith.constant 0 : i32
    %c0_i32_0 = arith.constant 0 : i32
    %c0_i32_1 = arith.constant 0 : i32
    return %arg0, %c0_i32, %c0_i32_0 : i32, i32, i32
  }
  func.func @transform_2(%arg0: i32, %arg1: i32) -> (i32, i32, i32) {
    %c0_i32 = arith.constant 0 : i32
    %c0_i32_0 = arith.constant 0 : i32
    %c0_i32_1 = arith.constant 0 : i32
    return %arg0, %c0_i32, %c0_i32_0 : i32, i32, i32
  }
  func.func @transform_3(%arg0: i32, %arg1: i32) -> (i32, i32, i32) {
    %c2_i32 = arith.constant 2 : i32
    %0 = arith.muli %c2_i32, %arg1 : i32
    %c0_i32 = arith.constant 0 : i32
    %1 = arith.subi %c0_i32, %0 : i32
    %2 = arith.muli %arg0, %1 : i32
    %3 = arith.addi %arg1, %2 : i32
    %c0_i32_0 = arith.constant 0 : i32
    %c0_i32_1 = arith.constant 0 : i32
    return %arg0, %3, %c0_i32_0 : i32, i32, i32
  }
}

module attributes {stable_mosaic.version = 11 : i64} {
  func.func @pool_linear_kernel(%arg0: i32, %arg1: memref<2x8x8x32xf32, #tpu.memory_space<vmem>>, %arg2: memref<8x8x1xf32, #tpu.memory_space<vmem>>, %arg3: memref<2x32x8xf32, #tpu.memory_space<vmem>>, %arg4: memref<1x8xf32, #tpu.memory_space<vmem>>, %arg5: memref<8x8xf32, #tpu.memory_space<vmem>>, %arg6: memref<2x8x32xf32, #tpu.memory_space<vmem>>) attributes {dimension_semantics = [#tpu.dimension_semantics<arbitrary>], iteration_bounds = array<i64: 1>, scalar_prefetch = 0 : i64, scratch_operands = 1 : i64, tpu.core_type = #tpu.core_type<tc>, window_params = [{transform_indices = @transform_0, window_bounds = array<i64: 2, 8, 8, 32>}, {transform_indices = @transform_1, window_bounds = array<i64: 8, 8, 1>}, {pipeline_mode = #tpu.pipeline_mode<synchronous>, transform_indices = @transform_2, window_bounds = array<i64: 2, 32, 8>}, {pipeline_mode = #tpu.pipeline_mode<synchronous>, transform_indices = @transform_3, window_bounds = array<i64: 1, 8>}, {pipeline_mode = #tpu.pipeline_mode<synchronous>, transform_indices = @transform_4, window_bounds = array<i64: 8, 8>}]} {
    %c0_i32 = arith.constant 0 : i32
    %0 = arith.cmpi eq, %arg0, %c0_i32 : i32
    %1 = arith.extui %0 : i1 to i32
    %c0_i32_0 = arith.constant 0 : i32
    %2 = arith.cmpi ne, %1, %c0_i32_0 : i32
    scf.if %2 {
      %cst_15 = arith.constant 0.000000e+00 : f32
      %15 = vector.broadcast %cst_15 : f32 to vector<2x8x32xf32>
      %c0_16 = arith.constant 0 : index
      %c0_17 = arith.constant 0 : index
      %c0_18 = arith.constant 0 : index
      %16 = vector.load %arg6[%c0_16, %c0_17, %c0_18] : memref<2x8x32xf32, #tpu.memory_space<vmem>>, vector<2x8x32xf32>
      tpu.vector_store %arg6[%c0_16, %c0_17, %c0_18], %15 {strides = array<i32>} : memref<2x8x32xf32, #tpu.memory_space<vmem>>, vector<2x8x32xf32>,
    } else {
    }
    %c0 = arith.constant 0 : index
    %c0_1 = arith.constant 0 : index
    %c0_2 = arith.constant 0 : index
    %c0_3 = arith.constant 0 : index
    %3 = vector.load %arg1[%c0, %c0_1, %c0_2, %c0_3] : memref<2x8x8x32xf32, #tpu.memory_space<vmem>>, vector<2x8x8x32xf32>
    %c0_4 = arith.constant 0 : index
    %c0_5 = arith.constant 0 : index
    %c0_6 = arith.constant 0 : index
    %4 = vector.load %arg2[%c0_4, %c0_5, %c0_6] : memref<8x8x1xf32, #tpu.memory_space<vmem>>, vector<8x8x1xf32>
    %c0_7 = arith.constant 0 : index
    %c0_8 = arith.constant 0 : index
    %c0_9 = arith.constant 0 : index
    %5 = vector.load %arg6[%c0_7, %c0_8, %c0_9] : memref<2x8x32xf32, #tpu.memory_space<vmem>>, vector<2x8x32xf32>
    %6 = vector.shape_cast %4 : vector<8x8x1xf32> to vector<1x8x8x1xf32>
    %7 = vector.broadcast %6 : vector<1x8x8x1xf32> to vector<2x8x8x32xf32>
    %8 = arith.mulf %3, %7 : vector<2x8x8x32xf32>
    %cst = arith.constant dense<0.000000e+00> : vector<2x8x32xf32>
    %9 = vector.multi_reduction <add>, %8, %cst [1] : vector<2x8x8x32xf32> to vector<2x8x32xf32>
    %10 = arith.addf %5, %9 : vector<2x8x32xf32>
    %c0_10 = arith.constant 0 : index
    %c0_11 = arith.constant 0 : index
    %c0_12 = arith.constant 0 : index
    %11 = vector.load %arg6[%c0_10, %c0_11, %c0_12] : memref<2x8x32xf32, #tpu.memory_space<vmem>>, vector<2x8x32xf32>
    tpu.vector_store %arg6[%c0_10, %c0_11, %c0_12], %10 {strides = array<i32>} : memref<2x8x32xf32, #tpu.memory_space<vmem>>, vector<2x8x32xf32>,
    %c0_i32_13 = arith.constant 0 : i32
    %12 = arith.cmpi eq, %arg0, %c0_i32_13 : i32
    %13 = arith.extui %12 : i1 to i32
    %c0_i32_14 = arith.constant 0 : i32
    %14 = arith.cmpi ne, %13, %c0_i32_14 : i32
    scf.if %14 {
      %c0_15 = arith.constant 0 : index
      %c0_16 = arith.constant 0 : index
      %c0_17 = arith.constant 0 : index
      %15 = vector.load %arg6[%c0_15, %c0_16, %c0_17] : memref<2x8x32xf32, #tpu.memory_space<vmem>>, vector<2x8x32xf32>
      %16 = vector.extract_strided_slice %15 {offsets = [0, 0, 0], sizes = [1, 8, 32], strides = [1, 1, 1]} : vector<2x8x32xf32> to vector<1x8x32xf32>
      %17 = vector.shape_cast %16 : vector<1x8x32xf32> to vector<8x32xf32>
      %c0_18 = arith.constant 0 : index
      %c0_19 = arith.constant 0 : index
      %c0_20 = arith.constant 0 : index
      %18 = vector.load %arg3[%c0_18, %c0_19, %c0_20] : memref<2x32x8xf32, #tpu.memory_space<vmem>>, vector<1x32x8xf32>
      %19 = vector.shape_cast %18 : vector<1x32x8xf32> to vector<32x8xf32>
      %cst_21 = arith.constant dense<0.000000e+00> : vector<8x8xf32>
      %20 = tpu.matmul %17, %19, %cst_21 {dimension_numbers = #tpu.dot_dimension_numbers<[1], [0], [0], [1], [0, 0, 1, 1], [], []>} : vector<8x32xf32>, vector<32x8xf32>, vector<8x8xf32> -> vector<8x8xf32>
      %21 = vector.extract_strided_slice %15 {offsets = [1, 0, 0], sizes = [1, 8, 32], strides = [1, 1, 1]} : vector<2x8x32xf32> to vector<1x8x32xf32>
      %22 = vector.shape_cast %21 : vector<1x8x32xf32> to vector<8x32xf32>
      %c1 = arith.constant 1 : index
      %c0_22 = arith.constant 0 : index
      %c0_23 = arith.constant 0 : index
      %23 = vector.load %arg3[%c1, %c0_22, %c0_23] : memref<2x32x8xf32, #tpu.memory_space<vmem>>, vector<1x32x8xf32>
      %24 = vector.shape_cast %23 : vector<1x32x8xf32> to vector<32x8xf32>
      %cst_24 = arith.constant dense<0.000000e+00> : vector<8x8xf32>
      %25 = tpu.matmul %22, %24, %cst_24 {dimension_numbers = #tpu.dot_dimension_numbers<[1], [0], [0], [1], [0, 0, 1, 1], [], []>} : vector<8x32xf32>, vector<32x8xf32>, vector<8x8xf32> -> vector<8x8xf32>
      %26 = arith.addf %20, %25 : vector<8x8xf32>
      %c0_25 = arith.constant 0 : index
      %c0_26 = arith.constant 0 : index
      %27 = vector.load %arg4[%c0_25, %c0_26] : memref<1x8xf32, #tpu.memory_space<vmem>>, vector<1x8xf32>
      %28 = vector.broadcast %27 : vector<1x8xf32> to vector<8x8xf32>
      %29 = arith.addf %26, %28 : vector<8x8xf32>
      %c0_27 = arith.constant 0 : index
      %c0_28 = arith.constant 0 : index
      %30 = vector.load %arg5[%c0_27, %c0_28] : memref<8x8xf32, #tpu.memory_space<vmem>>, vector<8x8xf32>
      tpu.vector_store %arg5[%c0_27, %c0_28], %29 {strides = array<i32>} : memref<8x8xf32, #tpu.memory_space<vmem>>, vector<8x8xf32>,
    } else {
    }
    return
  }
  func.func @transform_0(%arg0: i32) -> (i32, i32, i32, i32) {
    %c0_i32 = arith.constant 0 : i32
    %c0_i32_0 = arith.constant 0 : i32
    %c0_i32_1 = arith.constant 0 : i32
    %c0_i32_2 = arith.constant 0 : i32
    return %c0_i32, %arg0, %c0_i32_0, %c0_i32_1 : i32, i32, i32, i32
  }
  func.func @transform_1(%arg0: i32) -> (i32, i32, i32) {
    %c0_i32 = arith.constant 0 : i32
    %c0_i32_0 = arith.constant 0 : i32
    %c0_i32_1 = arith.constant 0 : i32
    return %arg0, %c0_i32, %c0_i32_0 : i32, i32, i32
  }
  func.func @transform_2(%arg0: i32) -> (i32, i32, i32) {
    %c0_i32 = arith.constant 0 : i32
    %c0_i32_0 = arith.constant 0 : i32
    %c0_i32_1 = arith.constant 0 : i32
    %c0_i32_2 = arith.constant 0 : i32
    return %c0_i32, %c0_i32_0, %c0_i32_1 : i32, i32, i32
  }
  func.func @transform_3(%arg0: i32) -> (i32, i32) {
    %c0_i32 = arith.constant 0 : i32
    %c0_i32_0 = arith.constant 0 : i32
    %c0_i32_1 = arith.constant 0 : i32
    return %c0_i32, %c0_i32_0 : i32, i32
  }
  func.func @transform_4(%arg0: i32) -> (i32, i32) {
    %c0_i32 = arith.constant 0 : i32
    %c0_i32_0 = arith.constant 0 : i32
    %c0_i32_1 = arith.constant 0 : i32
    return %c0_i32, %c0_i32_0 : i32, i32
  }
}

</mosaic_0001>

<bundles_post_ra>
// kernel: gru_encoder_forward.5
= control target key start
LH: loop header
LB: loop body
LE: loop exit
PB: predicated region body
PF: predicated region fallthrough
CT: control target
= control target key end

     0   :  { %s612_s12 = smov 0   ;;  %s614_s13 = smov 0   ;;  %s693_s0 = inlined_call_operand.vmem [shape: f32[1,64,16], index: 0, kind: input, shape index: {}]   ;;  %s694_s1 = inlined_call_operand.vmem [shape: f32[2,1,16,96], index: 1, kind: input, shape index: {}]   ;;  %s695_s2 = inlined_call_operand.vmem [shape: f32[2,1,96], index: 2, kind: input, shape index: {}]   ;;  %s696_s3 = inlined_call_operand.vmem [shape: f32[2,64,96], index: 3, kind: output, shape index: {}]  }
   0x1   :  { %s616_s14 = smov 0  }
   0x2 LB: > { %s25_s15 = sadd.s32 1, %s586_s13  ;;  %p496_p0 = scmp.ge.s32.totalorder %s590_s14, 1  ;;  %s590_s14 = sphi %s616_s14, %s13_s14   ;;  %s586_s13 = sphi %s614_s13, %s698_s13   ;;  %s582_s12 = sphi %s612_s12, %s697_s12  }
   0x3   : > { %p27_p1 = scmp.ge.s32.totalorder %s25_s15, 2  ;;  %p170_p2 = scmp.lt.s32.totalorder %s590_s14, 3 }
   0x5   : > { %s700_s15 = smov (%p27_p1, %s25_s15), 0  ;;  %p171_p3 = pnand %p496_p0, %p170_p2 }
   0x6   : > { %p212_p4 = scmp.lt.s32.totalorder (!%p171_p3), %s582_s12, 1 }
   0x7   : > { %174 = sbr.rel (%p171_p3) target bundleno = 222 (0xde), region = 32 }
   0xc   : > { %v230_v0 = vld [vmem:[%s693_s0] sm:$0xff]  ;;  %vm247_vm0 = vcmask 130048   ;;  %s702_s12 = smov (!%p212_p4, %s582_s12), 1  ;;  %v231_v4 = vld [vmem:[%s693_s0 + $0x8] sm:$0xff]  ;;  %v232_v6 = vld [vmem:[%s693_s0 + $0x10] sm:$0xff]  ;;  %vm377_vm1 = vcmask 785408  }
   0xd   : > { %v234_v1 = vld [vmem:[%s693_s0 + $0x20] sm:$0xff]  ;;  %528 = vmatprep.mubr.msk.f32.mxu0 %vm247_vm0, %v230_v0  ;;  %s512_s20 = sshll.u32 %s702_s12, 4  ;;  %v235_v5 = vld [vmem:[%s693_s0 + $0x28] sm:$0xff]  ;;  %v236_v7 = vld [vmem:[%s693_s0 + $0x30] sm:$0xff]  ;;  %s219_s11 = scalar_lea.vmem %s695_s2, %s702_s12 }
   0xe   : > { %534 = vmatprep.mubr.msk.f32.mxu1 %vm247_vm0, %v234_v1  ;;  %s216_s23 = scalar_lea.vmem %s694_s1, %s512_s20  ;;  %v233_v8 = vld [vmem:[%s693_s0 + $0x18] sm:$0xff]  ;;  %s513_s16 = sshll.u32 %s702_s12, 6  ;;  %v501_v10 = vld [vmem:[%s219_s11] ss:$0 sm:$0xff] }
   0xf   : > { %v239_v2 = vld [vmem:[%s216_s23 + $0x8] sm:$0xff]  ;;  %v238_v3 = vld [vmem:[%s216_s23] sm:$0xff]  ;;  %v237_v9 = vld [vmem:[%s693_s0 + $0x38] sm:$0xff]  ;;  %s228_s19 = scalar_lea.vmem %s696_s3, %s513_s16 }
  0x10   : > { %524 = vmatprep.subr.mxu0 %v239_v2  ;;  %540 = vmatprep.subr.mxu1 %v239_v2 }
  0x11   : > { %525 = vmatpush3.msra.mxu0 %v239_v2  ;;  %542 = vmatpush3.msra.mxu1 %v239_v2 }
  0x12   : > { %526 = vmatprep.subr.mxu0 %v238_v3  ;;  %541 = vmatprep.subr.mxu1 %v238_v3 }
  0x13   : > { %527 = vmatpush3.msra.mxu0 %v238_v3  ;;  %543 = vmatpush3.msra.mxu1 %v238_v3 }
  0x14   : > { %529 = vmatmul.mubr.msk.f32.vlgmr.msra.gmra.mxu0 %vm247_vm0, %v231_v4  ;;  %535 = vmatmul.mubr.msk.f32.vlgmr.msra.gmra.mxu1 %vm247_vm0, %v235_v5 }
  0x15   : > { %531 = vmatprep.mubr.msk.f32.mxu0 %vm247_vm0, %v232_v6  ;;  %537 = vmatprep.mubr.msk.f32.mxu1 %vm247_vm0, %v236_v7 }
  0x18   : > { %532 = vmatmul.mubr.msk.f32.gmra.mxu0 %vm247_vm0, %v233_v8  ;;  %538 = vmatmul.mubr.msk.f32.gmra.mxu1 %vm247_vm0, %v237_v9 }
  0xd4   : > { %v530_v11 = vpop.f32.mrf.mxu0  ;;  %v536_v12 = vpop.f32.mrf.mxu1 }
  0xd5   : > { %v344_v13 = vadd.f32 %v530_v11, %v501_v10  ;;  %v364_v14 = vadd.f32 %v536_v12, %v501_v10 }
  0xd6   : > { %v338_v15 = vpop.f32.mrf.mxu0  ;;  %v358_v16 = vpop.f32.mrf.mxu1 }
  0xd7   : > { %379 = vst.msk [vmem:[%s228_s19 + $0x8] sm:$0xff] %vm377_vm1, %v344_v13  ;;  %383 = vst.msk [vmem:[%s228_s19 + $0x28] sm:$0xff] %vm377_vm1, %v364_v14  ;;  %v339_v17 = vadd.f32 %v501_v10, %v338_v15  ;;  %v359_v18 = vadd.f32 %v501_v10, %v358_v16 }
  0xd8   : > { %v533_v19 = vpop.f32.mrf.mxu0  ;;  %v539_v20 = vpop.f32.mrf.mxu1 }
  0xd9   : > { %378 = vst.msk [vmem:[%s228_s19] sm:$0xff] %vm377_vm1, %v339_v17  ;;  %382 = vst.msk [vmem:[%s228_s19 + $0x20] sm:$0xff] %vm377_vm1, %v359_v18  ;;  %v354_v21 = vadd.f32 %v533_v19, %v501_v10  ;;  %v374_v22 = vadd.f32 %v539_v20, %v501_v10 }
  0xda   : > { %v348_v23 = vpop.f32.mrf.mxu0  ;;  %v368_v24 = vpop.f32.mrf.mxu1 }
  0xdb   : > { %381 = vst.msk [vmem:[%s228_s19 + $0x18] sm:$0xff] %vm377_vm1, %v354_v21  ;;  %385 = vst.msk [vmem:[%s228_s19 + $0x38] sm:$0xff] %vm377_vm1, %v374_v22  ;;  %v349_v25 = vadd.f32 %v501_v10, %v348_v23  ;;  %v369_v26 = vadd.f32 %v501_v10, %v368_v24 }
  0xdd   : > { %380 = vst.msk [vmem:[%s228_s19 + $0x10] sm:$0xff] %vm377_vm1, %v349_v25  ;;  %384 = vst.msk [vmem:[%s228_s19 + $0x30] sm:$0xff] %vm377_vm1, %v369_v26 }
  0xde PF: > { %s13_s14 = sadd.s32 1, %s590_s14   ;;  %s697_s12 = smov %s586_s13 }
  0xdf   : > { %p10_p5 = scmp.ge.s32.totalorder %s13_s14, 4   ;;  %s698_s13 = smov %s700_s15 }
  0xe1   :  { %12 = sbr.rel (!%p10_p5) target bundleno = 2 (0x2), region = 68 }

// kernel: gru_encoder_forward.7
= control target key start
LH: loop header
LB: loop body
LE: loop exit
PB: predicated region body
PF: predicated region fallthrough
CT: control target
= control target key end

     0   :  { %s819_s12 = smov 0   ;;  %s821_s13 = smov 0   ;;  %s945_s0 = inlined_call_operand.vmem [shape: f32[2,64,32], index: 0, kind: input, shape index: {}]   ;;  %s946_s1 = inlined_call_operand.vmem [shape: f32[2,2,32,96], index: 1, kind: input, shape index: {}]   ;;  %s947_s2 = inlined_call_operand.vmem [shape: f32[2,1,96], index: 2, kind: input, shape index: {}]   ;;  %s948_s3 = inlined_call_operand.vmem [shape: f32[2,64,96], index: 3, kind: output, shape index: {}]  }
   0x1   :  { %s823_s14 = smov 0  }
   0x2 LB: > { %s25_s15 = sadd.s32 1, %s793_s13  ;;  %p649_p0 = scmp.ge.s32.totalorder %s797_s14, 1  ;;  %s797_s14 = sphi %s823_s14, %s13_s14   ;;  %s793_s13 = sphi %s821_s13, %s950_s13   ;;  %s789_s12 = sphi %s819_s12, %s949_s12  }
   0x3   : > { %p27_p1 = scmp.ge.s32.totalorder %s25_s15, 2  ;;  %p170_p2 = scmp.lt.s32.totalorder %s797_s14, 3 }
   0x5   : > { %s952_s15 = smov (%p27_p1, %s25_s15), 0  ;;  %p171_p3 = pnand %p649_p0, %p170_p2 }
   0x6   : > { %p212_p4 = scmp.lt.s32.totalorder (!%p171_p3), %s789_s12, 1 }
   0x7   : > { %174 = sbr.rel (%p171_p3) target bundleno = 237 (0xed), region = 32 }
   0xc   : > { %v654_v0 = vld [vmem:[%s945_s0 + $0x40] sm:$0xff]  ;;  %vm256_vm0 = vcmask 261120   ;;  %s954_s12 = smov (!%p212_p4, %s789_s12), 1  ;;  %v655_v10 = vld [vmem:[%s945_s0 + $0x48] sm:$0xff]  ;;  %v656_v12 = vld [vmem:[%s945_s0 + $0x50] sm:$0xff]  ;;  %vm530_vm1 = vcmask 785408  }
   0xd   : > { %v230_v1 = vld [vmem:[%s945_s0] sm:$0xff]  ;;  %719 = vmatprep.mubr.msk.f32.mxu0 %vm256_vm0, %v654_v0  ;;  %s685_s20 = sshll.u32 %s954_s12, 6  ;;  %v231_v11 = vld [vmem:[%s945_s0 + $0x8] sm:$0xff]  ;;  %v232_v13 = vld [vmem:[%s945_s0 + $0x10] sm:$0xff]  ;;  %s219_s5 = scalar_lea.vmem %s947_s2, %s954_s12 }
   0xe   : > { %739 = vmatprep.mubr.msk.f32.mxu1 %vm256_vm0, %v230_v1  ;;  %s216_s23 = scalar_lea.vmem %s946_s1, %s685_s20  ;;  %v657_v14 = vld [vmem:[%s945_s0 + $0x58] sm:$0xff]  ;;  %v658_v16 = vld [vmem:[%s945_s0 + $0x60] sm:$0xff]  ;;  %v659_v18 = vld [vmem:[%s945_s0 + $0x68] sm:$0xff]  ;;  %s918_s8 = scalar_lea.vmem %s948_s3, %s685_s20 }
   0xf   : > { %v665_v2 = vld [vmem:[%s216_s23 + $0x38] sm:$0xff]  ;;  %v664_v4 = vld [vmem:[%s216_s23 + $0x30] sm:$0xff]  ;;  %v663_v6 = vld [vmem:[%s216_s23 + $0x28] sm:$0xff] }
  0x10   : > { %v241_v3 = vld [vmem:[%s216_s23 + $0x18] sm:$0xff]  ;;  %711 = vmatprep.subr.mxu0 %v665_v2  ;;  %v240_v5 = vld [vmem:[%s216_s23 + $0x10] sm:$0xff]  ;;  %v239_v7 = vld [vmem:[%s216_s23 + $0x8] sm:$0xff] }
  0x11   : > { %731 = vmatprep.subr.mxu1 %v241_v3  ;;  %712 = vmatpush3.msra.mxu0 %v665_v2  ;;  %v662_v8 = vld [vmem:[%s216_s23 + $0x20] sm:$0xff]  ;;  %v233_v15 = vld [vmem:[%s945_s0 + $0x18] sm:$0xff]  ;;  %v235_v19 = vld [vmem:[%s945_s0 + $0x28] sm:$0xff] }
  0x12   : > { %732 = vmatpush3.msra.mxu1 %v241_v3  ;;  %713 = vmatprep.subr.mxu0 %v664_v4  ;;  %v238_v9 = vld [vmem:[%s216_s23] sm:$0xff]  ;;  %v660_v20 = vld [vmem:[%s945_s0 + $0x70] sm:$0xff]  ;;  %v661_v22 = vld [vmem:[%s945_s0 + $0x78] sm:$0xff] }
  0x13   : > { %733 = vmatprep.subr.mxu1 %v240_v5  ;;  %714 = vmatpush3.msra.mxu0 %v664_v4  ;;  %v234_v17 = vld [vmem:[%s945_s0 + $0x20] sm:$0xff]  ;;  %v236_v21 = vld [vmem:[%s945_s0 + $0x30] sm:$0xff]  ;;  %v237_v23 = vld [vmem:[%s945_s0 + $0x38] sm:$0xff] }
  0x14   : > { %734 = vmatpush3.msra.mxu1 %v240_v5  ;;  %715 = vmatprep.subr.mxu0 %v663_v6  ;;  %v682_v26 = vld [vmem:[%s219_s5] ss:$0 sm:$0xff] }
  0x15   : > { %735 = vmatprep.subr.mxu1 %v239_v7  ;;  %716 = vmatpush3.msra.mxu0 %v663_v6 }
  0x16   : > { %736 = vmatpush3.msra.mxu1 %v239_v7  ;;  %717 = vmatprep.subr.mxu0 %v662_v8 }
  0x17   : > { %737 = vmatprep.subr.mxu1 %v238_v9  ;;  %718 = vmatpush3.msra.mxu0 %v662_v8 }
  0x18   : > { %738 = vmatpush3.msra.mxu1 %v238_v9  ;;  %720 = vmatmul.mubr.msk.f32.vlgmr.msra.gmra.mxu0 %vm256_vm0, %v655_v10 }
  0x19   : > { %740 = vmatmul.mubr.msk.f32.vlgmr.msra.gmra.mxu1 %vm256_vm0, %v231_v11  ;;  %722 = vmatprep.mubr.msk.f32.mxu0 %vm256_vm0, %v656_v12 }
  0x1a   : > { %742 = vmatprep.mubr.msk.f32.mxu1 %vm256_vm0, %v232_v13 }
  0x1c   : > { %723 = vmatmul.mubr.msk.f32.gmra.mxu0 %vm256_vm0, %v657_v14 }
  0x1d   : > { %743 = vmatmul.mubr.msk.f32.gmra.mxu1 %vm256_vm0, %v233_v15  ;;  %725 = vmatprep.mubr.msk.f32.mxu0 %vm256_vm0, %v658_v16 }
  0x1e   : > { %745 = vmatprep.mubr.msk.f32.mxu1 %vm256_vm0, %v234_v17 }
  0x20   : > { %726 = vmatmul.mubr.msk.f32.gmra.mxu0 %vm256_vm0, %v659_v18 }
  0x21   : > { %746 = vmatmul.mubr.msk.f32.gmra.mxu1 %vm256_vm0, %v235_v19  ;;  %728 = vmatprep.mubr.msk.f32.mxu0 %vm256_vm0, %v660_v20 }
  0x22   : > { %748 = vmatprep.mubr.msk.f32.mxu1 %vm256_vm0, %v236_v21 }
  0x24   : > { %729 = vmatmul.mubr.msk.f32.gmra.mxu0 %vm256_vm0, %v661_v22 }
  0x25   : > { %749 = vmatmul.mubr.msk.f32.gmra.mxu1 %vm256_vm0, %v237_v23 }
  0xd8   : > { %v721_v24 = vpop.f32.mrf.mxu0 }
  0xd9   : > { %v741_v25 = vpop.f32.mrf.mxu1 }
  0xda   : > { %v482_v27 = vadd.f32 %v741_v25, %v721_v24  ;;  %v347_v28 = vpop.f32.mrf.mxu0 }
  0xdb   : > { %v476_v29 = vpop.f32.mrf.mxu1 }
  0xdc   : > { %v523_v30 = vadd.f32 %v682_v26, %v482_v27  ;;  %v477_v31 = vadd.f32 %v476_v29, %v347_v28  ;;  %v724_v32 = vpop.f32.mrf.mxu0 }
  0xdd   : > { %v744_v33 = vpop.f32.mrf.mxu1 }
  0xde   : > { %532 = vst.msk [vmem:[%s918_s8 + $0x8] sm:$0xff] %vm530_vm1, %v523_v30  ;;  %v522_v34 = vadd.f32 %v682_v26, %v477_v31  ;;  %v492_v35 = vadd.f32 %v744_v33, %v724_v32  ;;  %v357_v36 = vpop.f32.mrf.mxu0 }
  0xdf   : > { %v486_v37 = vpop.f32.mrf.mxu1 }
  0xe0   : > { %531 = vst.msk [vmem:[%s918_s8] sm:$0xff] %vm530_vm1, %v522_v34  ;;  %v525_v38 = vadd.f32 %v682_v26, %v492_v35  ;;  %v487_v39 = vadd.f32 %v486_v37, %v357_v36  ;;  %v727_v40 = vpop.f32.mrf.mxu0 }
  0xe1   : > { %v747_v41 = vpop.f32.mrf.mxu1 }
  0xe2   : > { %534 = vst.msk [vmem:[%s918_s8 + $0x18] sm:$0xff] %vm530_vm1, %v525_v38  ;;  %v524_v42 = vadd.f32 %v682_v26, %v487_v39  ;;  %v502_v43 = vadd.f32 %v747_v41, %v727_v40  ;;  %v367_v44 = vpop.f32.mrf.mxu0 }
  0xe3   : > { %v496_v45 = vpop.f32.mrf.mxu1 }
  0xe4   : > { %533 = vst.msk [vmem:[%s918_s8 + $0x10] sm:$0xff] %vm530_vm1, %v524_v42  ;;  %v527_v46 = vadd.f32 %v682_v26, %v502_v43  ;;  %v497_v47 = vadd.f32 %v496_v45, %v367_v44  ;;  %v730_v48 = vpop.f32.mrf.mxu0 }
  0xe5   : > { %v750_v49 = vpop.f32.mrf.mxu1 }
  0xe6   : > { %536 = vst.msk [vmem:[%s918_s8 + $0x28] sm:$0xff] %vm530_vm1, %v527_v46  ;;  %v526_v50 = vadd.f32 %v682_v26, %v497_v47  ;;  %v512_v51 = vadd.f32 %v750_v49, %v730_v48  ;;  %v377_v52 = vpop.f32.mrf.mxu0 }
  0xe7   : > { %v506_v53 = vpop.f32.mrf.mxu1 }
  0xe8   : > { %535 = vst.msk [vmem:[%s918_s8 + $0x20] sm:$0xff] %vm530_vm1, %v526_v50  ;;  %v529_v54 = vadd.f32 %v682_v26, %v512_v51  ;;  %v507_v55 = vadd.f32 %v506_v53, %v377_v52 }
  0xea   : > { %538 = vst.msk [vmem:[%s918_s8 + $0x38] sm:$0xff] %vm530_vm1, %v529_v54  ;;  %v528_v56 = vadd.f32 %v682_v26, %v507_v55 }
  0xec   : > { %537 = vst.msk [vmem:[%s918_s8 + $0x30] sm:$0xff] %vm530_vm1, %v528_v56 }
  0xed PF: > { %s13_s14 = sadd.s32 1, %s797_s14   ;;  %s949_s12 = smov %s793_s13 }
  0xee   : > { %p10_p5 = scmp.ge.s32.totalorder %s13_s14, 4   ;;  %s950_s13 = smov %s952_s15 }
  0xf0   :  { %12 = sbr.rel (!%p10_p5) target bundleno = 2 (0x2), region = 70 }

// kernel: gru_encoder_forward.9
= control target key start
LH: loop header
LB: loop body
LE: loop exit
PB: predicated region body
PF: predicated region fallthrough
CT: control target
= control target key end

     0   :  { %v359_v0 = vmov 0   ;;  %vm21_vm0 = vcmask 261120   ;;  %v360_v9 = vmov 0.0   ;;  %vm361_vm1 = vmmov 0   ;;  %s511_s1 = inlined_call_operand.vmem [shape: f32[8,8,1], index: 1, kind: input, shape index: {}]   ;;  %s512_s2 = inlined_call_operand.vmem [shape: f32[2,32,8], index: 2, kind: input, shape index: {}]   ;;  %s513_s0 = inlined_call_operand.vmem [shape: f32[2,8,8,32], index: 0, kind: input, shape index: {}]   ;;  %s514_s3 = inlined_call_operand.vmem [shape: f32[1,8], index: 3, kind: input, shape index: {}]   ;;  %s515_s4 = inlined_call_operand.vmem [shape: f32[8,8], index: 4, kind: output, shape index: {}]  }
   0x1   :  { %358 = vset.pattern.permute.xlu1 %v359_v0  ;;  %357 = vset.pattern.permute.xlu0 %v359_v0  ;;  %v42_v1 = vld [vmem:[%s511_s1 + $0x10] sm:$0xff]  ;;  %v40_v2 = vld [vmem:[%s511_s1] sm:$0xff]  ;;  %v43_v3 = vld [vmem:[%s511_s1 + $0x18] sm:$0xff]  ;;  %22 = vst.msk [vmem:[#allocation2] sm:$0xff] %vm21_vm0, %v360_v9  ;;  %vm309_vm2 = vcmask 64512  }
   0x2   :  { %62 = vperm.xlu1 %358, %v42_v1   ;;  %52 = vperm.xlu0 %357, %v40_v2   ;;  %v41_v4 = vld [vmem:[%s511_s1 + $0x8] sm:$0xff]  ;;  %v44_v6 = vld [vmem:[%s511_s1 + $0x20] sm:$0xff]  ;;  %v47_v7 = vld [vmem:[%s511_s1 + $0x38] sm:$0xff]  ;;  %23 = vst.msk [vmem:[#allocation2 + $0x8] sm:$0xff] %vm21_vm0, %v360_v9 }
   0x3   :  { %v45_v5 = vld [vmem:[%s511_s1 + $0x28] sm:$0xff]  ;;  %v46_v8 = vld [vmem:[%s511_s1 + $0x30] sm:$0xff]  ;;  %332 = vmatprep.subr.mxu0 %v360_v9  ;;  %343 = vmatprep.subr.mxu1 %v360_v9  ;;  %v318_v10 = vld [vmem:[%s512_s2 + $0x38] sm:$0xff] }
   0x4   :  { %v149_v11 = vld [vmem:[%s512_s2 + $0x18] sm:$0xff]  ;;  %v317_v12 = vld [vmem:[%s512_s2 + $0x30] sm:$0xff]  ;;  %333 = vmatpush3.msra.mxu0 %v318_v10  ;;  %v316_v14 = vld [vmem:[%s512_s2 + $0x28] sm:$0xff]  ;;  %340 = vmatprep.mubr.msk.f32.mxu0 %vm361_vm1, %v360_v9 }
   0x5   :  { %344 = vmatpush3.msra.mxu1 %v149_v11  ;;  %v148_v13 = vld [vmem:[%s512_s2 + $0x10] sm:$0xff]  ;;  %334 = vmatprep.subr.mxu0 %v360_v9  ;;  %v147_v15 = vld [vmem:[%s512_s2 + $0x8] sm:$0xff]  ;;  %v315_v16 = vld [vmem:[%s512_s2 + $0x20] sm:$0xff] }
   0x6   :  { %67 = vperm.xlu1 %358, %v43_v3   ;;  %57 = vperm.xlu0 %357, %v41_v4   ;;  %v146_v17 = vld [vmem:[%s512_s2] sm:$0xff]  ;;  %v26_v22 = vld [vmem:[%s513_s0 + $0x10] sm:$0xff]  ;;  %v25_v26 = vld [vmem:[%s513_s0 + $0x8] sm:$0xff] }
   0x7   :  { %345 = vmatprep.subr.mxu1 %v360_v9  ;;  %335 = vmatpush3.msra.mxu0 %v317_v12  ;;  %v24_v18 = vld [vmem:[%s513_s0] sm:$0xff]  ;;  %v34_v23 = vld [vmem:[%s513_s0 + $0x50] sm:$0xff]  ;;  %v33_v27 = vld [vmem:[%s513_s0 + $0x48] sm:$0xff] }
   0x8   :  { %346 = vmatpush3.msra.mxu1 %v148_v13  ;;  %336 = vmatprep.subr.mxu0 %v360_v9  ;;  %v32_v19 = vld [vmem:[%s513_s0 + $0x40] sm:$0xff]  ;;  %v27_v29 = vld [vmem:[%s513_s0 + $0x18] sm:$0xff]  ;;  %v29_v47 = vld [vmem:[%s513_s0 + $0x28] sm:$0xff] }
   0x9   :  { %347 = vmatprep.subr.mxu1 %v360_v9  ;;  %337 = vmatpush3.msra.mxu0 %v316_v14  ;;  %v35_v30 = vld [vmem:[%s513_s0 + $0x58] sm:$0xff]  ;;  %v28_v38 = vld [vmem:[%s513_s0 + $0x20] sm:$0xff]  ;;  %v37_v48 = vld [vmem:[%s513_s0 + $0x68] sm:$0xff] }
   0xa   :  { %77 = vperm.xlu1 %358, %v45_v5   ;;  %72 = vperm.xlu0 %357, %v44_v6   ;;  %v36_v39 = vld [vmem:[%s513_s0 + $0x60] sm:$0xff]  ;;  %v30_v56 = vld [vmem:[%s513_s0 + $0x30] sm:$0xff]  ;;  %v31_v1 = vld [vmem:[%s513_s0 + $0x38] sm:$0xff] }
   0xb   :  { %348 = vmatpush3.msra.mxu1 %v147_v15  ;;  %338 = vmatprep.subr.mxu0 %v360_v9  ;;  %v38_v57 = vld [vmem:[%s513_s0 + $0x70] sm:$0xff]  ;;  %v39_v2 = vld [vmem:[%s513_s0 + $0x78] sm:$0xff] }
   0xc   :  { %349 = vmatprep.subr.mxu1 %v360_v9  ;;  %339 = vmatpush3.msra.mxu0 %v315_v16 }
   0xd   :  { %350 = vmatpush3.msra.mxu1 %v146_v17  ;;  %351 = vmatprep.mubr.msk.f32.mxu1 %vm361_vm1, %v360_v9 }
   0xe   :  { %87 = vperm.xlu1 %358, %v47_v7   ;;  %82 = vperm.xlu0 %357, %v46_v8  }
  0x7d   :  { %v63_v20 = vpop.permute.xlu1 %62  ;;  %v53_v21 = vpop.permute.xlu0 %52 }
  0x7e   :  { %v90_v24 = vmul.f32 %v53_v21, %v24_v18  ;;  %v98_v25 = vmul.f32 %v53_v21, %v32_v19  ;;  %v92_v32 = vmul.f32 %v63_v20, %v26_v22  ;;  %v100_v33 = vmul.f32 %v63_v20, %v34_v23  ;;  %v48_v22 = vld [vmem:[#allocation2] sm:$0xff]  ;;  %v49_v23 = vld [vmem:[#allocation2 + $0x8] sm:$0xff] }
  0x80   :  { %v107_v36 = vsel %vm21_vm0, %v90_v24, 0.0  ;;  %v122_v37 = vsel %vm21_vm0, %v98_v25, 0.0  ;;  %v110_v50 = vsel %vm21_vm0, %v92_v32, 0.0  ;;  %v125_v51 = vsel %vm21_vm0, %v100_v33, 0.0  ;;  %v321_v32 = vld [vmem:[%s514_s3] ss:$0 sm:$0xff] }
  0x81   :  { %v68_v28 = vpop.permute.xlu1 %67  ;;  %v58_v31 = vpop.permute.xlu0 %57 }
  0x82   :  { %v91_v34 = vmul.f32 %v58_v31, %v25_v26  ;;  %v99_v35 = vmul.f32 %v58_v31, %v33_v27  ;;  %v93_v40 = vmul.f32 %v68_v28, %v27_v29  ;;  %v101_v41 = vmul.f32 %v68_v28, %v35_v30 }
  0x84   :  { %v108_v42 = vsel %vm21_vm0, %v91_v34, 0.0  ;;  %v123_v43 = vsel %vm21_vm0, %v99_v35, 0.0  ;;  %v112_v58 = vsel %vm21_vm0, %v93_v40, 0.0  ;;  %v127_v59 = vsel %vm21_vm0, %v101_v41, 0.0 }
  0x85   :  { %v109_v44 = vadd.f32 %v108_v42, %v107_v36  ;;  %v124_v45 = vadd.f32 %v123_v43, %v122_v37  ;;  %v78_v46 = vpop.permute.xlu1 %77  ;;  %v73_v49 = vpop.permute.xlu0 %72 }
  0x86   :  { %v94_v52 = vmul.f32 %v73_v49, %v28_v38  ;;  %v102_v53 = vmul.f32 %v73_v49, %v36_v39  ;;  %v95_v60 = vmul.f32 %v78_v46, %v29_v47  ;;  %v103_v61 = vmul.f32 %v78_v46, %v37_v48 }
  0x87   :  { %v111_v54 = vadd.f32 %v110_v50, %v109_v44  ;;  %v126_v55 = vadd.f32 %v125_v51, %v124_v45 }
  0x88   :  { %v114_v4 = vsel %vm21_vm0, %v94_v52, 0.0  ;;  %v129_v5 = vsel %vm21_vm0, %v102_v53, 0.0  ;;  %v116_v10 = vsel %vm21_vm0, %v95_v60, 0.0  ;;  %v131_v11 = vsel %vm21_vm0, %v103_v61, 0.0 }
  0x89   :  { %v113_v62 = vadd.f32 %v112_v58, %v111_v54  ;;  %v128_v63 = vadd.f32 %v127_v59, %v126_v55  ;;  %v88_v0 = vpop.permute.xlu1 %87  ;;  %v83_v3 = vpop.permute.xlu0 %82 }
  0x8a   :  { %v96_v6 = vmul.f32 %v83_v3, %v30_v56  ;;  %v104_v7 = vmul.f32 %v83_v3, %v38_v57  ;;  %v97_v12 = vmul.f32 %v88_v0, %v31_v1  ;;  %v105_v13 = vmul.f32 %v88_v0, %v39_v2 }
  0x8b   :  { %v115_v8 = vadd.f32 %v114_v4, %v113_v62  ;;  %v130_v9 = vadd.f32 %v129_v5, %v128_v63 }
  0x8c   :  { %v118_v16 = vsel %vm21_vm0, %v96_v6, 0.0  ;;  %v133_v17 = vsel %vm21_vm0, %v104_v7, 0.0  ;;  %v120_v20 = vsel %vm21_vm0, %v97_v12, 0.0  ;;  %v135_v21 = vsel %vm21_vm0, %v105_v13, 0.0 }
  0x8d   :  { %v117_v14 = vadd.f32 %v116_v10, %v115_v8  ;;  %v132_v15 = vadd.f32 %v131_v11, %v130_v9 }
  0x8f   :  { %v119_v18 = vadd.f32 %v118_v16, %v117_v14  ;;  %v134_v19 = vadd.f32 %v133_v17, %v132_v15 }
  0x91   :  { %v121_v24 = vadd.f32 %v120_v20, %v119_v18  ;;  %v136_v25 = vadd.f32 %v135_v21, %v134_v19 }
  0x93   :  { %v137_v26 = vadd.f32 %v121_v24, %v48_v22  ;;  %v138_v27 = vadd.f32 %v136_v25, %v49_v23 }
  0x95   :  { %139 = vst.msk [vmem:[#allocation2] sm:$0xff] %vm21_vm0, %v137_v26  ;;  %140 = vst.msk [vmem:[#allocation2 + $0x8] sm:$0xff] %vm21_vm0, %v138_v27 }
  0x9c   :  { %v145_v28 = vld [vmem:[#allocation2 + $0x8] sm:$0xff]  ;;  %v144_v29 = vld [vmem:[#allocation2] sm:$0xff] }
  0x9d   :  { %341 = vmatmul.mubr.msk.f32.vlgmr.msra.gmra.mxu0 %vm21_vm0, %v145_v28  ;;  %352 = vmatmul.mubr.msk.f32.vlgmr.msra.gmra.mxu1 %vm21_vm0, %v144_v29 }
 0x15d   :  { %v224_v30 = vpop.f32.mrf.mxu0  ;;  %v297_v31 = vpop.f32.mrf.mxu1 }
 0x15e   :  { %v298_v33 = vadd.f32 %v297_v31, %v224_v30 }
 0x15f   :  { %v342_v34 = vpop.f32.mrf.mxu0  ;;  %v353_v35 = vpop.f32.mrf.mxu1 }
 0x160   :  { %v308_v36 = vadd.f32 %v321_v32, %v298_v33 }
 0x162   :  { %310 = vst.msk [vmem:[%s515_s4] sm:$0xff] %vm309_vm2, %v308_v36 }

// kernel: gru_encoder_forward.6
= control target key start
LH: loop header
LB: loop body
LE: loop exit
PB: predicated region body
PF: predicated region fallthrough
CT: control target
= control target key end

     0   :  { %s2613_s12 = smov 0   ;;  %s2615_s13 = smov 0   ;;  %s2985_s0 = inlined_call_operand.vmem [shape: f32[2,64,96], index: 0, kind: input, shape index: {}]   ;;  %s2986_s1 = inlined_call_operand.vmem [shape: f32[2,32,96], index: 1, kind: input, shape index: {}]   ;;  %s2987_s2 = inlined_call_operand.vmem [shape: f32[2,1,96], index: 2, kind: input, shape index: {}]   ;;  %s2988_s3 = inlined_call_operand.vmem [shape: f32[2,64,32], index: 3, kind: output, shape index: {}]  }
   0x1   :  { %s2617_s14 = smov 0  }
   0x2 LB: > { %s25_s15 = sadd.s32 1, %s2576_s13  ;;  %p2125_p0 = scmp.ge.s32.totalorder %s2580_s14, 1  ;;  %s2580_s14 = sphi %s2617_s14, %s13_s14   ;;  %s2576_s13 = sphi %s2615_s13, %s2990_s13   ;;  %s2572_s12 = sphi %s2613_s12, %s2989_s12  }
   0x3   : > { %p27_p1 = scmp.ge.s32.totalorder %s25_s15, 2  ;;  %p200_p2 = scmp.lt.s32.totalorder %s2580_s14, 3 }
   0x5   : > { %s2992_s15 = smov (%p27_p1, %s25_s15), 0  ;;  %p201_p3 = pnand %p2125_p0, %p200_p2 }
   0x6   : > { %p253_p4 = scmp.lt.s32.totalorder (!%p201_p3), %s2572_s12, 1  ;;  %p2132_p5 = scmp.ne.s32.totalorder (!%p201_p3), %s2572_s12, 0 }
   0x7   : > { %204 = sbr.rel (%p201_p3) target bundleno = 10885 (0x2a85), region = 32 }
   0xc   : > { %vm296_vm0 = vcmask 261120   ;;  %v2582_v0 = vmov 0.0   ;;  %s254_s16 = scalar_select %p253_p4, %s2572_s12, 1 }
   0xd   : > { %297 = vst.msk [vmem:[#allocation2] sm:$0xff] %vm296_vm0, %v2582_v0  ;;  %306 = sbr.rel (%p2132_p5) target bundleno = 5448 (0x1548), region = 40  ;;  %s2585_s4 = smov (!%p2132_p5), 64  }
   0xe   : > { %s2168_s17 = sshll.u32 %s254_s16, 6  ;;  %s2169_s18 = sshll.u32 %s254_s16, 5 }
   0xf   : > { %s2639_s21 = scalar_lea.vmem %s2985_s0, %s2168_s17  ;;  %s270_s24 = scalar_lea.vmem %s2986_s1, %s2169_s18 }
  0x10   : > { %s273_s27 = scalar_lea.vmem %s2987_s2, %s254_s16  ;;  %s2650_s30 = scalar_lea.vmem %s2988_s3, %s2168_s17  ;;  %v2652_v1 = vld [vmem:[%s270_s24] sm:$0xff]  ;;  %v2654_v2 = vld [vmem:[%s270_s24 + $0x8] sm:$0xff]  ;;  %v2656_v3 = vld [vmem:[%s270_s24 + $0x10] sm:$0xff] }
  0x11   : > { %v2658_v4 = vld [vmem:[%s270_s24 + $0x18] sm:$0xff]  ;;  %v2660_v5 = vld [vmem:[%s273_s27] sm:$0x1]  ;;  %s2586_s5 = smov (!%p2132_p5), 96   ;;  %s2587_s6 = smov (!%p2132_p5), 32  }
  0x12   : > { %v2583_v6 = vmov 0.0   ;;  %vm2584_vm1 = vmmov 0   ;;  %v310_v8 = vlaneseq  ;;  %v308_v15 = vld [vmem:[%s2639_s21] sm:$0xff]  ;;  %v423_v36 = vld [vmem:[%s2639_s21 + $0x8] sm:$0xff]  ;;  %v527_v56 = vld [vmem:[%s2639_s21 + $0x10] sm:$0xff] }
  0x13   : > { %2251 = vmatprep.subr.mxu0 %v2583_v6  ;;  %2259 = vmatprep.mubr.msk.f32.mxu0 %vm2584_vm1, %v2583_v6 }
  0x14   : > { %2252 = vmatpush3.msra.mxu0 %v2658_v4  ;;  %2262 = vmatprep.subr.mxu1 %v2583_v6  ;;  %v307_v7 = vld [vmem:[#allocation2] sm:$0xff]  ;;  %v311_v9 = vshrl.u32 %v310_v8, 7 }
  0x15   : > { %2253 = vmatprep.subr.mxu0 %v2583_v6  ;;  %2263 = vmatpush3.msra.mxu1 %v2658_v4 }
  0x16   : > { %2254 = vmatpush3.msra.mxu0 %v2656_v3  ;;  %2264 = vmatprep.subr.mxu1 %v2583_v6  ;;  %v312_v10 = vsub.s32 0, %v311_v9 }
  0x17   : > { %2255 = vmatprep.subr.mxu0 %v2583_v6  ;;  %2265 = vmatpush3.msra.mxu1 %v2656_v3 }
  0x18   : > { %2256 = vmatpush3.msra.mxu0 %v2654_v2  ;;  %2266 = vmatprep.subr.mxu1 %v2583_v6  ;;  %v2697_v11 = vrot.slane %v2660_v5, %v312_v10 }
  0x19   : > { %2257 = vmatprep.subr.mxu0 %v2583_v6  ;;  %2267 = vmatpush3.msra.mxu1 %v2654_v2 }
  0x1a   : > { %2258 = vmatpush3.msra.mxu0 %v2652_v1  ;;  %2268 = vmatprep.subr.mxu1 %v2583_v6 }
  0x1b   : > { %2260 = vmatmul.mubr.msk.f32.vlgmr.msra.gmra.mxu0 %vm296_vm0, %v307_v7  ;;  %2269 = vmatpush3.msra.mxu1 %v2652_v1 }
  0x1c   : > { %2270 = vmatprep.mubr.msk.f32.mxu1 %vm2584_vm1, %v2583_v6  ;;  %2273 = vmatprep.subr.mxu0 %v2583_v6 }
  0x1d   : > { %2274 = vmatpush3.msra.mxu0 %v2658_v4  ;;  %2281 = vmatprep.mubr.msk.f32.mxu0 %vm2584_vm1, %v2583_v6 }
  0x1e   : > { %2275 = vmatprep.subr.mxu0 %v2583_v6  ;;  %2284 = vmatprep.subr.mxu1 %v2583_v6 }
  0x1f   : > { %2276 = vmatpush3.msra.mxu0 %v2656_v3 }
  0x20   : > { %2277 = vmatprep.subr.mxu0 %v2583_v6 }
  0x21   : > { %2278 = vmatpush3.msra.mxu0 %v2654_v2 }
  0x22   : > { %2279 = vmatprep.subr.mxu0 %v2583_v6 }
  0x23   : > { %2280 = vmatpush3.msra.mxu0 %v2652_v1 }
  0x24   : > { %2295 = vmatprep.subr.mxu0 %v2583_v6 }
  0xdb   : > { %v385_v12 = vpop.f32.mrf.mxu0 }
  0xdc   : > { %v386_v13 = vadd.f32 %v385_v12, %v2697_v11 }
  0xdd   : > { %v2261_v14 = vpop.f32.mrf.mxu0 }
  0xde   : > { %397 = vrot.lane.b32.xlu0 %v386_v13, %s2585_s4  ;;  %v389_v16 = vadd.f32 %v386_v13, %v308_v15 }
  0xe0   : > { %v2134_v17 = vmul.f32 -1.442695, %v389_v16 }
  0xe2   : > { %2462 = vpow2.f32 %v2134_v17 }
  0xef   : > { %v2463_v18 = vpop.eup %2462 }
  0xf0   : > { %v393_v19 = vadd.f32 1.0, %v2463_v18 }
  0xf2   : > { %2464 = vrcp.f32 %v393_v19  ;;  %v631_v19 = vld [vmem:[%s2639_s21 + $0x18] sm:$0xff] }
  0xff   : > { %v2465_v20 = vpop.eup %2464 }
 0x100   : > { %v407_v27 = vsub.f32 1.0, %v2465_v20 }
 0x150   : > { %v398_v21 = vpop.permute.xlu0 %397 }
 0x151   : > { %v400_v22 = vmul.f32 %v2465_v20, %v398_v21 }
 0x153   : > { %402 = vrot.lane.b32.xlu0 %v400_v22, %s2585_s4 }
 0x1c5   : > { %v403_v23 = vpop.permute.xlu0 %402 }
 0x1c6   : > { %v405_v24 = vadd.f32 %v403_v23, %v308_v15 }
 0x1c8   : > { %2466 = vtanh.f32 %v405_v24 }
 0x1d5   : > { %v2467_v25 = vpop.eup %2466 }
 0x1d6   : > { %409 = vrot.lane.b32.xlu1 %v2467_v25, %s2586_s5 }
 0x1da   : > { %413 = vrot.lane.b32.xlu1 %v307_v7, %s2587_s6 }
 0x248   : > { %v410_v26 = vpop.permute.xlu1 %409 }
 0x249   : > { %v412_v29 = vmul.f32 %v410_v26, %v407_v27 }
 0x24c   : > { %v414_v28 = vpop.permute.xlu1 %413 }
 0x24d   : > { %v416_v30 = vmul.f32 %v2465_v20, %v414_v28 }
 0x24f   : > { %v417_v31 = vadd.f32 %v416_v30, %v412_v29 }
 0x251   : > { %419 = vrot.lane.b32.xlu0 %v417_v31, %s2586_s5 }
 0x2c3   : > { %v420_v32 = vpop.permute.xlu0 %419 }
 0x2c4   : > { %422 = vst.msk [vmem:[%s2650_s30] sm:$0xff] %vm296_vm0, %v420_v32  ;;  %2271 = vmatmul.mubr.msk.f32.vlgmr.msra.gmra.mxu1 %vm296_vm0, %v420_v32 }
 0x2c5   : > { %2285 = vmatpush3.msra.mxu1 %v2658_v4  ;;  %2292 = vmatprep.mubr.msk.f32.mxu1 %vm2584_vm1, %v2583_v6 }
 0x2c6   : > { %2286 = vmatprep.subr.mxu1 %v2583_v6 }
 0x2c7   : > { %2287 = vmatpush3.msra.mxu1 %v2656_v3 }
 0x2c8   : > { %2288 = vmatprep.subr.mxu1 %v2583_v6 }
 0x2c9   : > { %2289 = vmatpush3.msra.mxu1 %v2654_v2 }
 0x2ca   : > { %2290 = vmatprep.subr.mxu1 %v2583_v6 }
 0x2cb   : > { %2291 = vmatpush3.msra.mxu1 %v2652_v1 }
 0x2cc   : > { %2306 = vmatprep.subr.mxu1 %v2583_v6 }
 0x384   : > { %v492_v33 = vpop.f32.mrf.mxu1 }
 0x385   : > { %v493_v34 = vadd.f32 %v492_v33, %v2697_v11 }
 0x386   : > { %v2272_v35 = vpop.f32.mrf.mxu1 }
 0x387   : > { %504 = vrot.lane.b32.xlu1 %v493_v34, %s2585_s4  ;;  %v496_v37 = vadd.f32 %v493_v34, %v423_v36 }
 0x389   : > { %v2136_v38 = vmul.f32 -1.442695, %v496_v37 }
 0x38b   : > { %2468 = vpow2.f32 %v2136_v38 }
 0x398   : > { %v2469_v39 = vpop.eup %2468 }
 0x399   : > { %v500_v40 = vadd.f32 1.0, %v2469_v39  ;;  %v735_v39 = vld [vmem:[%s2639_s21 + $0x20] sm:$0xff] }
 0x39b   : > { %2470 = vrcp.f32 %v500_v40 }
 0x3a8   : > { %v2471_v41 = vpop.eup %2470 }
 0x3a9   : > { %v514_v47 = vsub.f32 1.0, %v2471_v41  ;;  %v520_v49 = vmul.f32 %v2471_v41, %v417_v31 }
 0x3f9   : > { %v505_v42 = vpop.permute.xlu1 %504 }
 0x3fa   : > { %v507_v43 = vmul.f32 %v2471_v41, %v505_v42 }
 0x3fc   : > { %509 = vrot.lane.b32.xlu0 %v507_v43, %s2585_s4 }
 0x46e   : > { %v510_v44 = vpop.permute.xlu0 %509 }
 0x46f   : > { %v512_v45 = vadd.f32 %v510_v44, %v423_v36 }
 0x471   : > { %2472 = vtanh.f32 %v512_v45 }
 0x47e   : > { %v2473_v46 = vpop.eup %2472 }
 0x47f   : > { %516 = vrot.lane.b32.xlu1 %v2473_v46, %s2586_s5 }
 0x4f1   : > { %v517_v48 = vpop.permute.xlu1 %516 }
 0x4f2   : > { %v519_v50 = vmul.f32 %v517_v48, %v514_v47 }
 0x4f4   : > { %v521_v51 = vadd.f32 %v520_v49, %v519_v50 }
 0x4f6   : > { %523 = vrot.lane.b32.xlu0 %v521_v51, %s2586_s5 }
 0x568   : > { %v524_v52 = vpop.permute.xlu0 %523 }
 0x569   : > { %526 = vst.msk [vmem:[%s2650_s30 + $0x8] sm:$0xff] %vm296_vm0, %v524_v52  ;;  %2282 = vmatmul.mubr.msk.f32.vlgmr.msra.gmra.mxu0 %vm296_vm0, %v524_v52 }
 0x56a   : > { %2296 = vmatpush3.msra.mxu0 %v2658_v4  ;;  %2303 = vmatprep.mubr.msk.f32.mxu0 %vm2584_vm1, %v2583_v6 }
 0x56b   : > { %2297 = vmatprep.subr.mxu0 %v2583_v6 }
 0x56c   : > { %2298 = vmatpush3.msra.mxu0 %v2656_v3 }
 0x56d   : > { %2299 = vmatprep.subr.mxu0 %v2583_v6 }
 0x56e   : > { %2300 = vmatpush3.msra.mxu0 %v2654_v2 }
 0x56f   : > { %2301 = vmatprep.subr.mxu0 %v2583_v6 }
 0x570   : > { %2302 = vmatpush3.msra.mxu0 %v2652_v1 }
 0x571   : > { %2317 = vmatprep.subr.mxu0 %v2583_v6 }
 0x629   : > { %v596_v53 = vpop.f32.mrf.mxu0 }
 0x62a   : > { %v597_v54 = vadd.f32 %v596_v53, %v2697_v11 }
 0x62b   : > { %v2283_v55 = vpop.f32.mrf.mxu0 }
 0x62c   : > { %608 = vrot.lane.b32.xlu1 %v597_v54, %s2585_s4  ;;  %v600_v57 = vadd.f32 %v597_v54, %v527_v56 }
 0x62e   : > { %v2138_v58 = vmul.f32 -1.442695, %v600_v57 }
 0x630   : > { %2474 = vpow2.f32 %v2138_v58 }
 0x63d   : > { %v2475_v59 = vpop.eup %2474 }
 0x63e   : > { %v604_v60 = vadd.f32 1.0, %v2475_v59  ;;  %v839_v59 = vld [vmem:[%s2639_s21 + $0x28] sm:$0xff] }
 0x640   : > { %2476 = vrcp.f32 %v604_v60 }
 0x64d   : > { %v2477_v61 = vpop.eup %2476 }
 0x64e   : > { %v618_v9 = vsub.f32 1.0, %v2477_v61  ;;  %v624_v12 = vmul.f32 %v2477_v61, %v521_v51 }
 0x69e   : > { %v609_v62 = vpop.permute.xlu1 %608 }
 0x69f   : > { %v611_v63 = vmul.f32 %v2477_v61, %v609_v62 }
 0x6a1   : > { %613 = vrot.lane.b32.xlu0 %v611_v63, %s2585_s4 }
 0x713   : > { %v614_v0 = vpop.permute.xlu0 %613 }
 0x714   : > { %v616_v7 = vadd.f32 %v614_v0, %v527_v56 }
 0x716   : > { %2478 = vtanh.f32 %v616_v7 }
 0x723   : > { %v2479_v8 = vpop.eup %2478 }
 0x724   : > { %620 = vrot.lane.b32.xlu1 %v2479_v8, %s2586_s5 }
 0x796   : > { %v621_v10 = vpop.permute.xlu1 %620 }
 0x797   : > { %v623_v13 = vmul.f32 %v621_v10, %v618_v9 }
 0x799   : > { %v625_v14 = vadd.f32 %v624_v12, %v623_v13 }
 0x79b   : > { %627 = vrot.lane.b32.xlu0 %v625_v14, %s2586_s5 }
 0x80d   : > { %v628_v15 = vpop.permute.xlu0 %627 }
 0x80e   : > { %630 = vst.msk [vmem:[%s2650_s30 + $0x10] sm:$0xff] %vm296_vm0, %v628_v15  ;;  %2293 = vmatmul.mubr.msk.f32.vlgmr.msra.gmra.mxu1 %vm296_vm0, %v628_v15 }
 0x80f   : > { %2307 = vmatpush3.msra.mxu1 %v2658_v4  ;;  %2314 = vmatprep.mubr.msk.f32.mxu1 %vm2584_vm1, %v2583_v6 }
 0x810   : > { %2308 = vmatprep.subr.mxu1 %v2583_v6 }
 0x811   : > { %2309 = vmatpush3.msra.mxu1 %v2656_v3 }
 0x812   : > { %2310 = vmatprep.subr.mxu1 %v2583_v6 }
 0x813   : > { %2311 = vmatpush3.msra.mxu1 %v2654_v2 }
 0x814   : > { %2312 = vmatprep.subr.mxu1 %v2583_v6 }
 0x815   : > { %2313 = vmatpush3.msra.mxu1 %v2652_v1 }
 0x816   : > { %2328 = vmatprep.subr.mxu1 %v2583_v6 }
 0x8ce   : > { %v700_v16 = vpop.f32.mrf.mxu1 }
 0x8cf   : > { %v701_v17 = vadd.f32 %v700_v16, %v2697_v11 }
 0x8d0   : > { %v2294_v18 = vpop.f32.mrf.mxu1 }
 0x8d1   : > { %712 = vrot.lane.b32.xlu1 %v701_v17, %s2585_s4  ;;  %v704_v20 = vadd.f32 %v701_v17, %v631_v19 }
 0x8d3   : > { %v2140_v21 = vmul.f32 -1.442695, %v704_v20 }
 0x8d5   : > { %2480 = vpow2.f32 %v2140_v21  ;;  %v943_v21 = vld [vmem:[%s2639_s21 + $0x30] sm:$0xff] }
 0x8e2   : > { %v2481_v22 = vpop.eup %2480 }
 0x8e3   : > { %v708_v23 = vadd.f32 1.0, %v2481_v22 }
 0x8e5   : > { %2482 = vrcp.f32 %v708_v23 }
 0x8f2   : > { %v2483_v24 = vpop.eup %2482 }
 0x8f3   : > { %v722_v30 = vsub.f32 1.0, %v2483_v24  ;;  %v728_v32 = vmul.f32 %v2483_v24, %v625_v14 }
 0x943   : > { %v713_v25 = vpop.permute.xlu1 %712 }
 0x944   : > { %v715_v26 = vmul.f32 %v2483_v24, %v713_v25 }
 0x946   : > { %717 = vrot.lane.b32.xlu0 %v715_v26, %s2585_s4 }
 0x9b8   : > { %v718_v27 = vpop.permute.xlu0 %717 }
 0x9b9   : > { %v720_v28 = vadd.f32 %v718_v27, %v631_v19 }
 0x9bb   : > { %2484 = vtanh.f32 %v720_v28 }
 0x9c8   : > { %v2485_v29 = vpop.eup %2484 }
 0x9c9   : > { %724 = vrot.lane.b32.xlu1 %v2485_v29, %s2586_s5 }
 0xa3b   : > { %v725_v31 = vpop.permute.xlu1 %724 }
 0xa3c   : > { %v727_v33 = vmul.f32 %v725_v31, %v722_v30 }
 0xa3e   : > { %v729_v34 = vadd.f32 %v728_v32, %v727_v33 }
 0xa40   : > { %731 = vrot.lane.b32.xlu0 %v729_v34, %s2586_s5 }
 0xab2   : > { %v732_v35 = vpop.permute.xlu0 %731 }
 0xab3   : > { %734 = vst.msk [vmem:[%s2650_s30 + $0x18] sm:$0xff] %vm296_vm0, %v732_v35  ;;  %2304 = vmatmul.mubr.msk.f32.vlgmr.msra.gmra.mxu0 %vm296_vm0, %v732_v35 }
 0xab4   : > { %2318 = vmatpush3.msra.mxu0 %v2658_v4  ;;  %2325 = vmatprep.mubr.msk.f32.mxu0 %vm2584_vm1, %v2583_v6 }
 0xab5   : > { %2319 = vmatprep.subr.mxu0 %v2583_v6 }
 0xab6   : > { %2320 = vmatpush3.msra.mxu0 %v2656_v3 }
 0xab7   : > { %2321 = vmatprep.subr.mxu0 %v2583_v6 }
 0xab8   : > { %2322 = vmatpush3.msra.mxu0 %v2654_v2 }
 0xab9   : > { %2323 = vmatprep.subr.mxu0 %v2583_v6 }
 0xaba   : > { %2324 = vmatpush3.msra.mxu0 %v2652_v1 }
 0xb73   : > { %v804_v36 = vpop.f32.mrf.mxu0 }
 0xb74   : > { %v805_v37 = vadd.f32 %v804_v36, %v2697_v11 }
 0xb75   : > { %v2305_v38 = vpop.f32.mrf.mxu0 }
 0xb76   : > { %816 = vrot.lane.b32.xlu1 %v805_v37, %s2585_s4  ;;  %v808_v40 = vadd.f32 %v805_v37, %v735_v39 }
 0xb78   : > { %v2142_v41 = vmul.f32 -1.442695, %v808_v40 }
 0xb7a   : > { %2486 = vpow2.f32 %v2142_v41  ;;  %v1047_v41 = vld [vmem:[%s2639_s21 + $0x38] sm:$0xff] }
 0xb87   : > { %v2487_v42 = vpop.eup %2486 }
 0xb88   : > { %v812_v43 = vadd.f32 1.0, %v2487_v42 }
 0xb8a   : > { %2488 = vrcp.f32 %v812_v43 }
 0xb97   : > { %v2489_v44 = vpop.eup %2488 }
 0xb98   : > { %v826_v50 = vsub.f32 1.0, %v2489_v44  ;;  %v832_v52 = vmul.f32 %v2489_v44, %v729_v34 }
 0xbe8   : > { %v817_v45 = vpop.permute.xlu1 %816 }
 0xbe9   : > { %v819_v46 = vmul.f32 %v2489_v44, %v817_v45 }
 0xbeb   : > { %821 = vrot.lane.b32.xlu0 %v819_v46, %s2585_s4 }
 0xc5d   : > { %v822_v47 = vpop.permute.xlu0 %821 }
 0xc5e   : > { %v824_v48 = vadd.f32 %v822_v47, %v735_v39 }
 0xc60   : > { %2490 = vtanh.f32 %v824_v48 }
 0xc6d   : > { %v2491_v49 = vpop.eup %2490 }
 0xc6e   : > { %828 = vrot.lane.b32.xlu1 %v2491_v49, %s2586_s5 }
 0xce0   : > { %v829_v51 = vpop.permute.xlu1 %828 }
 0xce1   : > { %v831_v53 = vmul.f32 %v829_v51, %v826_v50 }
 0xce3   : > { %v833_v54 = vadd.f32 %v832_v52, %v831_v53 }
 0xce5   : > { %835 = vrot.lane.b32.xlu0 %v833_v54, %s2586_s5 }
 0xd57   : > { %v836_v55 = vpop.permute.xlu0 %835 }
 0xd58   : > { %838 = vst.msk [vmem:[%s2650_s30 + $0x20] sm:$0xff] %vm296_vm0, %v836_v55  ;;  %2315 = vmatmul.mubr.msk.f32.vlgmr.msra.gmra.mxu1 %vm296_vm0, %v836_v55 }
 0xd59   : > { %2329 = vmatpush3.msra.mxu1 %v2658_v4  ;;  %2336 = vmatprep.mubr.msk.f32.mxu1 %vm2584_vm1, %v2583_v6 }
 0xd5a   : > { %2330 = vmatprep.subr.mxu1 %v2583_v6 }
 0xd5b   : > { %2331 = vmatpush3.msra.mxu1 %v2656_v3 }
 0xd5c   : > { %2332 = vmatprep.subr.mxu1 %v2583_v6 }
 0xd5d   : > { %2333 = vmatpush3.msra.mxu1 %v2654_v2 }
 0xd5e   : > { %2334 = vmatprep.subr.mxu1 %v2583_v6 }
 0xd5f   : > { %2335 = vmatpush3.msra.mxu1 %v2652_v1 }
 0xe18   : > { %v908_v56 = vpop.f32.mrf.mxu1 }
 0xe19   : > { %v909_v57 = vadd.f32 %v908_v56, %v2697_v11 }
 0xe1a   : > { %v2316_v58 = vpop.f32.mrf.mxu1 }
 0xe1b   : > { %920 = vrot.lane.b32.xlu1 %v909_v57, %s2585_s4  ;;  %v912_v60 = vadd.f32 %v909_v57, %v839_v59 }
 0xe1d   : > { %v2144_v61 = vmul.f32 -1.442695, %v912_v60 }
 0xe1f   : > { %2492 = vpow2.f32 %v2144_v61 }
 0xe2c   : > { %v2493_v62 = vpop.eup %2492 }
 0xe2d   : > { %v916_v63 = vadd.f32 1.0, %v2493_v62 }
 0xe2f   : > { %2494 = vrcp.f32 %v916_v63 }
 0xe3c   : > { %v2495_v0 = vpop.eup %2494 }
 0xe3d   : > { %v930_v12 = vsub.f32 1.0, %v2495_v0  ;;  %v936_v14 = vmul.f32 %v2495_v0, %v833_v54 }
 0xe8d   : > { %v921_v7 = vpop.permute.xlu1 %920 }
 0xe8e   : > { %v923_v8 = vmul.f32 %v2495_v0, %v921_v7 }
 0xe90   : > { %925 = vrot.lane.b32.xlu0 %v923_v8, %s2585_s4 }
 0xf02   : > { %v926_v6 = vpop.permute.xlu0 %925 }
 0xf03   : > { %v928_v9 = vadd.f32 %v926_v6, %v839_v59 }
 0xf05   : > { %2496 = vtanh.f32 %v928_v9 }
 0xf12   : > { %v2497_v10 = vpop.eup %2496 }
 0xf13   : > { %932 = vrot.lane.b32.xlu1 %v2497_v10, %s2586_s5 }
 0xf85   : > { %v933_v13 = vpop.permute.xlu1 %932 }
 0xf86   : > { %v935_v15 = vmul.f32 %v933_v13, %v930_v12 }
 0xf88   : > { %v937_v16 = vadd.f32 %v936_v14, %v935_v15 }
 0xf8a   : > { %939 = vrot.lane.b32.xlu0 %v937_v16, %s2586_s5 }
 0xffc   : > { %v940_v17 = vpop.permute.xlu0 %939 }
 0xffd   : > { %942 = vst.msk [vmem:[%s2650_s30 + $0x28] sm:$0xff] %vm296_vm0, %v940_v17  ;;  %2326 = vmatmul.mubr.msk.f32.vlgmr.msra.gmra.mxu0 %vm296_vm0, %v940_v17 }
0x10bd   : > { %v1012_v18 = vpop.f32.mrf.mxu0 }
0x10be   : > { %v1013_v19 = vadd.f32 %v1012_v18, %v2697_v11 }
0x10bf   : > { %v2327_v20 = vpop.f32.mrf.mxu0 }
0x10c0   : > { %1024 = vrot.lane.b32.xlu1 %v1013_v19, %s2585_s4  ;;  %v1016_v22 = vadd.f32 %v1013_v19, %v943_v21 }
0x10c2   : > { %v2146_v23 = vmul.f32 -1.442695, %v1016_v22 }
0x10c4   : > { %2498 = vpow2.f32 %v2146_v23 }
0x10d1   : > { %v2499_v24 = vpop.eup %2498 }
0x10d2   : > { %v1020_v25 = vadd.f32 1.0, %v2499_v24 }
0x10d4   : > { %2500 = vrcp.f32 %v1020_v25 }
0x10e1   : > { %v2501_v26 = vpop.eup %2500 }
0x10e2   : > { %v1034_v32 = vsub.f32 1.0, %v2501_v26  ;;  %v1040_v34 = vmul.f32 %v2501_v26, %v937_v16 }
0x1132   : > { %v1025_v27 = vpop.permute.xlu1 %1024 }
0x1133   : > { %v1027_v28 = vmul.f32 %v2501_v26, %v1025_v27 }
0x1135   : > { %1029 = vrot.lane.b32.xlu0 %v1027_v28, %s2585_s4 }
0x11a7   : > { %v1030_v29 = vpop.permute.xlu0 %1029 }
0x11a8   : > { %v1032_v30 = vadd.f32 %v1030_v29, %v943_v21 }
0x11aa   : > { %2502 = vtanh.f32 %v1032_v30 }
0x11b7   : > { %v2503_v31 = vpop.eup %2502 }
0x11b8   : > { %1036 = vrot.lane.b32.xlu1 %v2503_v31, %s2586_s5 }
0x122a   : > { %v1037_v33 = vpop.permute.xlu1 %1036 }
0x122b   : > { %v1039_v35 = vmul.f32 %v1037_v33, %v1034_v32 }
0x122d   : > { %v1041_v36 = vadd.f32 %v1040_v34, %v1039_v35 }
0x122f   : > { %1043 = vrot.lane.b32.xlu0 %v1041_v36, %s2586_s5 }
0x12a1   : > { %v1044_v37 = vpop.permute.xlu0 %1043 }
0x12a2   : > { %1046 = vst.msk [vmem:[%s2650_s30 + $0x30] sm:$0xff] %vm296_vm0, %v1044_v37  ;;  %2337 = vmatmul.mubr.msk.f32.vlgmr.msra.gmra.mxu1 %vm296_vm0, %v1044_v37 }
0x1362   : > { %v1116_v38 = vpop.f32.mrf.mxu1 }
0x1363   : > { %v1117_v39 = vadd.f32 %v1116_v38, %v2697_v11 }
0x1364   : > { %v2338_v40 = vpop.f32.mrf.mxu1 }
0x1365   : > { %1128 = vrot.lane.b32.xlu1 %v1117_v39, %s2585_s4  ;;  %v1120_v42 = vadd.f32 %v1117_v39, %v1047_v41 }
0x1367   : > { %v2148_v43 = vmul.f32 -1.442695, %v1120_v42 }
0x1369   : > { %2504 = vpow2.f32 %v2148_v43 }
0x1376   : > { %v2505_v44 = vpop.eup %2504 }
0x1377   : > { %v1124_v45 = vadd.f32 1.0, %v2505_v44 }
0x1379   : > { %2506 = vrcp.f32 %v1124_v45 }
0x1386   : > { %v2507_v46 = vpop.eup %2506 }
0x1387   : > { %v1138_v51 = vsub.f32 1.0, %v2507_v46  ;;  %v1144_v53 = vmul.f32 %v2507_v46, %v1041_v36 }
0x13d7   : > { %v1129_v47 = vpop.permute.xlu1 %1128 }
0x13d8   : > { %v1131_v48 = vmul.f32 %v2507_v46, %v1129_v47 }
0x13da   : > { %1133 = vrot.lane.b32.xlu0 %v1131_v48, %s2585_s4 }
0x144c   : > { %v1134_v49 = vpop.permute.xlu0 %1133 }
0x144d   : > { %v1136_v50 = vadd.f32 %v1134_v49, %v1047_v41 }
0x144f   : > { %2508 = vtanh.f32 %v1136_v50 }
0x145c   : > { %v2509_v11 = vpop.eup %2508 }
0x145d   : > { %1140 = vrot.lane.b32.xlu1 %v2509_v11, %s2586_s5 }
0x14cf   : > { %v1141_v52 = vpop.permute.xlu1 %1140 }
0x14d0   : > { %v1143_v54 = vmul.f32 %v1141_v52, %v1138_v51 }
0x14d2   : > { %v1145_v55 = vadd.f32 %v1144_v53, %v1143_v54 }
0x14d4   : > { %1147 = vrot.lane.b32.xlu0 %v1145_v55, %s2586_s5 }
0x1546   : > { %v1148_v56 = vpop.permute.xlu0 %1147 }
0x1547   : > { %1150 = vst.msk [vmem:[%s2650_s30 + $0x38] sm:$0xff] %vm296_vm0, %v1148_v56  ;;  %1151 = vst.msk [vmem:[#allocation2] sm:$0xff] %vm296_vm0, %v1148_v56 }
0x1548 PF: > { %p2149_p6 = scmp.ne.s32.totalorder %s2572_s12, 1 }
0x1549   : > { %s2590_s7 = smov (!%p2149_p6), 64   ;;  %s2591_s8 = smov (!%p2149_p6), 96  }
0x154a   : > { %1155 = sbr.rel (%p2149_p6) target bundleno = 10885 (0x2a85), region = 44  ;;  %s2592_s9 = smov (!%p2149_p6), 32  }
0x154f   : > { %v2588_v57 = vmov 0.0   ;;  %vm2589_vm2 = vmmov 0   ;;  %v1156_v58 = vld [vmem:[#allocation2] sm:$0xff]  ;;  %v1159_v59 = vlaneseq  ;;  %v1157_v8 = vld [vmem:[%s2639_s21 + $0x38] sm:$0xff]  ;;  %v1272_v28 = vld [vmem:[%s2639_s21 + $0x30] sm:$0xff] }
0x1550   : > { %2339 = vmatprep.subr.mxu0 %v2588_v57  ;;  %2347 = vmatprep.mubr.msk.f32.mxu0 %vm2589_vm2, %v2588_v57  ;;  %v1376_v48 = vld [vmem:[%s2639_s21 + $0x28] sm:$0xff] }
0x1551   : > { %2340 = vmatpush3.msra.mxu0 %v2658_v4  ;;  %2350 = vmatprep.subr.mxu1 %v2588_v57  ;;  %v1160_v60 = vshrl.u32 %v1159_v59, 7 }
0x1552   : > { %2341 = vmatprep.subr.mxu0 %v2588_v57  ;;  %2351 = vmatpush3.msra.mxu1 %v2658_v4 }
0x1553   : > { %2342 = vmatpush3.msra.mxu0 %v2656_v3  ;;  %2352 = vmatprep.subr.mxu1 %v2588_v57  ;;  %v1161_v61 = vsub.s32 0, %v1160_v60 }
0x1554   : > { %2343 = vmatprep.subr.mxu0 %v2588_v57  ;;  %2353 = vmatpush3.msra.mxu1 %v2656_v3 }
0x1555   : > { %2344 = vmatpush3.msra.mxu0 %v2654_v2  ;;  %2354 = vmatprep.subr.mxu1 %v2588_v57  ;;  %v2854_v62 = vrot.slane %v2660_v5, %v1161_v61 }
0x1556   : > { %2345 = vmatprep.subr.mxu0 %v2588_v57  ;;  %2355 = vmatpush3.msra.mxu1 %v2654_v2 }
0x1557   : > { %2346 = vmatpush3.msra.mxu0 %v2652_v1  ;;  %2356 = vmatprep.subr.mxu1 %v2588_v57 }
0x1558   : > { %2348 = vmatmul.mubr.msk.f32.vlgmr.msra.gmra.mxu0 %vm296_vm0, %v1156_v58  ;;  %2357 = vmatpush3.msra.mxu1 %v2652_v1 }
0x1559   : > { %2358 = vmatprep.mubr.msk.f32.mxu1 %vm2589_vm2, %v2588_v57  ;;  %2361 = vmatprep.subr.mxu0 %v2588_v57 }
0x155a   : > { %2362 = vmatpush3.msra.mxu0 %v2658_v4  ;;  %2369 = vmatprep.mubr.msk.f32.mxu0 %vm2589_vm2, %v2588_v57 }
0x155b   : > { %2363 = vmatprep.subr.mxu0 %v2588_v57  ;;  %2372 = vmatprep.subr.mxu1 %v2588_v57 }
0x155c   : > { %2364 = vmatpush3.msra.mxu0 %v2656_v3 }
0x155d   : > { %2365 = vmatprep.subr.mxu0 %v2588_v57 }
0x155e   : > { %2366 = vmatpush3.msra.mxu0 %v2654_v2 }
0x155f   : > { %2367 = vmatprep.subr.mxu0 %v2588_v57 }
0x1560   : > { %2368 = vmatpush3.msra.mxu0 %v2652_v1 }
0x1561   : > { %2383 = vmatprep.subr.mxu0 %v2588_v57 }
0x1618   : > { %v1234_v63 = vpop.f32.mrf.mxu0 }
0x1619   : > { %v1235_v0 = vadd.f32 %v1234_v63, %v2854_v62 }
0x161a   : > { %v2349_v7 = vpop.f32.mrf.mxu0 }
0x161b   : > { %1246 = vrot.lane.b32.xlu0 %v1235_v0, %s2590_s7  ;;  %v1238_v6 = vadd.f32 %v1235_v0, %v1157_v8 }
0x161d   : > { %v2151_v9 = vmul.f32 -1.442695, %v1238_v6 }
0x161f   : > { %2510 = vpow2.f32 %v2151_v9 }
0x162c   : > { %v2511_v10 = vpop.eup %2510 }
0x162d   : > { %v1242_v12 = vadd.f32 1.0, %v2511_v10  ;;  %v1480_v10 = vld [vmem:[%s2639_s21 + $0x20] sm:$0xff] }
0x162f   : > { %2512 = vrcp.f32 %v1242_v12 }
0x163c   : > { %v2513_v13 = vpop.eup %2512 }
0x163d   : > { %v1256_v19 = vsub.f32 1.0, %v2513_v13 }
0x168d   : > { %v1247_v14 = vpop.permute.xlu0 %1246 }
0x168e   : > { %v1249_v15 = vmul.f32 %v2513_v13, %v1247_v14 }
0x1690   : > { %1251 = vrot.lane.b32.xlu0 %v1249_v15, %s2590_s7 }
0x1702   : > { %v1252_v5 = vpop.permute.xlu0 %1251 }
0x1703   : > { %v1254_v16 = vadd.f32 %v1252_v5, %v1157_v8 }
0x1705   : > { %2514 = vtanh.f32 %v1254_v16 }
0x1712   : > { %v2515_v17 = vpop.eup %2514 }
0x1713   : > { %1258 = vrot.lane.b32.xlu1 %v2515_v17, %s2591_s8 }
0x1717   : > { %1262 = vrot.lane.b32.xlu1 %v1156_v58, %s2592_s9 }
0x1785   : > { %v1259_v18 = vpop.permute.xlu1 %1258 }
0x1786   : > { %v1261_v21 = vmul.f32 %v1259_v18, %v1256_v19 }
0x1789   : > { %v1263_v20 = vpop.permute.xlu1 %1262 }
0x178a   : > { %v1265_v22 = vmul.f32 %v2513_v13, %v1263_v20 }
0x178c   : > { %v1266_v23 = vadd.f32 %v1265_v22, %v1261_v21 }
0x178e   : > { %1268 = vrot.lane.b32.xlu0 %v1266_v23, %s2591_s8 }
0x1800   : > { %v1269_v24 = vpop.permute.xlu0 %1268 }
0x1801   : > { %1271 = vst.msk [vmem:[%s2650_s30 + $0x38] sm:$0xff] %vm296_vm0, %v1269_v24  ;;  %2359 = vmatmul.mubr.msk.f32.vlgmr.msra.gmra.mxu1 %vm296_vm0, %v1269_v24 }
0x1802   : > { %2373 = vmatpush3.msra.mxu1 %v2658_v4  ;;  %2380 = vmatprep.mubr.msk.f32.mxu1 %vm2589_vm2, %v2588_v57 }
0x1803   : > { %2374 = vmatprep.subr.mxu1 %v2588_v57 }
0x1804   : > { %2375 = vmatpush3.msra.mxu1 %v2656_v3 }
0x1805   : > { %2376 = vmatprep.subr.mxu1 %v2588_v57 }
0x1806   : > { %2377 = vmatpush3.msra.mxu1 %v2654_v2 }
0x1807   : > { %2378 = vmatprep.subr.mxu1 %v2588_v57 }
0x1808   : > { %2379 = vmatpush3.msra.mxu1 %v2652_v1 }
0x1809   : > { %2394 = vmatprep.subr.mxu1 %v2588_v57 }
0x18c1   : > { %v1341_v25 = vpop.f32.mrf.mxu1 }
0x18c2   : > { %v1342_v26 = vadd.f32 %v1341_v25, %v2854_v62 }
0x18c3   : > { %v2360_v27 = vpop.f32.mrf.mxu1 }
0x18c4   : > { %1353 = vrot.lane.b32.xlu1 %v1342_v26, %s2590_s7  ;;  %v1345_v29 = vadd.f32 %v1342_v26, %v1272_v28 }
0x18c6   : > { %v2153_v30 = vmul.f32 -1.442695, %v1345_v29 }
0x18c8   : > { %2516 = vpow2.f32 %v2153_v30  ;;  %v1584_v30 = vld [vmem:[%s2639_s21 + $0x18] sm:$0xff] }
0x18d5   : > { %v2517_v31 = vpop.eup %2516 }
0x18d6   : > { %v1349_v32 = vadd.f32 1.0, %v2517_v31 }
0x18d8   : > { %2518 = vrcp.f32 %v1349_v32 }
0x18e5   : > { %v2519_v33 = vpop.eup %2518 }
0x18e6   : > { %v1363_v39 = vsub.f32 1.0, %v2519_v33  ;;  %v1369_v41 = vmul.f32 %v2519_v33, %v1266_v23 }
0x1936   : > { %v1354_v34 = vpop.permute.xlu1 %1353 }
0x1937   : > { %v1356_v35 = vmul.f32 %v2519_v33, %v1354_v34 }
0x1939   : > { %1358 = vrot.lane.b32.xlu0 %v1356_v35, %s2590_s7 }
0x19ab   : > { %v1359_v36 = vpop.permute.xlu0 %1358 }
0x19ac   : > { %v1361_v37 = vadd.f32 %v1359_v36, %v1272_v28 }
0x19ae   : > { %2520 = vtanh.f32 %v1361_v37 }
0x19bb   : > { %v2521_v38 = vpop.eup %2520 }
0x19bc   : > { %1365 = vrot.lane.b32.xlu1 %v2521_v38, %s2591_s8 }
0x1a2e   : > { %v1366_v40 = vpop.permute.xlu1 %1365 }
0x1a2f   : > { %v1368_v42 = vmul.f32 %v1366_v40, %v1363_v39 }
0x1a31   : > { %v1370_v43 = vadd.f32 %v1369_v41, %v1368_v42 }
0x1a33   : > { %1372 = vrot.lane.b32.xlu0 %v1370_v43, %s2591_s8 }
0x1aa5   : > { %v1373_v44 = vpop.permute.xlu0 %1372 }
0x1aa6   : > { %1375 = vst.msk [vmem:[%s2650_s30 + $0x30] sm:$0xff] %vm296_vm0, %v1373_v44  ;;  %2370 = vmatmul.mubr.msk.f32.vlgmr.msra.gmra.mxu0 %vm296_vm0, %v1373_v44 }
0x1aa7   : > { %2384 = vmatpush3.msra.mxu0 %v2658_v4  ;;  %2391 = vmatprep.mubr.msk.f32.mxu0 %vm2589_vm2, %v2588_v57 }
0x1aa8   : > { %2385 = vmatprep.subr.mxu0 %v2588_v57 }
0x1aa9   : > { %2386 = vmatpush3.msra.mxu0 %v2656_v3 }
0x1aaa   : > { %2387 = vmatprep.subr.mxu0 %v2588_v57 }
0x1aab   : > { %2388 = vmatpush3.msra.mxu0 %v2654_v2 }
0x1aac   : > { %2389 = vmatprep.subr.mxu0 %v2588_v57 }
0x1aad   : > { %2390 = vmatpush3.msra.mxu0 %v2652_v1 }
0x1aae   : > { %2405 = vmatprep.subr.mxu0 %v2588_v57 }
0x1b66   : > { %v1445_v45 = vpop.f32.mrf.mxu0 }
0x1b67   : > { %v1446_v46 = vadd.f32 %v1445_v45, %v2854_v62 }
0x1b68   : > { %v2371_v47 = vpop.f32.mrf.mxu0 }
0x1b69   : > { %1457 = vrot.lane.b32.xlu1 %v1446_v46, %s2590_s7  ;;  %v1449_v49 = vadd.f32 %v1446_v46, %v1376_v48 }
0x1b6b   : > { %v2155_v50 = vmul.f32 -1.442695, %v1449_v49 }
0x1b6d   : > { %2522 = vpow2.f32 %v2155_v50 }
0x1b7a   : > { %v2523_v11 = vpop.eup %2522 }
0x1b7b   : > { %v1453_v51 = vadd.f32 1.0, %v2523_v11 }
0x1b7d   : > { %2524 = vrcp.f32 %v1453_v51 }
0x1b8a   : > { %v2525_v52 = vpop.eup %2524 }
0x1b8b   : > { %v1467_v59 = vsub.f32 1.0, %v2525_v52  ;;  %v1473_v61 = vmul.f32 %v2525_v52, %v1370_v43 }
0x1bdb   : > { %v1458_v53 = vpop.permute.xlu1 %1457 }
0x1bdc   : > { %v1460_v54 = vmul.f32 %v2525_v52, %v1458_v53 }
0x1bde   : > { %1462 = vrot.lane.b32.xlu0 %v1460_v54, %s2590_s7 }
0x1c50   : > { %v1463_v55 = vpop.permute.xlu0 %1462 }
0x1c51   : > { %v1465_v56 = vadd.f32 %v1463_v55, %v1376_v48 }
0x1c53   : > { %2526 = vtanh.f32 %v1465_v56 }
0x1c60   : > { %v2527_v58 = vpop.eup %2526 }
0x1c61   : > { %1469 = vrot.lane.b32.xlu1 %v2527_v58, %s2591_s8 }
0x1cd3   : > { %v1470_v60 = vpop.permute.xlu1 %1469 }
0x1cd4   : > { %v1472_v63 = vmul.f32 %v1470_v60, %v1467_v59 }
0x1cd6   : > { %v1474_v0 = vadd.f32 %v1473_v61, %v1472_v63 }
0x1cd8   : > { %1476 = vrot.lane.b32.xlu0 %v1474_v0, %s2591_s8 }
0x1d4a   : > { %v1477_v7 = vpop.permute.xlu0 %1476 }
0x1d4b   : > { %1479 = vst.msk [vmem:[%s2650_s30 + $0x28] sm:$0xff] %vm296_vm0, %v1477_v7  ;;  %2381 = vmatmul.mubr.msk.f32.vlgmr.msra.gmra.mxu1 %vm296_vm0, %v1477_v7 }
0x1d4c   : > { %2395 = vmatpush3.msra.mxu1 %v2658_v4  ;;  %2402 = vmatprep.mubr.msk.f32.mxu1 %vm2589_vm2, %v2588_v57 }
0x1d4d   : > { %2396 = vmatprep.subr.mxu1 %v2588_v57 }
0x1d4e   : > { %2397 = vmatpush3.msra.mxu1 %v2656_v3 }
0x1d4f   : > { %2398 = vmatprep.subr.mxu1 %v2588_v57 }
0x1d50   : > { %2399 = vmatpush3.msra.mxu1 %v2654_v2 }
0x1d51   : > { %2400 = vmatprep.subr.mxu1 %v2588_v57 }
0x1d52   : > { %2401 = vmatpush3.msra.mxu1 %v2652_v1 }
0x1d53   : > { %2416 = vmatprep.subr.mxu1 %v2588_v57 }
0x1e0b   : > { %v1549_v8 = vpop.f32.mrf.mxu1 }
0x1e0c   : > { %v1550_v6 = vadd.f32 %v1549_v8, %v2854_v62  ;;  %v1792_v8 = vld [vmem:[%s2639_s21 + $0x8] sm:$0xff] }
0x1e0d   : > { %v2382_v9 = vpop.f32.mrf.mxu1 }
0x1e0e   : > { %1561 = vrot.lane.b32.xlu1 %v1550_v6, %s2590_s7  ;;  %v1553_v12 = vadd.f32 %v1550_v6, %v1480_v10 }
0x1e10   : > { %v2157_v13 = vmul.f32 -1.442695, %v1553_v12 }
0x1e12   : > { %2528 = vpow2.f32 %v2157_v13 }
0x1e1f   : > { %v2529_v14 = vpop.eup %2528 }
0x1e20   : > { %v1557_v15 = vadd.f32 1.0, %v2529_v14 }
0x1e22   : > { %2530 = vrcp.f32 %v1557_v15 }
0x1e2f   : > { %v2531_v5 = vpop.eup %2530 }
0x1e30   : > { %v1571_v21 = vsub.f32 1.0, %v2531_v5  ;;  %v1577_v23 = vmul.f32 %v2531_v5, %v1474_v0 }
0x1e80   : > { %v1562_v16 = vpop.permute.xlu1 %1561 }
0x1e81   : > { %v1564_v17 = vmul.f32 %v2531_v5, %v1562_v16 }
0x1e83   : > { %1566 = vrot.lane.b32.xlu0 %v1564_v17, %s2590_s7 }
0x1ef5   : > { %v1567_v18 = vpop.permute.xlu0 %1566 }
0x1ef6   : > { %v1569_v19 = vadd.f32 %v1567_v18, %v1480_v10 }
0x1ef8   : > { %2532 = vtanh.f32 %v1569_v19 }
0x1f05   : > { %v2533_v20 = vpop.eup %2532 }
0x1f06   : > { %1573 = vrot.lane.b32.xlu1 %v2533_v20, %s2591_s8 }
0x1f78   : > { %v1574_v22 = vpop.permute.xlu1 %1573 }
0x1f79   : > { %v1576_v24 = vmul.f32 %v1574_v22, %v1571_v21 }
0x1f7b   : > { %v1578_v25 = vadd.f32 %v1577_v23, %v1576_v24 }
0x1f7d   : > { %1580 = vrot.lane.b32.xlu0 %v1578_v25, %s2591_s8 }
0x1fef   : > { %v1581_v26 = vpop.permute.xlu0 %1580 }
0x1ff0   : > { %1583 = vst.msk [vmem:[%s2650_s30 + $0x20] sm:$0xff] %vm296_vm0, %v1581_v26  ;;  %2392 = vmatmul.mubr.msk.f32.vlgmr.msra.gmra.mxu0 %vm296_vm0, %v1581_v26 }
0x1ff1   : > { %2406 = vmatpush3.msra.mxu0 %v2658_v4  ;;  %2413 = vmatprep.mubr.msk.f32.mxu0 %vm2589_vm2, %v2588_v57 }
0x1ff2   : > { %2407 = vmatprep.subr.mxu0 %v2588_v57 }
0x1ff3   : > { %2408 = vmatpush3.msra.mxu0 %v2656_v3 }
0x1ff4   : > { %2409 = vmatprep.subr.mxu0 %v2588_v57 }
0x1ff5   : > { %2410 = vmatpush3.msra.mxu0 %v2654_v2 }
0x1ff6   : > { %2411 = vmatprep.subr.mxu0 %v2588_v57 }
0x1ff7   : > { %2412 = vmatpush3.msra.mxu0 %v2652_v1 }
0x20b0   : > { %v1653_v27 = vpop.f32.mrf.mxu0 }
0x20b1   : > { %v1654_v28 = vadd.f32 %v1653_v27, %v2854_v62  ;;  %v1896_v27 = vld [vmem:[%s2639_s21] sm:$0xff] }
0x20b2   : > { %v2393_v29 = vpop.f32.mrf.mxu0 }
0x20b3   : > { %1665 = vrot.lane.b32.xlu1 %v1654_v28, %s2590_s7  ;;  %v1657_v31 = vadd.f32 %v1654_v28, %v1584_v30 }
0x20b5   : > { %v2159_v32 = vmul.f32 -1.442695, %v1657_v31 }
0x20b7   : > { %2534 = vpow2.f32 %v2159_v32 }
0x20c4   : > { %v2535_v33 = vpop.eup %2534 }
0x20c5   : > { %v1661_v34 = vadd.f32 1.0, %v2535_v33 }
0x20c7   : > { %2536 = vrcp.f32 %v1661_v34 }
0x20d4   : > { %v2537_v35 = vpop.eup %2536 }
0x20d5   : > { %v1675_v41 = vsub.f32 1.0, %v2537_v35  ;;  %v1681_v43 = vmul.f32 %v2537_v35, %v1578_v25 }
0x2125   : > { %v1666_v36 = vpop.permute.xlu1 %1665 }
0x2126   : > { %v1668_v37 = vmul.f32 %v2537_v35, %v1666_v36 }
0x2128   : > { %1670 = vrot.lane.b32.xlu0 %v1668_v37, %s2590_s7 }
0x219a   : > { %v1671_v38 = vpop.permute.xlu0 %1670 }
0x219b   : > { %v1673_v39 = vadd.f32 %v1671_v38, %v1584_v30 }
0x219d   : > { %2538 = vtanh.f32 %v1673_v39 }
0x21aa   : > { %v2539_v40 = vpop.eup %2538 }
0x21ab   : > { %1677 = vrot.lane.b32.xlu1 %v2539_v40, %s2591_s8 }
0x221d   : > { %v1678_v42 = vpop.permute.xlu1 %1677 }
0x221e   : > { %v1680_v44 = vmul.f32 %v1678_v42, %v1675_v41 }
0x2220   : > { %v1682_v45 = vadd.f32 %v1681_v43, %v1680_v44 }
0x2222   : > { %1684 = vrot.lane.b32.xlu0 %v1682_v45, %s2591_s8 }
0x2294   : > { %v1685_v46 = vpop.permute.xlu0 %1684 }
0x2295   : > { %1687 = vst.msk [vmem:[%s2650_s30 + $0x18] sm:$0xff] %vm296_vm0, %v1685_v46  ;;  %2403 = vmatmul.mubr.msk.f32.vlgmr.msra.gmra.mxu1 %vm296_vm0, %v1685_v46 }
0x2296   : > { %2417 = vmatpush3.msra.mxu1 %v2658_v4  ;;  %2424 = vmatprep.mubr.msk.f32.mxu1 %vm2589_vm2, %v2588_v57  ;;  %v1688_v4 = vld [vmem:[%s2639_s21 + $0x10] sm:$0xff] }
0x2297   : > { %2418 = vmatprep.subr.mxu1 %v2588_v57 }
0x2298   : > { %2419 = vmatpush3.msra.mxu1 %v2656_v3 }
0x2299   : > { %2420 = vmatprep.subr.mxu1 %v2588_v57 }
0x229a   : > { %2421 = vmatpush3.msra.mxu1 %v2654_v2 }
0x229b   : > { %2422 = vmatprep.subr.mxu1 %v2588_v57 }
0x229c   : > { %2423 = vmatpush3.msra.mxu1 %v2652_v1 }
0x2355   : > { %v1757_v47 = vpop.f32.mrf.mxu1 }
0x2356   : > { %v1758_v48 = vadd.f32 %v1757_v47, %v2854_v62 }
0x2357   : > { %v2404_v49 = vpop.f32.mrf.mxu1 }
0x2358   : > { %1769 = vrot.lane.b32.xlu1 %v1758_v48, %s2590_s7  ;;  %v1761_v50 = vadd.f32 %v1758_v48, %v1688_v4 }
0x235a   : > { %v2161_v11 = vmul.f32 -1.442695, %v1761_v50 }
0x235c   : > { %2540 = vpow2.f32 %v2161_v11 }
0x2369   : > { %v2541_v51 = vpop.eup %2540 }
0x236a   : > { %v1765_v3 = vadd.f32 1.0, %v2541_v51 }
0x236c   : > { %2542 = vrcp.f32 %v1765_v3 }
0x2379   : > { %v2543_v52 = vpop.eup %2542 }
0x237a   : > { %v1779_v55 = vsub.f32 1.0, %v2543_v52  ;;  %v1785_v58 = vmul.f32 %v2543_v52, %v1682_v45 }
0x23ca   : > { %v1770_v2 = vpop.permute.xlu1 %1769 }
0x23cb   : > { %v1772_v53 = vmul.f32 %v2543_v52, %v1770_v2 }
0x23cd   : > { %1774 = vrot.lane.b32.xlu0 %v1772_v53, %s2590_s7 }
0x243f   : > { %v1775_v1 = vpop.permute.xlu0 %1774 }
0x2440   : > { %v1777_v57 = vadd.f32 %v1775_v1, %v1688_v4 }
0x2442   : > { %2544 = vtanh.f32 %v1777_v57 }
0x244f   : > { %v2545_v54 = vpop.eup %2544 }
0x2450   : > { %1781 = vrot.lane.b32.xlu1 %v2545_v54, %s2591_s8 }
0x24c2   : > { %v1782_v56 = vpop.permute.xlu1 %1781 }
0x24c3   : > { %v1784_v59 = vmul.f32 %v1782_v56, %v1779_v55 }
0x24c5   : > { %v1786_v60 = vadd.f32 %v1785_v58, %v1784_v59 }
0x24c7   : > { %1788 = vrot.lane.b32.xlu0 %v1786_v60, %s2591_s8 }
0x2539   : > { %v1789_v61 = vpop.permute.xlu0 %1788 }
0x253a   : > { %1791 = vst.msk [vmem:[%s2650_s30 + $0x10] sm:$0xff] %vm296_vm0, %v1789_v61  ;;  %2414 = vmatmul.mubr.msk.f32.vlgmr.msra.gmra.mxu0 %vm296_vm0, %v1789_v61 }
0x25fa   : > { %v1861_v63 = vpop.f32.mrf.mxu0 }
0x25fb   : > { %v1862_v0 = vadd.f32 %v1861_v63, %v2854_v62 }
0x25fc   : > { %v2415_v7 = vpop.f32.mrf.mxu0 }
0x25fd   : > { %1873 = vrot.lane.b32.xlu1 %v1862_v0, %s2590_s7  ;;  %v1865_v6 = vadd.f32 %v1862_v0, %v1792_v8 }
0x25ff   : > { %v2163_v9 = vmul.f32 -1.442695, %v1865_v6 }
0x2601   : > { %2546 = vpow2.f32 %v2163_v9 }
0x260e   : > { %v2547_v10 = vpop.eup %2546 }
0x260f   : > { %v1869_v12 = vadd.f32 1.0, %v2547_v10 }
0x2611   : > { %2548 = vrcp.f32 %v1869_v12 }
0x261e   : > { %v2549_v13 = vpop.eup %2548 }
0x261f   : > { %v1883_v18 = vsub.f32 1.0, %v2549_v13  ;;  %v1889_v20 = vmul.f32 %v2549_v13, %v1786_v60 }
0x266f   : > { %v1874_v14 = vpop.permute.xlu1 %1873 }
0x2670   : > { %v1876_v15 = vmul.f32 %v2549_v13, %v1874_v14 }
0x2672   : > { %1878 = vrot.lane.b32.xlu0 %v1876_v15, %s2590_s7 }
0x26e4   : > { %v1879_v5 = vpop.permute.xlu0 %1878 }
0x26e5   : > { %v1881_v16 = vadd.f32 %v1879_v5, %v1792_v8 }
0x26e7   : > { %2550 = vtanh.f32 %v1881_v16 }
0x26f4   : > { %v2551_v17 = vpop.eup %2550 }
0x26f5   : > { %1885 = vrot.lane.b32.xlu1 %v2551_v17, %s2591_s8 }
0x2767   : > { %v1886_v19 = vpop.permute.xlu1 %1885 }
0x2768   : > { %v1888_v21 = vmul.f32 %v1886_v19, %v1883_v18 }
0x276a   : > { %v1890_v22 = vadd.f32 %v1889_v20, %v1888_v21 }
0x276c   : > { %1892 = vrot.lane.b32.xlu0 %v1890_v22, %s2591_s8 }
0x27de   : > { %v1893_v23 = vpop.permute.xlu0 %1892 }
0x27df   : > { %1895 = vst.msk [vmem:[%s2650_s30 + $0x8] sm:$0xff] %vm296_vm0, %v1893_v23  ;;  %2425 = vmatmul.mubr.msk.f32.vlgmr.msra.gmra.mxu1 %vm296_vm0, %v1893_v23 }
0x289f   : > { %v1965_v24 = vpop.f32.mrf.mxu1 }
0x28a0   : > { %v1966_v25 = vadd.f32 %v1965_v24, %v2854_v62 }
0x28a1   : > { %v2426_v26 = vpop.f32.mrf.mxu1 }
0x28a2   : > { %1977 = vrot.lane.b32.xlu1 %v1966_v25, %s2590_s7  ;;  %v1969_v28 = vadd.f32 %v1966_v25, %v1896_v27 }
0x28a4   : > { %v2165_v29 = vmul.f32 -1.442695, %v1969_v28 }
0x28a6   : > { %2552 = vpow2.f32 %v2165_v29 }
0x28b3   : > { %v2553_v30 = vpop.eup %2552 }
0x28b4   : > { %v1973_v31 = vadd.f32 1.0, %v2553_v30 }
0x28b6   : > { %2554 = vrcp.f32 %v1973_v31 }
0x28c3   : > { %v2555_v32 = vpop.eup %2554 }
0x28c4   : > { %v1987_v37 = vsub.f32 1.0, %v2555_v32  ;;  %v1993_v39 = vmul.f32 %v2555_v32, %v1890_v22 }
0x2914   : > { %v1978_v33 = vpop.permute.xlu1 %1977 }
0x2915   : > { %v1980_v34 = vmul.f32 %v2555_v32, %v1978_v33 }
0x2917   : > { %1982 = vrot.lane.b32.xlu0 %v1980_v34, %s2590_s7 }
0x2989   : > { %v1983_v35 = vpop.permute.xlu0 %1982 }
0x298a   : > { %v1985_v36 = vadd.f32 %v1983_v35, %v1896_v27 }
0x298c   : > { %2556 = vtanh.f32 %v1985_v36 }
0x2999   : > { %v2557_v62 = vpop.eup %2556 }
0x299a   : > { %1989 = vrot.lane.b32.xlu1 %v2557_v62, %s2591_s8 }
0x2a0c   : > { %v1990_v38 = vpop.permute.xlu1 %1989 }
0x2a0d   : > { %v1992_v40 = vmul.f32 %v1990_v38, %v1987_v37 }
0x2a0f   : > { %v1994_v41 = vadd.f32 %v1993_v39, %v1992_v40 }
0x2a11   : > { %1996 = vrot.lane.b32.xlu0 %v1994_v41, %s2591_s8 }
0x2a83   : > { %v1997_v42 = vpop.permute.xlu0 %1996 }
0x2a84   : > { %1999 = vst.msk [vmem:[%s2650_s30] sm:$0xff] %vm296_vm0, %v1997_v42  ;;  %2000 = vst.msk [vmem:[#allocation2] sm:$0xff] %vm296_vm0, %v1997_v42 }
0x2a85 PF: > { %s13_s14 = sadd.s32 1, %s2580_s14   ;;  %s2989_s12 = smov %s2576_s13 }
0x2a86   : > { %p10_p7 = scmp.ge.s32.totalorder %s13_s14, 4   ;;  %s2990_s13 = smov %s2992_s15 }
0x2a88   :  { %12 = sbr.rel (!%p10_p7) target bundleno = 2 (0x2), region = 80 }

</bundles_post_ra>
